<compile_context>
chip_gen: v7x
topology: tpu7x:2x2x1
jax: 0.10.0
libtpu: 0.0.40
codegen_flags: <defaults>
</compile_context>

<pallas_src>
import functools

import jax
import jax.numpy as jnp
from jax import lax
from jax.experimental import pallas as pl
from jax.experimental.pallas import tpu as pltpu

# LocalResponseNorm(size=5, alpha=1e-4, beta=0.75, k=2) constants
LRN_SIZE, LRN_ALPHA, LRN_BETA, LRN_K = 5, 1e-4, 0.75, 2.0
LANE = 128


def _round_up(x, m):
    return (x + m - 1) // m * m


# ----------------------------- kernels -------------------------------------


def _conv_relu(x_ref, w_ref, b_ref, *, oh, ow, stride, kh, kw):
    """Conv2d + bias + ReLU, fully in VMEM as kh*kw shifted matmuls.

    x_ref : (1, Hp, Wp, Cin)   spatially pre-padded input, one image
    w_ref : (kh*kw, Cin, OCp)  per-tap weight slabs (OC zero-padded to OCp)
    b_ref : (1, OCp)
    returns (oh*ow, OCp) float32, >= 0
    """
    xp = x_ref[0]                                  # (Hp, Wp, Cin)
    cin = xp.shape[-1]
    ocp = w_ref.shape[-1]
    acc = jnp.zeros((oh * ow, ocp), jnp.float32)
    for i in range(kh):
        for j in range(kw):
            if stride == 1:
                tap = xp[i:i + oh, j:j + ow, :]    # (oh, ow, Cin), unit-stride slice
            else:
                # TODO(synk): stride > 1 relies on lax.slice-with-strides lowering;
                # the AlexNetBlock config exercised here uses stride=1.
                tap = lax.slice(
                    xp, (i, j, 0),
                    (i + stride * (oh - 1) + 1, j + stride * (ow - 1) + 1, cin),
                    (stride, stride, 1))
            acc = acc + jnp.dot(tap.reshape(oh * ow, cin), w_ref[i * kw + j],
                                preferred_element_type=jnp.float32)
    return jnp.maximum(acc + b_ref[...], 0.0)      # (oh*ow, OCp), >= 0


def conv_relu_kernel(x_ref, w_ref, b_ref, o_ref, *, oh, ow, stride, kh, kw):
    o_ref[0] = _conv_relu(x_ref, w_ref, b_ref, oh=oh, ow=ow, stride=stride,
                          kh=kh, kw=kw)


def conv_lrn_pool_kernel(x_ref, w_ref, b_ref, band_ref, sel_ref, o_ref, *,
                         oh, ow, stride, kh, kw):
    """Fused Conv2d + ReLU + LocalResponseNorm(5) + MaxPool2d(3, stride=2)."""
    y = _conv_relu(x_ref, w_ref, b_ref, oh=oh, ow=ow, stride=stride,
                   kh=kh, kw=kw)                    # (oh*ow, OCp)

    # --- LRN (cross-channel, size 5): banded matmul on the lane-dense channel axis.
    # Channels >= OC are exactly zero after conv+relu (zero-padded weights/bias), so
    # they contribute nothing, matching PyTorch's zero-padded channel window.
    win = jnp.dot(y * y, band_ref[...], preferred_element_type=jnp.float32)
    base = LRN_K + (LRN_ALPHA / LRN_SIZE) * win
    # base ** -0.75 == rsqrt(base * sqrt(base)); avoids exp/log and the divide.
    y = y * lax.rsqrt(base * jnp.sqrt(base))        # (oh*ow, OCp), >= 0

    # --- MaxPool2d(3, stride=2) in the flat (pixels, channels) layout.
    # Sliding 3x3 max with stride 1: 2 row shifts (by ow, 2*ow) + 2 column shifts
    # (by 1, 2). y >= 0, so zero pad rows are a max-identity; rows that would mix
    # across image rows are never selected by the stride-2 subsample below.
    npix, ocp = y.shape
    zrows = jnp.zeros((2 * ow, ocp), jnp.float32)
    ypad = jnp.concatenate([y, zrows], axis=0)
    v = jnp.maximum(y, jnp.maximum(ypad[ow:ow + npix],
                                   ypad[2 * ow:2 * ow + npix]))
    vpad = jnp.concatenate([v, zrows], axis=0)
    hmax = jnp.maximum(v, jnp.maximum(vpad[1:1 + npix], vpad[2:2 + npix]))
    # hmax[i*ow + j] == max over the 3x3 window with top-left corner (i, j).

    # Stride-2 subsample of rows AND columns in one (ph*pw, oh*ow) 0/1 matmul.
    o_ref[0] = jnp.dot(sel_ref[...], hmax, preferred_element_type=jnp.float32)


# ----------------------------- wrapper --------------------------------------


def alexnet_block(x_nchw, weight, bias, *, stride, padding, pool_and_norm):
    """AlexNetBlock.forward: Conv2d -> ReLU -> [LRN(5) -> MaxPool2d(3, 2)]."""
    n, cin, h, w_in = x_nchw.shape
    oc, _, kh, kw = weight.shape
    ocp = _round_up(oc, LANE)

    oh = (h + 2 * padding - kh) // stride + 1
    ow = (w_in + 2 * padding - kw) // stride + 1

    # NHWC + spatial pre-pad (cheap: +2*padding rows/cols, not a kh*kw im2col blow-up).
    x = jnp.transpose(x_nchw, (0, 2, 3, 1)).astype(jnp.float32)
    xp = jnp.pad(x, ((0, 0), (padding, padding), (padding, padding), (0, 0)))
    hp, wp = xp.shape[1], xp.shape[2]

    # Weights as per-tap (Cin, OCp) slabs, OC zero-padded to a lane-dense 128 multiple.
    w_t = jnp.transpose(weight, (2, 3, 1, 0)).reshape(kh * kw, cin, oc)
    w_t = jnp.pad(w_t.astype(jnp.float32), ((0, 0), (0, 0), (0, ocp - oc)))
    b_p = jnp.pad(bias.astype(jnp.float32), (0, ocp - oc)).reshape(1, ocp)

    cparams = pltpu.CompilerParams(
        dimension_semantics=("parallel",),          # images split across TensorCores
        vmem_limit_bytes=32 * 1024 * 1024)          # safe on v5e/v6e/v7x

    x_spec = pl.BlockSpec((1, hp, wp, cin), lambda b: (b, 0, 0, 0))
    w_spec = pl.BlockSpec((kh * kw, cin, ocp), lambda b: (0, 0, 0))
    b_spec = pl.BlockSpec((1, ocp), lambda b: (0, 0))

    if pool_and_norm:
        ph = (oh - 3) // 2 + 1
        pw = (ow - 3) // 2 + 1
        # LRN band: |c_i - c_j| <= size//2 (symmetric 5-window, matches PyTorch).
        ch = jnp.arange(ocp)
        band = (jnp.abs(ch[:, None] - ch[None, :]) <= (LRN_SIZE // 2)
                ).astype(jnp.float32)                              # (OCp, OCp)
        # Stride-2 pooled-pixel selector: pooled (r, c) <- flat index 2r*ow + 2c.
        pr = jnp.arange(ph * pw)
        src = (pr // pw) * (2 * ow) + (pr % pw) * 2
        sel = (src[:, None] == jnp.arange(oh * ow)[None, :]
               ).astype(jnp.float32)                               # (ph*pw, oh*ow)
        out = pl.pallas_call(
            functools.partial(conv_lrn_pool_kernel, oh=oh, ow=ow,
                              stride=stride, kh=kh, kw=kw),
            out_shape=jax.ShapeDtypeStruct((n, ph * pw, ocp), jnp.float32),
            grid=(n,),
            in_specs=[x_spec, w_spec, b_spec,
                      pl.BlockSpec((ocp, ocp), lambda b: (0, 0)),
                      pl.BlockSpec((ph * pw, oh * ow), lambda b: (0, 0))],
            out_specs=pl.BlockSpec((1, ph * pw, ocp), lambda b: (b, 0, 0)),
            compiler_params=cparams,
        )(xp, w_t, b_p, band, sel)
        out = out.reshape(n, ph, pw, ocp)[..., :oc]
    else:
        out = pl.pallas_call(
            functools.partial(conv_relu_kernel, oh=oh, ow=ow,
                              stride=stride, kh=kh, kw=kw),
            out_shape=jax.ShapeDtypeStruct((n, oh * ow, ocp), jnp.float32),
            grid=(n,),
            in_specs=[x_spec, w_spec, b_spec],
            out_specs=pl.BlockSpec((1, oh * ow, ocp), lambda b: (b, 0, 0)),
            compiler_params=cparams,
        )(xp, w_t, b_p)
        out = out.reshape(n, oh, ow, ocp)[..., :oc]

    return jnp.transpose(out, (0, 3, 1, 2))                        # back to NCHW


# ----------------------------- reference ------------------------------------


def reference(x, weight, bias, *, stride, padding, pool_and_norm):
    out = lax.conv_general_dilated(
        x, weight, (stride, stride),
        [(padding, padding), (padding, padding)],
        dimension_numbers=('NCHW', 'OIHW', 'NCHW'))
    out = out + bias[None, :, None, None]
    out = jnp.maximum(out, 0.0)
    if pool_and_norm:
        c = out.shape[1]
        sq = out * out
        sq_p = jnp.pad(sq, ((0, 0), (LRN_SIZE // 2, (LRN_SIZE - 1) // 2),
                            (0, 0), (0, 0)))
        s = sum(sq_p[:, i:i + c] for i in range(LRN_SIZE))
        out = out / (LRN_K + (LRN_ALPHA / LRN_SIZE) * s) ** LRN_BETA
        out = lax.reduce_window(out, -jnp.inf, lax.max,
                                (1, 1, 3, 3), (1, 1, 2, 2), 'VALID')
    return out


# ----------------------------- main ------------------------------------------


if __name__ == "__main__":
    # AlexNetBlock(in_channels=4, out_channels=8, kernel_size=3, stride=1,
    #              padding=1, pool_and_norm=True)
    N, CIN, H, W = 2, 4, 16, 16
    OC, KS, STRIDE, PAD = 8, 3, 1, 1

    key = jax.random.PRNGKey(0)
    k_x, k_w, k_b = jax.random.split(key, 3)
    x = jax.random.normal(k_x, (N, CIN, H, W), dtype=jnp.float32)
    weight = 0.1 * jax.random.normal(k_w, (OC, CIN, KS, KS), dtype=jnp.float32)
    bias = 0.1 * jax.random.normal(k_b, (OC,), dtype=jnp.float32)

    # Fused Conv -> ReLU -> LRN -> MaxPool path (pool_and_norm=True).
    out = alexnet_block(x, weight, bias, stride=STRIDE, padding=PAD,
                        pool_and_norm=True)
    out = jax.block_until_ready(out)
    ref = reference(x, weight, bias, stride=STRIDE, padding=PAD,
                    pool_and_norm=True)
    assert out.shape == ref.shape == (N, OC, (H - 3) // 2 + 1, (W - 3) // 2 + 1)
    assert jnp.allclose(out, ref, atol=2e-2, rtol=2e-2), \
        f"max abs err {jnp.max(jnp.abs(out - ref))}"

    # Conv -> ReLU only path (pool_and_norm=False).
    out2 = jax.block_until_ready(
        alexnet_block(x, weight, bias, stride=STRIDE, padding=PAD,
                      pool_and_norm=False))
    ref2 = reference(x, weight, bias, stride=STRIDE, padding=PAD,
                     pool_and_norm=False)
    assert out2.shape == ref2.shape == (N, OC, H, W)
    assert jnp.allclose(out2, ref2, atol=2e-2, rtol=2e-2), \
        f"max abs err {jnp.max(jnp.abs(out2 - ref2))}"

    print("KERNEL_OK")
</pallas_src>

<mosaic_0001>
module attributes {stable_mosaic.version = 11 : i64} {
  func.func @conv_lrn_pool_kernel(%arg0: i32, %arg1: memref<1x18x18x4xf32, #tpu.memory_space<vmem>>, %arg2: memref<9x4x128xf32, #tpu.memory_space<vmem>>, %arg3: memref<1x128xf32, #tpu.memory_space<vmem>>, %arg4: memref<128x128xf32, #tpu.memory_space<vmem>>, %arg5: memref<49x256xf32, #tpu.memory_space<vmem>>, %arg6: memref<1x49x128xf32, #tpu.memory_space<vmem>>) attributes {dimension_semantics = [#tpu.dimension_semantics<parallel>], iteration_bounds = array<i64: 2>, scalar_prefetch = 0 : i64, scratch_operands = 0 : i64, tpu.core_type = #tpu.core_type<tc>, window_params = [{transform_indices = @transform_0, window_bounds = array<i64: 1, 18, 18, 4>}, {pipeline_mode = #tpu.pipeline_mode<synchronous>, transform_indices = @transform_1, window_bounds = array<i64: 9, 4, 128>}, {pipeline_mode = #tpu.pipeline_mode<synchronous>, transform_indices = @transform_2, window_bounds = array<i64: 1, 128>}, {pipeline_mode = #tpu.pipeline_mode<synchronous>, transform_indices = @transform_3, window_bounds = array<i64: 128, 128>}, {pipeline_mode = #tpu.pipeline_mode<synchronous>, transform_indices = @transform_4, window_bounds = array<i64: 49, 256>}, {transform_indices = @transform_5, window_bounds = array<i64: 1, 49, 128>}]} {
    %c0 = arith.constant 0 : index
    %c0_0 = arith.constant 0 : index
    %c0_1 = arith.constant 0 : index
    %c0_2 = arith.constant 0 : index
    %0 = vector.load %arg1[%c0, %c0_0, %c0_1, %c0_2] : memref<1x18x18x4xf32, #tpu.memory_space<vmem>>, vector<1x18x18x4xf32>
    %1 = vector.shape_cast %0 : vector<1x18x18x4xf32> to vector<18x18x4xf32>
    %cst = arith.constant 0.000000e+00 : f32
    %2 = vector.broadcast %cst : f32 to vector<256x128xf32>
    %3 = vector.extract_strided_slice %1 {offsets = [0, 0, 0], sizes = [16, 16, 4], strides = [1, 1, 1]} : vector<18x18x4xf32> to vector<16x16x4xf32>
    %4 = vector.shape_cast %3 : vector<16x16x4xf32> to vector<256x4xf32>
    %c0_3 = arith.constant 0 : index
    %c0_4 = arith.constant 0 : index
    %c0_5 = arith.constant 0 : index
    %5 = vector.load %arg2[%c0_3, %c0_4, %c0_5] : memref<9x4x128xf32, #tpu.memory_space<vmem>>, vector<1x4x128xf32>
    %6 = vector.shape_cast %5 : vector<1x4x128xf32> to vector<4x128xf32>
    %cst_6 = arith.constant dense<0.000000e+00> : vector<256x128xf32>
    %7 = tpu.matmul %4, %6, %cst_6 {dimension_numbers = #tpu.dot_dimension_numbers<[1], [0], [0], [1], [0, 0, 1, 1], [], []>} : vector<256x4xf32>, vector<4x128xf32>, vector<256x128xf32> -> vector<256x128xf32>
    %8 = arith.addf %2, %7 : vector<256x128xf32>
    %9 = vector.extract_strided_slice %1 {offsets = [0, 1, 0], sizes = [16, 16, 4], strides = [1, 1, 1]} : vector<18x18x4xf32> to vector<16x16x4xf32>
    %10 = vector.shape_cast %9 : vector<16x16x4xf32> to vector<256x4xf32>
    %c1 = arith.constant 1 : index
    %c0_7 = arith.constant 0 : index
    %c0_8 = arith.constant 0 : index
    %11 = vector.load %arg2[%c1, %c0_7, %c0_8] : memref<9x4x128xf32, #tpu.memory_space<vmem>>, vector<1x4x128xf32>
    %12 = vector.shape_cast %11 : vector<1x4x128xf32> to vector<4x128xf32>
    %cst_9 = arith.constant dense<0.000000e+00> : vector<256x128xf32>
    %13 = tpu.matmul %10, %12, %cst_9 {dimension_numbers = #tpu.dot_dimension_numbers<[1], [0], [0], [1], [0, 0, 1, 1], [], []>} : vector<256x4xf32>, vector<4x128xf32>, vector<256x128xf32> -> vector<256x128xf32>
    %14 = arith.addf %8, %13 : vector<256x128xf32>
    %15 = vector.extract_strided_slice %1 {offsets = [0, 2, 0], sizes = [16, 16, 4], strides = [1, 1, 1]} : vector<18x18x4xf32> to vector<16x16x4xf32>
    %16 = vector.shape_cast %15 : vector<16x16x4xf32> to vector<256x4xf32>
    %c2 = arith.constant 2 : index
    %c0_10 = arith.constant 0 : index
    %c0_11 = arith.constant 0 : index
    %17 = vector.load %arg2[%c2, %c0_10, %c0_11] : memref<9x4x128xf32, #tpu.memory_space<vmem>>, vector<1x4x128xf32>
    %18 = vector.shape_cast %17 : vector<1x4x128xf32> to vector<4x128xf32>
    %cst_12 = arith.constant dense<0.000000e+00> : vector<256x128xf32>
    %19 = tpu.matmul %16, %18, %cst_12 {dimension_numbers = #tpu.dot_dimension_numbers<[1], [0], [0], [1], [0, 0, 1, 1], [], []>} : vector<256x4xf32>, vector<4x128xf32>, vector<256x128xf32> -> vector<256x128xf32>
    %20 = arith.addf %14, %19 : vector<256x128xf32>
    %21 = vector.extract_strided_slice %1 {offsets = [1, 0, 0], sizes = [16, 16, 4], strides = [1, 1, 1]} : vector<18x18x4xf32> to vector<16x16x4xf32>
    %22 = vector.shape_cast %21 : vector<16x16x4xf32> to vector<256x4xf32>
    %c3 = arith.constant 3 : index
    %c0_13 = arith.constant 0 : index
    %c0_14 = arith.constant 0 : index
    %23 = vector.load %arg2[%c3, %c0_13, %c0_14] : memref<9x4x128xf32, #tpu.memory_space<vmem>>, vector<1x4x128xf32>
    %24 = vector.shape_cast %23 : vector<1x4x128xf32> to vector<4x128xf32>
    %cst_15 = arith.constant dense<0.000000e+00> : vector<256x128xf32>
    %25 = tpu.matmul %22, %24, %cst_15 {dimension_numbers = #tpu.dot_dimension_numbers<[1], [0], [0], [1], [0, 0, 1, 1], [], []>} : vector<256x4xf32>, vector<4x128xf32>, vector<256x128xf32> -> vector<256x128xf32>
    %26 = arith.addf %20, %25 : vector<256x128xf32>
    %27 = vector.extract_strided_slice %1 {offsets = [1, 1, 0], sizes = [16, 16, 4], strides = [1, 1, 1]} : vector<18x18x4xf32> to vector<16x16x4xf32>
    %28 = vector.shape_cast %27 : vector<16x16x4xf32> to vector<256x4xf32>
    %c4 = arith.constant 4 : index
    %c0_16 = arith.constant 0 : index
    %c0_17 = arith.constant 0 : index
    %29 = vector.load %arg2[%c4, %c0_16, %c0_17] : memref<9x4x128xf32, #tpu.memory_space<vmem>>, vector<1x4x128xf32>
    %30 = vector.shape_cast %29 : vector<1x4x128xf32> to vector<4x128xf32>
    %cst_18 = arith.constant dense<0.000000e+00> : vector<256x128xf32>
    %31 = tpu.matmul %28, %30, %cst_18 {dimension_numbers = #tpu.dot_dimension_numbers<[1], [0], [0], [1], [0, 0, 1, 1], [], []>} : vector<256x4xf32>, vector<4x128xf32>, vector<256x128xf32> -> vector<256x128xf32>
    %32 = arith.addf %26, %31 : vector<256x128xf32>
    %33 = vector.extract_strided_slice %1 {offsets = [1, 2, 0], sizes = [16, 16, 4], strides = [1, 1, 1]} : vector<18x18x4xf32> to vector<16x16x4xf32>
    %34 = vector.shape_cast %33 : vector<16x16x4xf32> to vector<256x4xf32>
    %c5 = arith.constant 5 : index
    %c0_19 = arith.constant 0 : index
    %c0_20 = arith.constant 0 : index
    %35 = vector.load %arg2[%c5, %c0_19, %c0_20] : memref<9x4x128xf32, #tpu.memory_space<vmem>>, vector<1x4x128xf32>
    %36 = vector.shape_cast %35 : vector<1x4x128xf32> to vector<4x128xf32>
    %cst_21 = arith.constant dense<0.000000e+00> : vector<256x128xf32>
    %37 = tpu.matmul %34, %36, %cst_21 {dimension_numbers = #tpu.dot_dimension_numbers<[1], [0], [0], [1], [0, 0, 1, 1], [], []>} : vector<256x4xf32>, vector<4x128xf32>, vector<256x128xf32> -> vector<256x128xf32>
    %38 = arith.addf %32, %37 : vector<256x128xf32>
    %39 = vector.extract_strided_slice %1 {offsets = [2, 0, 0], sizes = [16, 16, 4], strides = [1, 1, 1]} : vector<18x18x4xf32> to vector<16x16x4xf32>
    %40 = vector.shape_cast %39 : vector<16x16x4xf32> to vector<256x4xf32>
    %c6 = arith.constant 6 : index
    %c0_22 = arith.constant 0 : index
    %c0_23 = arith.constant 0 : index
    %41 = vector.load %arg2[%c6, %c0_22, %c0_23] : memref<9x4x128xf32, #tpu.memory_space<vmem>>, vector<1x4x128xf32>
    %42 = vector.shape_cast %41 : vector<1x4x128xf32> to vector<4x128xf32>
    %cst_24 = arith.constant dense<0.000000e+00> : vector<256x128xf32>
    %43 = tpu.matmul %40, %42, %cst_24 {dimension_numbers = #tpu.dot_dimension_numbers<[1], [0], [0], [1], [0, 0, 1, 1], [], []>} : vector<256x4xf32>, vector<4x128xf32>, vector<256x128xf32> -> vector<256x128xf32>
    %44 = arith.addf %38, %43 : vector<256x128xf32>
    %45 = vector.extract_strided_slice %1 {offsets = [2, 1, 0], sizes = [16, 16, 4], strides = [1, 1, 1]} : vector<18x18x4xf32> to vector<16x16x4xf32>
    %46 = vector.shape_cast %45 : vector<16x16x4xf32> to vector<256x4xf32>
    %c7 = arith.constant 7 : index
    %c0_25 = arith.constant 0 : index
    %c0_26 = arith.constant 0 : index
    %47 = vector.load %arg2[%c7, %c0_25, %c0_26] : memref<9x4x128xf32, #tpu.memory_space<vmem>>, vector<1x4x128xf32>
    %48 = vector.shape_cast %47 : vector<1x4x128xf32> to vector<4x128xf32>
    %cst_27 = arith.constant dense<0.000000e+00> : vector<256x128xf32>
    %49 = tpu.matmul %46, %48, %cst_27 {dimension_numbers = #tpu.dot_dimension_numbers<[1], [0], [0], [1], [0, 0, 1, 1], [], []>} : vector<256x4xf32>, vector<4x128xf32>, vector<256x128xf32> -> vector<256x128xf32>
    %50 = arith.addf %44, %49 : vector<256x128xf32>
    %51 = vector.extract_strided_slice %1 {offsets = [2, 2, 0], sizes = [16, 16, 4], strides = [1, 1, 1]} : vector<18x18x4xf32> to vector<16x16x4xf32>
    %52 = vector.shape_cast %51 : vector<16x16x4xf32> to vector<256x4xf32>
    %c8 = arith.constant 8 : index
    %c0_28 = arith.constant 0 : index
    %c0_29 = arith.constant 0 : index
    %53 = vector.load %arg2[%c8, %c0_28, %c0_29] : memref<9x4x128xf32, #tpu.memory_space<vmem>>, vector<1x4x128xf32>
    %54 = vector.shape_cast %53 : vector<1x4x128xf32> to vector<4x128xf32>
    %cst_30 = arith.constant dense<0.000000e+00> : vector<256x128xf32>
    %55 = tpu.matmul %52, %54, %cst_30 {dimension_numbers = #tpu.dot_dimension_numbers<[1], [0], [0], [1], [0, 0, 1, 1], [], []>} : vector<256x4xf32>, vector<4x128xf32>, vector<256x128xf32> -> vector<256x128xf32>
    %56 = arith.addf %50, %55 : vector<256x128xf32>
    %c0_31 = arith.constant 0 : index
    %c0_32 = arith.constant 0 : index
    %57 = vector.load %arg3[%c0_31, %c0_32] : memref<1x128xf32, #tpu.memory_space<vmem>>, vector<1x128xf32>
    %58 = vector.broadcast %57 : vector<1x128xf32> to vector<256x128xf32>
    %59 = arith.addf %56, %58 : vector<256x128xf32>
    %cst_33 = arith.constant 0.000000e+00 : f32
    %60 = vector.broadcast %cst_33 : f32 to vector<256x128xf32>
    %61 = arith.maximumf %59, %60 : vector<256x128xf32>
    %62 = arith.mulf %61, %61 : vector<256x128xf32>
    %c0_34 = arith.constant 0 : index
    %c0_35 = arith.constant 0 : index
    %63 = vector.load %arg4[%c0_34, %c0_35] : memref<128x128xf32, #tpu.memory_space<vmem>>, vector<128x128xf32>
    %cst_36 = arith.constant dense<0.000000e+00> : vector<256x128xf32>
    %64 = tpu.matmul %62, %63, %cst_36 {dimension_numbers = #tpu.dot_dimension_numbers<[1], [0], [0], [1], [0, 0, 1, 1], [], []>} : vector<256x128xf32>, vector<128x128xf32>, vector<256x128xf32> -> vector<256x128xf32>
    %cst_37 = arith.constant 2.000000e-05 : f32
    %65 = vector.broadcast %cst_37 : f32 to vector<256x128xf32>
    %66 = arith.mulf %65, %64 : vector<256x128xf32>
    %cst_38 = arith.constant 2.000000e+00 : f32
    %67 = vector.broadcast %cst_38 : f32 to vector<256x128xf32>
    %68 = arith.addf %67, %66 : vector<256x128xf32>
    %69 = math.sqrt %68 : vector<256x128xf32>
    %70 = arith.mulf %68, %69 : vector<256x128xf32>
    %71 = math.rsqrt %70 : vector<256x128xf32>
    %72 = arith.mulf %61, %71 : vector<256x128xf32>
    %cst_39 = arith.constant 0.000000e+00 : f32
    %73 = vector.broadcast %cst_39 : f32 to vector<32x128xf32>
    %74 = tpu.concatenate %72, %73 in 0 : vector<256x128xf32>, vector<32x128xf32> -> vector<288x128xf32>
    %75 = vector.extract_strided_slice %74 {offsets = [16, 0], sizes = [256, 128], strides = [1, 1]} : vector<288x128xf32> to vector<256x128xf32>
    %76 = vector.extract_strided_slice %74 {offsets = [32, 0], sizes = [256, 128], strides = [1, 1]} : vector<288x128xf32> to vector<256x128xf32>
    %77 = arith.maximumf %75, %76 : vector<256x128xf32>
    %78 = arith.maximumf %72, %77 : vector<256x128xf32>
    %79 = tpu.concatenate %78, %73 in 0 : vector<256x128xf32>, vector<32x128xf32> -> vector<288x128xf32>
    %80 = vector.extract_strided_slice %79 {offsets = [1, 0], sizes = [256, 128], strides = [1, 1]} : vector<288x128xf32> to vector<256x128xf32>
    %81 = vector.extract_strided_slice %79 {offsets = [2, 0], sizes = [256, 128], strides = [1, 1]} : vector<288x128xf32> to vector<256x128xf32>
    %82 = arith.maximumf %80, %81 : vector<256x128xf32>
    %83 = arith.maximumf %78, %82 : vector<256x128xf32>
    %c0_40 = arith.constant 0 : index
    %c0_41 = arith.constant 0 : index
    %84 = vector.load %arg5[%c0_40, %c0_41] : memref<49x256xf32, #tpu.memory_space<vmem>>, vector<49x256xf32>
    %cst_42 = arith.constant dense<0.000000e+00> : vector<49x128xf32>
    %85 = tpu.matmul %84, %83, %cst_42 {dimension_numbers = #tpu.dot_dimension_numbers<[1], [0], [0], [1], [0, 0, 1, 1], [], []>} : vector<49x256xf32>, vector<256x128xf32>, vector<49x128xf32> -> vector<49x128xf32>
    %c0_43 = arith.constant 0 : index
    %c0_44 = arith.constant 0 : index
    %c0_45 = arith.constant 0 : index
    %86 = vector.load %arg6[%c0_43, %c0_44, %c0_45] : memref<1x49x128xf32, #tpu.memory_space<vmem>>, vector<1x49x128xf32>
    %87 = vector.shape_cast %86 : vector<1x49x128xf32> to vector<49x128xf32>
    %88 = vector.shape_cast %85 : vector<49x128xf32> to vector<1x49x128xf32>
    tpu.vector_store %arg6[%c0_43, %c0_44, %c0_45], %88 {strides = array<i32>} : memref<1x49x128xf32, #tpu.memory_space<vmem>>, vector<1x49x128xf32>,
    return
  }
  func.func @transform_0(%arg0: i32) -> (i32, i32, i32, i32) {
    %c0_i32 = arith.constant 0 : i32
    %c0_i32_0 = arith.constant 0 : i32
    %c0_i32_1 = arith.constant 0 : i32
    %c0_i32_2 = arith.constant 0 : i32
    return %arg0, %c0_i32, %c0_i32_0, %c0_i32_1 : i32, i32, i32, i32
  }
  func.func @transform_1(%arg0: i32) -> (i32, i32, i32) {
    %c0_i32 = arith.constant 0 : i32
    %c0_i32_0 = arith.constant 0 : i32
    %c0_i32_1 = arith.constant 0 : i32
    %c0_i32_2 = arith.constant 0 : i32
    return %c0_i32, %c0_i32_0, %c0_i32_1 : i32, i32, i32
  }
  func.func @transform_2(%arg0: i32) -> (i32, i32) {
    %c0_i32 = arith.constant 0 : i32
    %c0_i32_0 = arith.constant 0 : i32
    %c0_i32_1 = arith.constant 0 : i32
    return %c0_i32, %c0_i32_0 : i32, i32
  }
  func.func @transform_3(%arg0: i32) -> (i32, i32) {
    %c0_i32 = arith.constant 0 : i32
    %c0_i32_0 = arith.constant 0 : i32
    %c0_i32_1 = arith.constant 0 : i32
    return %c0_i32, %c0_i32_0 : i32, i32
  }
  func.func @transform_4(%arg0: i32) -> (i32, i32) {
    %c0_i32 = arith.constant 0 : i32
    %c0_i32_0 = arith.constant 0 : i32
    %c0_i32_1 = arith.constant 0 : i32
    return %c0_i32, %c0_i32_0 : i32, i32
  }
  func.func @transform_5(%arg0: i32) -> (i32, i32, i32) {
    %c0_i32 = arith.constant 0 : i32
    %c0_i32_0 = arith.constant 0 : i32
    %c0_i32_1 = arith.constant 0 : i32
    return %arg0, %c0_i32, %c0_i32_0 : i32, i32, i32
  }
}

</mosaic_0001>

<bundles_post_ra>
// kernel: tpu_custom_call.1
= control target key start
LH: loop header
LB: loop body
LE: loop exit
PB: predicated region body
PF: predicated region fallthrough
CT: control target
= control target key end

     0   :  { %s6059_s18 = smov 0   ;;  %s8381_s0 = inlined_call_operand.vmem [shape: f32[2,18,18,4], index: 0, kind: input, shape index: {}]   ;;  %s8382_s1 = inlined_call_operand.vmem [shape: f32[9,4,128], index: 1, kind: input, shape index: {}]   ;;  %s8383_s2 = inlined_call_operand.vmem [shape: f32[1,128], index: 2, kind: input, shape index: {}]   ;;  %s8384_s3 = inlined_call_operand.vmem [shape: f32[128,128], index: 3, kind: input, shape index: {}]   ;;  %s8385_s4 = inlined_call_operand.vmem [shape: f32[49,256], index: 4, kind: input, shape index: {}]   ;;  %s8386_s5 = inlined_call_operand.vmem [shape: f32[2,49,128], index: 5, kind: output, shape index: {}]  }
   0x1 LB: > { %s4316_s19 = sadd.s32 4294967295, %s6026_s18   ;;  %p4320_p0 = scmp.ge.s32.totalorder %s6026_s18, 1  ;;  %s6026_s18 = sphi %s6059_s18, %s15_s18  }
   0x2   : > { %p187_p1 = scmp.lt.s32.totalorder %s6026_s18, 3 }
   0x4   : > { %p188_p2 = pnand %p4320_p0, %p187_p1 }
   0x6   : > { %191 = sbr.rel (%p188_p2) target bundleno = 1145 (0x479), region = 40 }
   0xd   : > { %vm476_vm0 = vcmask 1043456   ;;  %v6070_v0 = vld [vmem:[%s8382_s1 + $0xc] sm:$0xf]  ;;  %p215_p3 = scmp.lt.s32.totalorder %s4316_s19, 1  ;;  %v4323_v1 = vld [vmem:[%s8382_s1 + $0x4] sm:$0xf] }
   0xe   : > { %5179 = vmatprep.subr.msk.mxu0 %vm476_vm0, %v6070_v0  ;;  %v4458_v2 = vld [vmem:[%s8382_s1 + $0x10] sm:$0xf]  ;;  %5029 = vmatprep.subr.msk.mxu1 %vm476_vm0, %v4323_v1  ;;  %v279_v3 = vld [vmem:[%s8382_s1] sm:$0xf]  ;;  %vm411_vm1 = vcmask 31744   ;;  %vm328_vm2 = vcmask 1046528  }
   0xf   : > { %5180 = vmatpush3.msk.msra.mxu0 %vm476_vm0, %v6070_v0  ;;  %s8560_s19 = smov (!%p215_p3, %s4316_s19), 1  ;;  %5030 = vmatpush3.msk.msra.mxu1 %vm476_vm0, %v4323_v1  ;;  %v6119_v11 = vld [vmem:[%s8382_s1 + $0x14] sm:$0xf]  ;;  %v6235_v51 = vld [vmem:[%s8382_s1 + $0x18] sm:$0xf]  ;;  %vm997_vm3 = vcmask 1045504  }
  0x10   : > { %5229 = vmatprep.subr.msk.mxu0 %vm476_vm0, %v4458_v2  ;;  %s5881_s28 = smul.u32 432, %s8560_s19  ;;  %5079 = vmatprep.subr.msk.mxu1 %vm476_vm0, %v279_v3  ;;  %v6258_v58 = vld [vmem:[%s8382_s1 + $0x8] sm:$0xf] }
  0x11   : > { %s5882_s10 = smul.u32 56, %s8560_s19 }
  0x12   : > { %s6095_s6 = scalar_lea.vmem %s8381_s0, %s5881_s28 }
  0x13   : > { %v6098_v4 = vld [vmem:[%s6095_s6 + $0x18] sm:$0xff]  ;;  %v6101_v5 = vld [vmem:[%s6095_s6 + $0x20] sm:$0xff]  ;;  %v6111_v9 = vld [vmem:[%s6095_s6 + $0x8] sm:$0xff]  ;;  %s224_s13 = scalar_lea.vmem %s8386_s5, %s5882_s10 }
  0x14   : > { %v6104_v6 = vld [vmem:[%s6095_s6] sm:$0xff]  ;;  %v334_v7 = vrot.slane %v6098_v4, 1  ;;  %5181 = vmatprep.mubr.msk.f32.mxu0 %vm411_vm1, %v6098_v4  ;;  %v335_v8 = vrot.slane %v6101_v5, 1  ;;  %v6114_v10 = vld [vmem:[%s6095_s6 + $0x30] sm:$0xff]  ;;  %v330_v13 = vrot.slane %v6111_v9, 1  ;;  %v6132_v16 = vld [vmem:[%s6095_s6 + $0x38] sm:$0xff] }
  0x15   : > { %5182 = vmatmul.mubr.msk.f32.vlgmr.msra.gmra.mrb[0].mxu0 %vm411_vm1, %v6101_v5  ;;  %v329_v12 = vrot.slane %v6104_v6, 1  ;;  %v6126_v14 = vld [vmem:[%s6095_s6 + $0x10] sm:$0x3]  ;;  %v6136_v18 = vld [vmem:[%s6095_s6 + $0x28] sm:$0x3]  ;;  %v339_v22 = vrot.slane %v6114_v10, 1 }
  0x16   : > { %8449 = vst [vmem:[#allocation2_spill] sm:$0xff] %v6126_v14  ;;  %v332_v15 = vrot.slane %v6126_v14, 1  ;;  %5184 = vmatprep.mubr.msk.f32.mxu0 %vm411_vm1, %v6114_v10  ;;  %v336_v17 = vsel %vm328_vm2, %v334_v7, %v335_v8  ;;  %5230 = vmatpush3.msk.msra.mxu0 %vm476_vm0, %v4458_v2  ;;  %v337_v20 = vrot.slane %v6136_v18, 1  ;;  %v6142_v21 = vld [vmem:[%s6095_s6 + $0x48] sm:$0xff]  ;;  %v340_v23 = vrot.slane %v6132_v16, 1  ;;  %v6161_v27 = vld [vmem:[%s6095_s6 + $0x50] sm:$0xff] }
  0x17   : > { %v331_v19 = vsel %vm328_vm2, %v329_v12, %v330_v13  ;;  %v6147_v24 = vld [vmem:[%s6095_s6 + $0x40] sm:$0x3]  ;;  %5279 = vmatprep.subr.msk.mxu0 %vm476_vm0, %v6119_v11  ;;  %v344_v31 = vrot.slane %v6142_v21, 1  ;;  %v345_v32 = vrot.slane %v6161_v27, 1  ;;  %v6173_v33 = vld [vmem:[%s6095_s6 + $0x58] sm:$0x3] }
  0x18   : > { %5031 = vmatprep.mubr.msk.f32.mxu1 %vm411_vm1, %v331_v19  ;;  %v333_v25 = vsel %vm328_vm2, %v330_v13, %v332_v15  ;;  %v338_v26 = vsel %vm328_vm2, %v335_v8, %v337_v20  ;;  %v342_v28 = vrot.slane %v6147_v24, 1  ;;  %v6165_v29 = vsel %vm328_vm2, %v339_v22, %v340_v23  ;;  %v6168_v30 = vld [vmem:[%s6095_s6 + $0x60] sm:$0xff]  ;;  %v6187_v35 = vld [vmem:[%s6095_s6 + $0x68] sm:$0xff]  ;;  %v6196_v40 = vld [vmem:[%s6095_s6 + $0x70] sm:$0x3] }
  0x19   : > { %5032 = vmatmul.mubr.msk.f32.vlgmr.msra.gmra.mrb[0].mxu1 %vm411_vm1, %v333_v25  ;;  %5185 = vmatmul.mubr.msk.f32.gmra.mrb[2].mxu0 %vm411_vm1, %v6132_v16  ;;  %8450 = vst [vmem:[#allocation3_spill] sm:$0xff] %v6165_v29  ;;  %v347_v36 = vrot.slane %v6173_v33, 1  ;;  %v6191_v37 = vsel %vm328_vm2, %v344_v31, %v345_v32  ;;  %v349_v38 = vrot.slane %v6168_v30, 1  ;;  %v350_v39 = vrot.slane %v6187_v35, 1  ;;  %v6199_v41 = vld [vmem:[%s6095_s6 + $0x78] sm:$0xff]  ;;  %v6202_v42 = vld [vmem:[%s6095_s6 + $0x80] sm:$0xff] }
  0x1a   : > { %5034 = vmatprep.mubr.msk.f32.mxu1 %vm411_vm1, %v336_v17  ;;  %5187 = vmatprep.mubr.msk.f32.mxu0 %vm411_vm1, %v6142_v21  ;;  %v6182_v34 = vsel %vm328_vm2, %v340_v23, %v342_v28  ;;  %8452 = vst [vmem:[#allocation5_spill] sm:$0xff] %v6191_v37  ;;  %v352_v44 = vrot.slane %v6196_v40, 1  ;;  %v354_v46 = vrot.slane %v6199_v41, 1  ;;  %v355_v47 = vrot.slane %v6202_v42, 1  ;;  %v6221_v48 = vld [vmem:[%s6095_s6 + $0x88] sm:$0x3] }
  0x1b   : > { %5080 = vmatpush3.msk.msra.mxu1 %vm476_vm0, %v279_v3  ;;  %8451 = vst [vmem:[#allocation4_spill] sm:$0xff] %v6182_v34  ;;  %v6211_v43 = vsel %vm328_vm2, %v345_v32, %v347_v36  ;;  %v6216_v45 = vsel %vm328_vm2, %v349_v38, %v350_v39  ;;  %v6224_v49 = vld [vmem:[%s6095_s6 + $0x90] sm:$0xff]  ;;  %v6227_v50 = vld [vmem:[%s6095_s6 + $0x98] sm:$0xff]  ;;  %v357_v53 = vrot.slane %v6221_v48, 1  ;;  %v6251_v57 = vld [vmem:[%s6095_s6 + $0xa0] sm:$0x3] }
  0x1c   : > { %8453 = vst [vmem:[#allocation6_spill] sm:$0xff] %v6211_v43  ;;  %8454 = vst [vmem:[#allocation7_spill] sm:$0xff] %v6216_v45  ;;  %v6240_v52 = vsel %vm328_vm2, %v350_v39, %v352_v44  ;;  %v6246_v54 = vsel %vm328_vm2, %v354_v46, %v355_v47  ;;  %v359_v55 = vrot.slane %v6224_v49, 1  ;;  %v360_v56 = vrot.slane %v6227_v50, 1  ;;  %v6261_v59 = vld [vmem:[%s6095_s6 + $0xa8] sm:$0xff]  ;;  %v6264_v60 = vld [vmem:[%s6095_s6 + $0xb0] sm:$0xff]  ;;  %5129 = vmatprep.subr.msk.mxu1 %vm476_vm0, %v6258_v58 }
  0x1d   : > { %5035 = vmatmul.mubr.msk.f32.gmra.mrb[2].mxu1 %vm411_vm1, %v338_v26  ;;  %5188 = vmatmul.mubr.msk.f32.gmra.mrb[4].mxu0 %vm411_vm1, %v6161_v27  ;;  %8455 = vst [vmem:[#allocation8_spill] sm:$0xff] %v6240_v52  ;;  %8456 = vst [vmem:[#allocation9_spill] sm:$0xff] %v6246_v54  ;;  %v6277_v61 = vsel %vm328_vm2, %v355_v47, %v357_v53  ;;  %v362_v62 = vrot.slane %v6251_v57, 1  ;;  %v364_v1 = vrot.slane %v6261_v59, 1  ;;  %v365_v2 = vrot.slane %v6264_v60, 1  ;;  %v6291_v7 = vld [vmem:[%s6095_s6 + $0xc0] sm:$0xff] }
  0x1e   : > { %5037 = vmatprep.mubr.msk.f32.mxu1 %vm411_vm1, %v6165_v29  ;;  %5190 = vmatprep.mubr.msk.f32.mxu0 %vm411_vm1, %v6168_v30  ;;  %8457 = vst [vmem:[#allocation10_spill] sm:$0xff] %v6277_v61  ;;  %v6283_v63 = vsel %vm328_vm2, %v359_v55, %v360_v56  ;;  %v6288_v3 = vld [vmem:[%s6095_s6 + $0xb8] sm:$0x3]  ;;  %v6294_v8 = vld [vmem:[%s6095_s6 + $0xc8] sm:$0xff]  ;;  %v369_v15 = vrot.slane %v6291_v7, 1  ;;  %v6320_v22 = vld [vmem:[%s6095_s6 + $0xe0] sm:$0xff] }
  0x1f   : > { %8458 = vst [vmem:[#allocation11_spill] sm:$0xff] %v6283_v63  ;;  %8459 = vst [vmem:[#allocation12_spill] sm:$0xff] %v6294_v8  ;;  %v367_v12 = vrot.slane %v6288_v3, 1  ;;  %v6309_v13 = vsel %vm328_vm2, %v364_v1, %v365_v2  ;;  %v6314_v19 = vld [vmem:[%s6095_s6 + $0xd0] sm:$0x3]  ;;  %v6317_v20 = vld [vmem:[%s6095_s6 + $0xd8] sm:$0xff] }
  0x20   : > { %8461 = vst [vmem:[#allocation14_spill] sm:$0xff] %v6309_v13  ;;  %8462 = vst [vmem:[#allocation15_spill] sm:$0xff] %v6320_v22  ;;  %v372_v25 = vrot.slane %v6314_v19, 1  ;;  %v374_v28 = vrot.slane %v6317_v20, 1  ;;  %v375_v31 = vrot.slane %v6320_v22, 1  ;;  %v6343_v36 = vld [vmem:[%s6095_s6 + $0xf0] sm:$0xff] }
  0x21   : > { %5038 = vmatmul.mubr.msk.f32.gmra.mrb[4].mxu1 %vm411_vm1, %v6182_v34  ;;  %5191 = vmatmul.mubr.msk.f32.gmra.mrb[6].mxu0 %vm411_vm1, %v6187_v35  ;;  %v6329_v23 = vsel %vm328_vm2, %v365_v2, %v367_v12  ;;  %v6340_v32 = vld [vmem:[%s6095_s6 + $0xe8] sm:$0x3]  ;;  %v6346_v38 = vld [vmem:[%s6095_s6 + $0xf8] sm:$0xff]  ;;  %v379_v47 = vrot.slane %v6343_v36, 1  ;;  %v6366_v55 = vld [vmem:[%s6095_s6 + $0x100] sm:$0x3] }
  0x22   : > { %5040 = vmatprep.mubr.msk.f32.mxu1 %vm411_vm1, %v6191_v37  ;;  %5231 = vmatprep.mubr.msk.f32.mxu0 %vm411_vm1, %v336_v17  ;;  %v370_v17 = vrot.slane %v6294_v8, 1  ;;  %8463 = vst [vmem:[#allocation16_spill] sm:$0xff] %v6329_v23  ;;  %8465 = vst [vmem:[#allocation18_spill] sm:$0xff] %v6346_v38  ;;  %v377_v44 = vrot.slane %v6340_v32, 1  ;;  %v6361_v46 = vsel %vm328_vm2, %v374_v28, %v375_v31  ;;  %v380_v53 = vrot.slane %v6346_v38, 1  ;;  %v6395_v28 = vld [vmem:[%s6095_s6 + $0x120] sm:$0xff] }
  0x23   : > { %8467 = vst [vmem:[#allocation20_spill] sm:$0xff] %v6361_v46  ;;  %v382_v2 = vrot.slane %v6366_v55, 1  ;;  %8471 = vst [vmem:[#allocation24_spill] sm:$0xff] %v6395_v28  ;;  %v6496_v14 = vld [vmem:[%s6095_s6 + $0x178] sm:$0x3] }
  0x24   : > { %v6355_v39 = vsel %vm328_vm2, %v370_v17, %v372_v25  ;;  %v6381_v1 = vsel %vm328_vm2, %v375_v31, %v377_v44  ;;  %v6387_v12 = vsel %vm328_vm2, %v379_v47, %v380_v53  ;;  %v6392_v25 = vld [vmem:[%s6095_s6 + $0x118] sm:$0x3]  ;;  %v6398_v31 = vld [vmem:[%s6095_s6 + $0x128] sm:$0xff] }
  0x25   : > { %5041 = vmatmul.mubr.msk.f32.gmra.mrb[6].mxu1 %vm411_vm1, %v6211_v43  ;;  %5232 = vmatmul.mubr.msk.f32.vlgmr.msra.gmra.mrb[0].mxu0 %vm411_vm1, %v338_v26  ;;  %v6335_v26 = vsel %vm328_vm2, %v369_v15, %v370_v17  ;;  %8466 = vst [vmem:[#allocation19_spill] sm:$0xff] %v6355_v39  ;;  %8469 = vst [vmem:[#allocation22_spill] sm:$0xff] %v6381_v1  ;;  %v6407_v44 = vsel %vm328_vm2, %v380_v53, %v382_v2  ;;  %v387_v47 = vrot.slane %v6392_v25, 1  ;;  %v6424_v53 = vld [vmem:[%s6095_s6 + $0x140] sm:$0xff] }
  0x26   : > { %5043 = vmatprep.mubr.msk.f32.mxu1 %vm411_vm1, %v6216_v45  ;;  %5234 = vmatprep.mubr.msk.f32.mxu0 %vm411_vm1, %v6165_v29  ;;  %8464 = vst [vmem:[#allocation17_spill] sm:$0xff] %v6335_v26  ;;  %8470 = vst [vmem:[#allocation23_spill] sm:$0xff] %v6387_v12  ;;  %v6476_v29 = vld [vmem:[%s6095_s6 + $0x170] sm:$0xff] }
  0x27   : > { %5280 = vmatpush3.msk.msra.mxu0 %vm476_vm0, %v6119_v11  ;;  %v6303_v11 = vsel %vm328_vm2, %v360_v56, %v362_v62  ;;  %v6369_v56 = vld [vmem:[%s6095_s6 + $0x108] sm:$0xff]  ;;  %v6372_v62 = vld [vmem:[%s6095_s6 + $0x110] sm:$0xff]  ;;  %8472 = vst [vmem:[#allocation25_spill] sm:$0xff] %v6398_v31  ;;  %8473 = vst [vmem:[#allocation26_spill] sm:$0xff] %v6407_v44 }
  0x28   : > { %5329 = vmatprep.subr.msk.mxu0 %vm476_vm0, %v6235_v51  ;;  %8460 = vst [vmem:[#allocation13_spill] sm:$0xff] %v6303_v11  ;;  %8468 = vst [vmem:[#allocation21_spill] sm:$0xff] %v6372_v62  ;;  %v384_v15 = vrot.slane %v6369_v56, 1  ;;  %v385_v17 = vrot.slane %v6372_v62, 1 }
  0x29   : > { %5044 = vmatmul.mubr.msk.f32.gmra.mrb[8].mxu1 %vm411_vm1, %v6240_v52  ;;  %5235 = vmatmul.mubr.msk.f32.gmra.mrb[2].mxu0 %vm411_vm1, %v6182_v34  ;;  %8476 = vst [vmem:[#allocation29_spill] sm:$0xff] %v6424_v53  ;;  %v6473_v34 = vld [vmem:[%s6095_s6 + $0x168] sm:$0xff]  ;;  %8482 = vst [vmem:[#allocation35_spill] sm:$0xff] %v6476_v29 }
  0x2a   : > { %5046 = vmatprep.mubr.msk.f32.mxu1 %vm411_vm1, %v6246_v54  ;;  %5237 = vmatprep.mubr.msk.f32.mxu0 %vm411_vm1, %v6191_v37  ;;  %v6433_v2 = vsel %vm328_vm2, %v385_v17, %v387_v47 }
  0x2b   : > { %8477 = vst [vmem:[#allocation30_spill] sm:$0xff] %v6433_v2 }
  0x2d   : > { %5047 = vmatmul.mubr.msk.f32.gmra.mrb[10].mxu1 %vm411_vm1, %v6277_v61  ;;  %5238 = vmatmul.mubr.msk.f32.gmra.mrb[4].mxu0 %vm411_vm1, %v6211_v43 }
  0x2e   : > { %5049 = vmatprep.mubr.msk.f32.mxu1 %vm411_vm1, %v6283_v63  ;;  %5240 = vmatprep.mubr.msk.f32.mxu0 %vm411_vm1, %v6216_v45  ;;  %v6447_v45 = vld [vmem:[%s6095_s6 + $0x150] sm:$0xff] }
  0x2f   : > { %v399_v43 = vrot.slane %v6447_v45, 1 }
  0x31   : > { %5050 = vmatmul.mubr.msk.f32.gmra.mrb[12].mxu1 %vm411_vm1, %v6303_v11  ;;  %5241 = vmatmul.mubr.msk.f32.gmra.mrb[6].mxu0 %vm411_vm1, %v6240_v52  ;;  %v6444_v52 = vld [vmem:[%s6095_s6 + $0x148] sm:$0x3] }
  0x32   : > { %5052 = vmatprep.mubr.msk.f32.mxu1 %vm411_vm1, %v6309_v13  ;;  %5243 = vmatprep.mubr.msk.f32.mxu0 %vm411_vm1, %v6246_v54  ;;  %v397_v47 = vrot.slane %v6444_v52, 1 }
  0x35   : > { %5053 = vmatmul.mubr.msk.f32.gmra.mrb[14].mxu1 %vm411_vm1, %v6329_v23  ;;  %5244 = vmatmul.mubr.msk.f32.gmra.mrb[8].mxu0 %vm411_vm1, %v6277_v61  ;;  %v6421_v61 = vld [vmem:[%s6095_s6 + $0x138] sm:$0xff] }
  0x36   : > { %5055 = vmatprep.mubr.msk.f32.mxu1 %vm411_vm1, %v6335_v26  ;;  %5246 = vmatprep.mubr.msk.f32.mxu0 %vm411_vm1, %v6283_v63  ;;  %v6418_v63 = vld [vmem:[%s6095_s6 + $0x130] sm:$0x3]  ;;  %8475 = vst [vmem:[#allocation28_spill] sm:$0xff] %v6421_v61  ;;  %v394_v54 = vrot.slane %v6421_v61, 1 }
  0x39   : > { %5056 = vmatmul.mubr.msk.f32.gmra.mrb[16].mxu1 %vm411_vm1, %v6355_v39  ;;  %5247 = vmatmul.mubr.msk.f32.gmra.mrb[10].mxu0 %vm411_vm1, %v6303_v11  ;;  %v389_v11 = vrot.slane %v6395_v28, 1 }
  0x3a   : > { %5058 = vmatprep.mubr.msk.f32.mxu1 %vm411_vm1, %v6361_v46  ;;  %5249 = vmatprep.mubr.msk.f32.mxu0 %vm411_vm1, %v6309_v13  ;;  %v6413_v13 = vsel %vm328_vm2, %v384_v15, %v385_v17  ;;  %v392_v15 = vrot.slane %v6418_v63, 1  ;;  %v6450_v17 = vld [vmem:[%s6095_s6 + $0x158] sm:$0xff] }
  0x3b   : > { %8474 = vst [vmem:[#allocation27_spill] sm:$0xff] %v6413_v13  ;;  %8479 = vst [vmem:[#allocation32_spill] sm:$0xff] %v6450_v17  ;;  %v400_v37 = vrot.slane %v6450_v17, 1 }
  0x3d   : > { %5059 = vmatmul.mubr.msk.f32.gmra.mrb[18].mxu1 %vm411_vm1, %v6381_v1  ;;  %5250 = vmatmul.mubr.msk.f32.gmra.mrb[12].mxu0 %vm411_vm1, %v6329_v23  ;;  %v390_v23 = vrot.slane %v6398_v31, 1 }
  0x3e   : > { %5061 = vmatprep.mubr.msk.f32.mxu1 %vm411_vm1, %v6387_v12  ;;  %5252 = vmatprep.mubr.msk.f32.mxu0 %vm411_vm1, %v6335_v26 }
  0x3f   : > { %v6439_v26 = vsel %vm328_vm2, %v389_v11, %v390_v23  ;;  %v6459_v11 = vsel %vm328_vm2, %v390_v23, %v392_v15  ;;  %v6491_v15 = vsel %vm328_vm2, %v399_v43, %v400_v37 }
  0x40   : > { %8478 = vst [vmem:[#allocation31_spill] sm:$0xff] %v6439_v26  ;;  %8480 = vst [vmem:[#allocation33_spill] sm:$0xff] %v6459_v11 }
  0x41   : > { %5062 = vmatmul.mubr.msk.f32.gmra.mrb[20].mxu1 %vm411_vm1, %v6407_v44  ;;  %5253 = vmatmul.mubr.msk.f32.gmra.mrb[14].mxu0 %vm411_vm1, %v6355_v39  ;;  %v395_v39 = vrot.slane %v6424_v53, 1  ;;  %8484 = vst [vmem:[#allocation37_spill] sm:$0xff] %v6491_v15 }
  0x42   : > { %5064 = vmatprep.mubr.msk.f32.mxu1 %vm411_vm1, %v6413_v13  ;;  %5255 = vmatprep.mubr.msk.f32.mxu0 %vm411_vm1, %v6361_v46 }
  0x43   : > { %v6465_v46 = vsel %vm328_vm2, %v394_v54, %v395_v39  ;;  %v6485_v54 = vsel %vm328_vm2, %v395_v39, %v397_v47  ;;  %v407_v39 = vrot.slane %v6496_v14, 1 }
  0x44   : > { %8481 = vst [vmem:[#allocation34_spill] sm:$0xff] %v6465_v46  ;;  %8483 = vst [vmem:[#allocation36_spill] sm:$0xff] %v6485_v54 }
  0x45   : > { %5065 = vmatmul.mubr.msk.f32.gmra.mrb[22].mxu1 %vm411_vm1, %v6433_v2  ;;  %5256 = vmatmul.mubr.msk.f32.gmra.mrb[16].mxu0 %vm411_vm1, %v6381_v1  ;;  %v6470_v1 = vld [vmem:[%s6095_s6 + $0x160] sm:$0x3] }
  0x46   : > { %5067 = vmatprep.mubr.msk.f32.mxu1 %vm411_vm1, %v6439_v26  ;;  %5258 = vmatprep.mubr.msk.f32.mxu0 %vm411_vm1, %v6387_v12  ;;  %v402_v23 = vrot.slane %v6470_v1, 1  ;;  %v404_v12 = vrot.slane %v6473_v34, 1 }
  0x48   : > { %v6505_v43 = vsel %vm328_vm2, %v400_v37, %v402_v23  ;;  %v6525_v23 = vld [vmem:[%s6095_s6 + $0x180] sm:$0xff] }
  0x49   : > { %5068 = vmatmul.mubr.msk.f32.gmra.mrb[24].mxu1 %vm411_vm1, %v6459_v11  ;;  %5259 = vmatmul.mubr.msk.f32.gmra.mrb[18].mxu0 %vm411_vm1, %v6407_v44  ;;  %v405_v44 = vrot.slane %v6476_v29, 1  ;;  %8485 = vst [vmem:[#allocation38_spill] sm:$0xff] %v6505_v43 }
  0x4a   : > { %5070 = vmatprep.mubr.msk.f32.mxu1 %vm411_vm1, %v6465_v46  ;;  %5261 = vmatprep.mubr.msk.f32.mxu0 %vm411_vm1, %v6413_v13  ;;  %v1039_v13 = vrot.slane %v6294_v8, 2 }
  0x4b   : > { %v6511_v47 = vsel %vm328_vm2, %v404_v12, %v405_v44  ;;  %v6520_v37 = vsel %vm328_vm2, %v405_v44, %v407_v39  ;;  %v1673_v12 = vrot.slane %v6525_v23, 1  ;;  %v6541_v39 = vld [vmem:[%s6095_s6 + $0x190] sm:$0x3] }
  0x4c   : > { %8486 = vst [vmem:[#allocation39_spill] sm:$0xff] %v6511_v47  ;;  %8487 = vst [vmem:[#allocation40_spill] sm:$0xff] %v6520_v37 }
  0x4d   : > { %5071 = vmatmul.mubr.msk.f32.gmra.mrb[26].mxu1 %vm411_vm1, %v6485_v54  ;;  %5262 = vmatmul.mubr.msk.f32.gmra.mrb[20].mxu0 %vm411_vm1, %v6433_v2  ;;  %v1034_v2 = vrot.slane %v6264_v60, 2 }
  0x4e   : > { %5073 = vmatprep.mubr.msk.f32.mxu1 %vm411_vm1, %v6491_v15  ;;  %5264 = vmatprep.mubr.msk.f32.mxu0 %vm411_vm1, %v6439_v26  ;;  %v6528_v26 = vld [vmem:[%s6095_s6 + $0x188] sm:$0xff] }
  0x4f   : > { %v1674_v44 = vrot.slane %v6528_v26, 1 }
  0x51   : > { %5074 = vmatmul.mubr.msk.f32.gmra.mrb[28].mxu1 %vm411_vm1, %v6505_v43  ;;  %5265 = vmatmul.mubr.msk.f32.gmra.mrb[22].mxu0 %vm411_vm1, %v6459_v11  ;;  %v6555_v11 = vsel %vm328_vm2, %v1673_v12, %v1674_v44 }
  0x52   : > { %5076 = vmatprep.mubr.msk.f32.mxu1 %vm411_vm1, %v6511_v47  ;;  %5267 = vmatprep.mubr.msk.f32.mxu0 %vm411_vm1, %v6465_v46  ;;  %v1004_v46 = vrot.slane %v6101_v5, 2  ;;  %8488 = vst [vmem:[#allocation41_spill] sm:$0xff] %v6555_v11 }
  0x55   : > { %5077 = vmatmul.mubr.msk.f32.gmra.mrb[30].mxu1 %vm411_vm1, %v6520_v37  ;;  %5268 = vmatmul.mubr.msk.f32.gmra.mrb[24].mxu0 %vm411_vm1, %v6485_v54  ;;  %v1003_v54 = vrot.slane %v6098_v4, 2 }
  0x56   : > { %5081 = vmatprep.mubr.msk.f32.mxu1 %vm411_vm1, %v6104_v6  ;;  %5270 = vmatprep.mubr.msk.f32.mxu0 %vm411_vm1, %v6491_v15  ;;  %v1676_v15 = vrot.slane %v6541_v39, 1 }
  0x57   : > { %v6574_v12 = vsel %vm997_vm3, %v1003_v54, %v1004_v46  ;;  %v1011_v54 = vrot.slane %v6147_v24, 2 }
  0x59   : > { %5082 = vmatmul.mubr.msk.f32.vlgmr.msra.gmra.mrb[0].mxu1 %vm411_vm1, %v6111_v9  ;;  %5271 = vmatmul.mubr.msk.f32.gmra.mrb[26].mxu0 %vm411_vm1, %v6505_v43  ;;  %v1029_v43 = vrot.slane %v6227_v50, 2 }
  0x5a   : > { %5084 = vmatprep.mubr.msk.f32.mxu1 %vm411_vm1, %v6098_v4  ;;  %5273 = vmatprep.mubr.msk.f32.mxu0 %vm411_vm1, %v6511_v47  ;;  %v1006_v4 = vrot.slane %v6136_v18, 2  ;;  %v1008_v47 = vrot.slane %v6114_v10, 2 }
  0x5b   : > { %5130 = vmatpush3.msk.msra.mxu1 %vm476_vm0, %v6258_v58  ;;  %v6571_v58 = vsel %vm328_vm2, %v1674_v44, %v1676_v15  ;;  %v1013_v44 = vrot.slane %v6142_v21, 2 }
  0x5c   : > { %5623 = vmatprep.subr.msk.mxu1 %vm476_vm0, %v6070_v0  ;;  %8489 = vst [vmem:[#allocation42_spill] sm:$0xff] %v6571_v58  ;;  %v6587_v18 = vsel %vm997_vm3, %v1004_v46, %v1006_v4  ;;  %v6602_v46 = vld [vmem:[%s8382_s1 + $0x1c] sm:$0xf] }
  0x5d   : > { %5085 = vmatmul.mubr.msk.f32.gmra.mrb[2].mxu1 %vm411_vm1, %v6101_v5  ;;  %5274 = vmatmul.mubr.msk.f32.gmra.mrb[28].mxu0 %vm411_vm1, %v6520_v37  ;;  %v1009_v5 = vrot.slane %v6132_v16, 2  ;;  %v1019_v37 = vrot.slane %v6187_v35, 2 }
  0x5e   : > { %5087 = vmatprep.mubr.msk.f32.mxu1 %vm411_vm1, %v6114_v10  ;;  %5276 = vmatprep.mubr.msk.f32.mxu0 %vm411_vm1, %v6555_v11  ;;  %v1014_v11 = vrot.slane %v6161_v27, 2 }
  0x5f   : > { %v6591_v15 = vsel %vm997_vm3, %v1008_v47, %v1009_v5  ;;  %v6609_v24 = vsel %vm997_vm3, %v1009_v5, %v1011_v54  ;;  %v1016_v47 = vrot.slane %v6173_v33, 2  ;;  %v1023_v54 = vrot.slane %v6199_v41, 2 }
  0x60   : > { %v6613_v4 = vsel %vm997_vm3, %v1013_v44, %v1014_v11  ;;  %v1024_v44 = vrot.slane %v6202_v42, 2 }
  0x61   : > { %5088 = vmatmul.mubr.msk.f32.gmra.mrb[4].mxu1 %vm411_vm1, %v6132_v16  ;;  %5277 = vmatmul.mubr.msk.f32.gmra.mrb[30].mxu0 %vm411_vm1, %v6571_v58  ;;  %v1018_v58 = vrot.slane %v6168_v30, 2  ;;  %v6630_v33 = vsel %vm997_vm3, %v1014_v11, %v1016_v47  ;;  %v1026_v11 = vrot.slane %v6221_v48, 2  ;;  %v1028_v47 = vrot.slane %v6224_v49, 2 }
  0x62   : > { %5090 = vmatprep.mubr.msk.f32.mxu1 %vm411_vm1, %v6142_v21  ;;  %5281 = vmatprep.mubr.msk.f32.mxu0 %vm411_vm1, %v6574_v12 }
  0x63   : > { %v6634_v5 = vsel %vm997_vm3, %v1018_v58, %v1019_v37  ;;  %v6651_v58 = vsel %vm997_vm3, %v1023_v54, %v1024_v44  ;;  %v6664_v48 = vsel %vm997_vm3, %v1024_v44, %v1026_v11  ;;  %v1033_v54 = vrot.slane %v6261_v59, 2 }
  0x64   : > { %v1036_v44 = vrot.slane %v6288_v3, 2 }
  0x65   : > { %5091 = vmatmul.mubr.msk.f32.gmra.mrb[6].mxu1 %vm411_vm1, %v6161_v27  ;;  %5282 = vmatmul.mubr.msk.f32.vlgmr.msra.gmra.mrb[0].mxu0 %vm411_vm1, %v6587_v18  ;;  %v6685_v11 = vsel %vm997_vm3, %v1033_v54, %v1034_v2  ;;  %v1043_v54 = vrot.slane %v6317_v20, 2 }
  0x66   : > { %5093 = vmatprep.mubr.msk.f32.mxu1 %vm411_vm1, %v6168_v30  ;;  %5284 = vmatprep.mubr.msk.f32.mxu0 %vm411_vm1, %v6591_v15  ;;  %v6698_v3 = vsel %vm997_vm3, %v1034_v2, %v1036_v44  ;;  %v1046_v2 = vrot.slane %v6340_v32, 2  ;;  %v1051_v32 = vrot.slane %v6366_v55, 2  ;;  %v1056_v55 = vrot.slane %v6392_v25, 2 }
  0x67   : > { %5330 = vmatpush3.msk.msra.mxu0 %vm476_vm0, %v6235_v51  ;;  %v1021_v51 = vrot.slane %v6196_v40, 2  ;;  %v1061_v25 = vrot.slane %v6418_v63, 2 }
  0x68   : > { %5379 = vmatprep.subr.msk.mxu0 %vm476_vm0, %v6602_v46 }
  0x69   : > { %5094 = vmatmul.mubr.msk.f32.gmra.mrb[8].mxu1 %vm411_vm1, %v6187_v35  ;;  %5285 = vmatmul.mubr.msk.f32.gmra.mrb[2].mxu0 %vm411_vm1, %v6609_v24  ;;  %v6647_v40 = vsel %vm997_vm3, %v1019_v37, %v1021_v51  ;;  %v1031_v37 = vrot.slane %v6251_v57, 2  ;;  %v6668_v51 = vsel %vm997_vm3, %v1028_v47, %v1029_v43  ;;  %v1038_v47 = vrot.slane %v6291_v7, 2 }
  0x6a   : > { %5096 = vmatprep.mubr.msk.f32.mxu1 %vm411_vm1, %v6199_v41  ;;  %5287 = vmatprep.mubr.msk.f32.mxu0 %vm411_vm1, %v6613_v4 }
  0x6b   : > { %v6681_v57 = vsel %vm997_vm3, %v1029_v43, %v1031_v37  ;;  %v1041_v43 = vrot.slane %v6314_v19, 2  ;;  %v6702_v37 = vsel %vm997_vm3, %v1038_v47, %v1039_v13  ;;  %v1048_v47 = vrot.slane %v6343_v36, 2 }
  0x6d   : > { %5097 = vmatmul.mubr.msk.f32.gmra.mrb[10].mxu1 %vm411_vm1, %v6202_v42  ;;  %5288 = vmatmul.mubr.msk.f32.gmra.mrb[4].mxu0 %vm411_vm1, %v6630_v33  ;;  %v6715_v19 = vsel %vm997_vm3, %v1039_v13, %v1041_v43 }
  0x6e   : > { %5099 = vmatprep.mubr.msk.f32.mxu1 %vm411_vm1, %v6224_v49  ;;  %5290 = vmatprep.mubr.msk.f32.mxu0 %vm411_vm1, %v6634_v5 }
  0x71   : > { %5100 = vmatmul.mubr.msk.f32.gmra.mrb[12].mxu1 %vm411_vm1, %v6227_v50  ;;  %5291 = vmatmul.mubr.msk.f32.gmra.mrb[6].mxu0 %vm411_vm1, %v6647_v40 }
  0x72   : > { %5102 = vmatprep.mubr.msk.f32.mxu1 %vm411_vm1, %v6261_v59  ;;  %5293 = vmatprep.mubr.msk.f32.mxu0 %vm411_vm1, %v6651_v58 }
  0x75   : > { %5103 = vmatmul.mubr.msk.f32.gmra.mrb[14].mxu1 %vm411_vm1, %v6264_v60  ;;  %5294 = vmatmul.mubr.msk.f32.gmra.mrb[8].mxu0 %vm411_vm1, %v6664_v48 }
  0x76   : > { %5105 = vmatprep.mubr.msk.f32.mxu1 %vm411_vm1, %v6291_v7  ;;  %5296 = vmatprep.mubr.msk.f32.mxu0 %vm411_vm1, %v6668_v51 }
  0x79   : > { %5106 = vmatmul.mubr.msk.f32.gmra.mrb[16].mxu1 %vm411_vm1, %v6294_v8  ;;  %5297 = vmatmul.mubr.msk.f32.gmra.mrb[10].mxu0 %vm411_vm1, %v6681_v57  ;;  %v1044_v8 = vrot.slane %v6320_v22, 2 }
  0x7a   : > { %5108 = vmatprep.mubr.msk.f32.mxu1 %vm411_vm1, %v6317_v20  ;;  %5299 = vmatprep.mubr.msk.f32.mxu0 %vm411_vm1, %v6685_v11 }
  0x7b   : > { %v6719_v44 = vsel %vm997_vm3, %v1043_v54, %v1044_v8  ;;  %v6732_v13 = vsel %vm997_vm3, %v1044_v8, %v1046_v2  ;;  %v1053_v54 = vrot.slane %v6369_v56, 2 }
  0x7d   : > { %5109 = vmatmul.mubr.msk.f32.gmra.mrb[18].mxu1 %vm411_vm1, %v6320_v22  ;;  %5300 = vmatmul.mubr.msk.f32.gmra.mrb[12].mxu0 %vm411_vm1, %v6698_v3  ;;  %v1049_v22 = vrot.slane %v6346_v38, 2 }
  0x7e   : > { %5111 = vmatprep.mubr.msk.f32.mxu1 %vm411_vm1, %v6343_v36  ;;  %5302 = vmatprep.mubr.msk.f32.mxu0 %vm411_vm1, %v6702_v37 }
  0x7f   : > { %v6736_v43 = vsel %vm997_vm3, %v1048_v47, %v1049_v22  ;;  %v6749_v8 = vsel %vm997_vm3, %v1049_v22, %v1051_v32  ;;  %v1058_v47 = vrot.slane %v6395_v28, 2 }
  0x81   : > { %5112 = vmatmul.mubr.msk.f32.gmra.mrb[20].mxu1 %vm411_vm1, %v6346_v38  ;;  %5303 = vmatmul.mubr.msk.f32.gmra.mrb[14].mxu0 %vm411_vm1, %v6715_v19  ;;  %v1054_v38 = vrot.slane %v6372_v62, 2 }
  0x82   : > { %5114 = vmatprep.mubr.msk.f32.mxu1 %vm411_vm1, %v6369_v56  ;;  %5305 = vmatprep.mubr.msk.f32.mxu0 %vm411_vm1, %v6719_v44 }
  0x83   : > { %v6753_v2 = vsel %vm997_vm3, %v1053_v54, %v1054_v38  ;;  %v6766_v22 = vsel %vm997_vm3, %v1054_v38, %v1056_v55  ;;  %v1063_v54 = vrot.slane %v6421_v61, 2  ;;  %v1066_v38 = vrot.slane %v6444_v52, 2 }
  0x84   : > { %v998_v55 = vrot.slane %v6104_v6, 2 }
  0x85   : > { %5115 = vmatmul.mubr.msk.f32.gmra.mrb[22].mxu1 %vm411_vm1, %v6372_v62  ;;  %5306 = vmatmul.mubr.msk.f32.gmra.mrb[16].mxu0 %vm411_vm1, %v6732_v13  ;;  %v1059_v62 = vrot.slane %v6398_v31, 2 }
  0x86   : > { %5117 = vmatprep.mubr.msk.f32.mxu1 %vm411_vm1, %v6395_v28  ;;  %5308 = vmatprep.mubr.msk.f32.mxu0 %vm411_vm1, %v6736_v43  ;;  %v1069_v28 = vrot.slane %v6450_v17, 2 }
  0x87   : > { %v6770_v32 = vsel %vm997_vm3, %v1058_v47, %v1059_v62  ;;  %v6783_v63 = vsel %vm997_vm3, %v1059_v62, %v1061_v25  ;;  %v8490_v62 = vld [vmem:[#allocation2_spill] sm:$0xff] }
  0x88   : > { %v1001_v25 = vrot.slane %v8490_v62, 2  ;;  %v1074_v62 = vrot.slane %v6476_v29, 2 }
  0x89   : > { %5118 = vmatmul.mubr.msk.f32.gmra.mrb[24].mxu1 %vm411_vm1, %v6398_v31  ;;  %5309 = vmatmul.mubr.msk.f32.gmra.mrb[18].mxu0 %vm411_vm1, %v6749_v8  ;;  %v1064_v31 = vrot.slane %v6424_v53, 2 }
  0x8a   : > { %5120 = vmatprep.mubr.msk.f32.mxu1 %vm411_vm1, %v6421_v61  ;;  %5311 = vmatprep.mubr.msk.f32.mxu0 %vm411_vm1, %v6753_v2  ;;  %v1068_v61 = vrot.slane %v6447_v45, 2 }
  0x8b   : > { %v6788_v47 = vsel %vm997_vm3, %v1063_v54, %v1064_v31  ;;  %v6803_v6 = vsel %vm997_vm3, %v1064_v31, %v1066_v38 }
  0x8c   : > { %v6808_v54 = vsel %vm997_vm3, %v1068_v61, %v1069_v28 }
  0x8d   : > { %5121 = vmatmul.mubr.msk.f32.gmra.mrb[26].mxu1 %vm411_vm1, %v6424_v53  ;;  %5312 = vmatmul.mubr.msk.f32.gmra.mrb[20].mxu0 %vm411_vm1, %v6766_v22  ;;  %v999_v53 = vrot.slane %v6111_v9, 2  ;;  %v1071_v9 = vrot.slane %v6470_v1, 2  ;;  %v1076_v1 = vrot.slane %v6496_v14, 2 }
  0x8e   : > { %5123 = vmatprep.mubr.msk.f32.mxu1 %vm411_vm1, %v6447_v45  ;;  %5314 = vmatprep.mubr.msk.f32.mxu0 %vm411_vm1, %v6770_v32 }
  0x8f   : > { %v1000_v52 = vsel %vm997_vm3, %v998_v55, %v999_v53  ;;  %v1002_v31 = vsel %vm997_vm3, %v999_v53, %v1001_v25  ;;  %v6821_v61 = vsel %vm997_vm3, %v1069_v28, %v1071_v9  ;;  %v1944_v55 = vrot.slane %v6525_v23, 2  ;;  %v8508_v25 = vld [vmem:[#allocation10_spill] sm:$0xff]  ;;  %v8510_v9 = vld [vmem:[#allocation13_spill] sm:$0xff] }
  0x90   : > { %v6837_v14 = vsel %vm997_vm3, %v1074_v62, %v1076_v1  ;;  %v1947_v28 = vrot.slane %v6541_v39, 2  ;;  %v8498_v39 = vld [vmem:[#allocation29_spill] sm:$0xff]  ;;  %v8515_v1 = vld [vmem:[#allocation20_spill] sm:$0xff] }
  0x91   : > { %5124 = vmatmul.mubr.msk.f32.gmra.mrb[28].mxu1 %vm411_vm1, %v6450_v17  ;;  %5315 = vmatmul.mubr.msk.f32.gmra.mrb[22].mxu0 %vm411_vm1, %v6783_v63  ;;  %v1073_v17 = vrot.slane %v6473_v34, 2 }
  0x92   : > { %5126 = vmatprep.mubr.msk.f32.mxu1 %vm411_vm1, %v6473_v34  ;;  %5317 = vmatprep.mubr.msk.f32.mxu0 %vm411_vm1, %v6788_v47 }
  0x93   : > { %v6825_v38 = vsel %vm997_vm3, %v1073_v17, %v1074_v62  ;;  %v8513_v62 = vld [vmem:[#allocation17_spill] sm:$0xff] }
  0x95   : > { %5127 = vmatmul.mubr.msk.f32.gmra.mrb[30].mxu1 %vm411_vm1, %v6476_v29  ;;  %5318 = vmatmul.mubr.msk.f32.gmra.mrb[24].mxu0 %vm411_vm1, %v6803_v6  ;;  %v1945_v29 = vrot.slane %v6528_v26, 2 }
  0x96   : > { %5131 = vmatprep.mubr.msk.f32.mxu1 %vm411_vm1, %v1000_v52  ;;  %5320 = vmatprep.mubr.msk.f32.mxu0 %vm411_vm1, %v6808_v54  ;;  %v8512_v52 = vld [vmem:[#allocation16_spill] sm:$0xff] }
  0x97   : > { %v6841_v53 = vsel %vm997_vm3, %v1944_v55, %v1945_v29  ;;  %v6854_v17 = vsel %vm997_vm3, %v1945_v29, %v1947_v28  ;;  %v8495_v29 = vld [vmem:[#allocation24_spill] sm:$0xff]  ;;  %v8516_v55 = vld [vmem:[#allocation22_spill] sm:$0xff]  ;;  %v8519_v28 = vld [vmem:[#allocation27_spill] sm:$0xff] }
  0x99   : > { %5132 = vmatmul.mubr.msk.f32.vlgmr.msra.gmra.mrb[0].mxu1 %vm411_vm1, %v1002_v31  ;;  %5321 = vmatmul.mubr.msk.f32.gmra.mrb[26].mxu0 %vm411_vm1, %v6821_v61  ;;  %v8514_v31 = vld [vmem:[#allocation19_spill] sm:$0xff] }
  0x9a   : > { %5134 = vmatprep.mubr.msk.f32.mxu1 %vm411_vm1, %v6574_v12  ;;  %5323 = vmatprep.mubr.msk.f32.mxu0 %vm411_vm1, %v6825_v38  ;;  %v8499_v12 = vld [vmem:[#allocation32_spill] sm:$0xff] }
  0x9b   : > { %5624 = vmatpush3.msk.msra.mxu1 %vm476_vm0, %v6070_v0  ;;  %v6871_v0 = vld [vmem:[%s8382_s1 + $0x20] sm:$0xf] }
  0x9d   : > { %5135 = vmatmul.mubr.msk.f32.gmra.mrb[2].mxu1 %vm411_vm1, %v6587_v18  ;;  %5324 = vmatmul.mubr.msk.f32.gmra.mrb[28].mxu0 %vm411_vm1, %v6837_v14  ;;  %v8500_v18 = vld [vmem:[#allocation35_spill] sm:$0xff] }
  0x9e   : > { %5137 = vmatprep.mubr.msk.f32.mxu1 %vm411_vm1, %v6591_v15  ;;  %5326 = vmatprep.mubr.msk.f32.mxu0 %vm411_vm1, %v6841_v53 }
  0xa1   : > { %5138 = vmatmul.mubr.msk.f32.gmra.mrb[4].mxu1 %vm411_vm1, %v6609_v24  ;;  %5327 = vmatmul.mubr.msk.f32.gmra.mrb[30].mxu0 %vm411_vm1, %v6854_v17 }
  0xa2   : > { %5140 = vmatprep.mubr.msk.f32.mxu1 %vm411_vm1, %v6613_v4  ;;  %5331 = vmatprep.mubr.msk.f32.mxu0 %vm411_vm1, %v6114_v10  ;;  %v8491_v10 = vld [vmem:[#allocation12_spill] sm:$0xff] }
  0xa5   : > { %5141 = vmatmul.mubr.msk.f32.gmra.mrb[6].mxu1 %vm411_vm1, %v6630_v33  ;;  %5332 = vmatmul.mubr.msk.f32.vlgmr.msra.gmra.mrb[0].mxu0 %vm411_vm1, %v6132_v16  ;;  %v8492_v16 = vld [vmem:[#allocation15_spill] sm:$0xff] }
  0xa6   : > { %5143 = vmatprep.mubr.msk.f32.mxu1 %vm411_vm1, %v6634_v5  ;;  %5334 = vmatprep.mubr.msk.f32.mxu0 %vm411_vm1, %v6142_v21  ;;  %v8493_v21 = vld [vmem:[#allocation18_spill] sm:$0xff] }
  0xa7   : > { %5380 = vmatpush3.msk.msra.mxu0 %vm476_vm0, %v6602_v46  ;;  %v6986_v46 = vld [vmem:[%s6095_s6 + $0x198] sm:$0xff] }
  0xa8   : > { %5429 = vmatprep.subr.msk.mxu0 %vm476_vm0, %v6871_v0 }
  0xa9   : > { %5144 = vmatmul.mubr.msk.f32.gmra.mrb[8].mxu1 %vm411_vm1, %v6647_v40  ;;  %5335 = vmatmul.mubr.msk.f32.gmra.mrb[2].mxu0 %vm411_vm1, %v6161_v27  ;;  %v8494_v27 = vld [vmem:[#allocation21_spill] sm:$0xff] }
  0xaa   : > { %5146 = vmatprep.mubr.msk.f32.mxu1 %vm411_vm1, %v6651_v58  ;;  %5337 = vmatprep.mubr.msk.f32.mxu0 %vm411_vm1, %v6168_v30  ;;  %v8496_v30 = vld [vmem:[#allocation25_spill] sm:$0xff] }
  0xad   : > { %5147 = vmatmul.mubr.msk.f32.gmra.mrb[10].mxu1 %vm411_vm1, %v6664_v48  ;;  %5338 = vmatmul.mubr.msk.f32.gmra.mrb[4].mxu0 %vm411_vm1, %v6187_v35  ;;  %v8497_v35 = vld [vmem:[#allocation28_spill] sm:$0xff] }
  0xae   : > { %5149 = vmatprep.mubr.msk.f32.mxu1 %vm411_vm1, %v6668_v51  ;;  %5340 = vmatprep.mubr.msk.f32.mxu0 %vm411_vm1, %v6199_v41 }
  0xb1   : > { %5150 = vmatmul.mubr.msk.f32.gmra.mrb[12].mxu1 %vm411_vm1, %v6681_v57  ;;  %5341 = vmatmul.mubr.msk.f32.gmra.mrb[6].mxu0 %vm411_vm1, %v6202_v42 }
  0xb2   : > { %5152 = vmatprep.mubr.msk.f32.mxu1 %vm411_vm1, %v6685_v11  ;;  %5343 = vmatprep.mubr.msk.f32.mxu0 %vm411_vm1, %v6224_v49 }
  0xb5   : > { %5153 = vmatmul.mubr.msk.f32.gmra.mrb[14].mxu1 %vm411_vm1, %v6698_v3  ;;  %5344 = vmatmul.mubr.msk.f32.gmra.mrb[8].mxu0 %vm411_vm1, %v6227_v50 }
  0xb6   : > { %5155 = vmatprep.mubr.msk.f32.mxu1 %vm411_vm1, %v6702_v37  ;;  %5346 = vmatprep.mubr.msk.f32.mxu0 %vm411_vm1, %v6261_v59 }
  0xb9   : > { %5156 = vmatmul.mubr.msk.f32.gmra.mrb[16].mxu1 %vm411_vm1, %v6715_v19  ;;  %5347 = vmatmul.mubr.msk.f32.gmra.mrb[10].mxu0 %vm411_vm1, %v6264_v60 }
  0xba   : > { %5158 = vmatprep.mubr.msk.f32.mxu1 %vm411_vm1, %v6719_v44  ;;  %5349 = vmatprep.mubr.msk.f32.mxu0 %vm411_vm1, %v6291_v7 }
  0xbd   : > { %5159 = vmatmul.mubr.msk.f32.gmra.mrb[18].mxu1 %vm411_vm1, %v6732_v13  ;;  %5350 = vmatmul.mubr.msk.f32.gmra.mrb[12].mxu0 %vm411_vm1, %v8491_v10 }
  0xbe   : > { %5161 = vmatprep.mubr.msk.f32.mxu1 %vm411_vm1, %v6736_v43  ;;  %5352 = vmatprep.mubr.msk.f32.mxu0 %vm411_vm1, %v6317_v20 }
  0xc1   : > { %5162 = vmatmul.mubr.msk.f32.gmra.mrb[20].mxu1 %vm411_vm1, %v6749_v8  ;;  %5353 = vmatmul.mubr.msk.f32.gmra.mrb[14].mxu0 %vm411_vm1, %v8492_v16 }
  0xc2   : > { %5164 = vmatprep.mubr.msk.f32.mxu1 %vm411_vm1, %v6753_v2  ;;  %5355 = vmatprep.mubr.msk.f32.mxu0 %vm411_vm1, %v6343_v36 }
  0xc5   : > { %5165 = vmatmul.mubr.msk.f32.gmra.mrb[22].mxu1 %vm411_vm1, %v6766_v22  ;;  %5356 = vmatmul.mubr.msk.f32.gmra.mrb[16].mxu0 %vm411_vm1, %v8493_v21 }
  0xc6   : > { %5167 = vmatprep.mubr.msk.f32.mxu1 %vm411_vm1, %v6770_v32  ;;  %5358 = vmatprep.mubr.msk.f32.mxu0 %vm411_vm1, %v6369_v56 }
  0xc9   : > { %5168 = vmatmul.mubr.msk.f32.gmra.mrb[24].mxu1 %vm411_vm1, %v6783_v63  ;;  %5359 = vmatmul.mubr.msk.f32.gmra.mrb[18].mxu0 %vm411_vm1, %v8494_v27 }
  0xca   : > { %5170 = vmatprep.mubr.msk.f32.mxu1 %vm411_vm1, %v6788_v47  ;;  %5361 = vmatprep.mubr.msk.f32.mxu0 %vm411_vm1, %v8495_v29 }
  0xcd   : > { %5171 = vmatmul.mubr.msk.f32.gmra.mrb[26].mxu1 %vm411_vm1, %v6803_v6  ;;  %5362 = vmatmul.mubr.msk.f32.gmra.mrb[20].mxu0 %vm411_vm1, %v8496_v30 }
  0xce   : > { %5173 = vmatprep.mubr.msk.f32.mxu1 %vm411_vm1, %v6808_v54  ;;  %5364 = vmatprep.mubr.msk.f32.mxu0 %vm411_vm1, %v8497_v35 }
  0xd1   : > { %5174 = vmatmul.mubr.msk.f32.gmra.mrb[28].mxu1 %vm411_vm1, %v6821_v61  ;;  %5365 = vmatmul.mubr.msk.f32.gmra.mrb[22].mxu0 %vm411_vm1, %v8498_v39 }
  0xd2   : > { %5176 = vmatprep.mubr.msk.f32.mxu1 %vm411_vm1, %v6825_v38  ;;  %5367 = vmatprep.mubr.msk.f32.mxu0 %vm411_vm1, %v6447_v45 }
  0xd5   : > { %5177 = vmatmul.mubr.msk.f32.gmra.mrb[30].mxu1 %vm411_vm1, %v6837_v14  ;;  %5368 = vmatmul.mubr.msk.f32.gmra.mrb[24].mxu0 %vm411_vm1, %v8499_v12 }
  0xd6   : > { %5193 = vmatprep.mubr.msk.f32.mxu1 %vm411_vm1, %v6199_v41  ;;  %5370 = vmatprep.mubr.msk.f32.mxu0 %vm411_vm1, %v6473_v34  ;;  %v6997_v41 = vld [vmem:[%s6095_s6 + $0x1a0] sm:$0xff] }
  0xd9   : > { %5194 = vmatmul.mubr.msk.f32.vlgmr.msra.gmra.mrb[8].mxu1 %vm411_vm1, %v6202_v42  ;;  %5371 = vmatmul.mubr.msk.f32.gmra.mrb[26].mxu0 %vm411_vm1, %v8500_v18  ;;  %v8501_v42 = vld [vmem:[#allocation3_spill] sm:$0xff] }
  0xda   : > { %5196 = vmatprep.mubr.msk.f32.mxu1 %vm411_vm1, %v6224_v49  ;;  %5373 = vmatprep.mubr.msk.f32.mxu0 %vm411_vm1, %v6525_v23  ;;  %v8502_v49 = vld [vmem:[#allocation4_spill] sm:$0xff] }
  0xdd   : > { %5197 = vmatmul.mubr.msk.f32.gmra.mrb[10].mxu1 %vm411_vm1, %v6227_v50  ;;  %5374 = vmatmul.mubr.msk.f32.gmra.mrb[28].mxu0 %vm411_vm1, %v6528_v26  ;;  %v8503_v50 = vld [vmem:[#allocation5_spill] sm:$0xff] }
  0xde   : > { %5199 = vmatprep.mubr.msk.f32.mxu1 %vm411_vm1, %v6261_v59  ;;  %5376 = vmatprep.mubr.msk.f32.mxu0 %vm411_vm1, %v6986_v46  ;;  %v8504_v59 = vld [vmem:[#allocation6_spill] sm:$0xff] }
  0xe1   : > { %5200 = vmatmul.mubr.msk.f32.gmra.mrb[12].mxu1 %vm411_vm1, %v6264_v60  ;;  %5377 = vmatmul.mubr.msk.f32.gmra.mrb[30].mxu0 %vm411_vm1, %v6997_v41  ;;  %v8505_v60 = vld [vmem:[#allocation7_spill] sm:$0xff] }
  0xe2   : > { %5202 = vmatprep.mubr.msk.f32.mxu1 %vm411_vm1, %v6291_v7  ;;  %5381 = vmatprep.mubr.msk.f32.mxu0 %vm411_vm1, %v8501_v42  ;;  %v8506_v7 = vld [vmem:[#allocation8_spill] sm:$0xff] }
  0xe5   : > { %5203 = vmatmul.mubr.msk.f32.gmra.mrb[14].mxu1 %vm411_vm1, %v8491_v10  ;;  %5382 = vmatmul.mubr.msk.f32.vlgmr.msra.gmra.mrb[0].mxu0 %vm411_vm1, %v8502_v49  ;;  %v8521_v10 = vld [vmem:[#allocation31_spill] sm:$0xff] }
  0xe6   : > { %5205 = vmatprep.mubr.msk.f32.mxu1 %vm411_vm1, %v6317_v20  ;;  %5384 = vmatprep.mubr.msk.f32.mxu0 %vm411_vm1, %v8503_v50  ;;  %v8507_v20 = vld [vmem:[#allocation9_spill] sm:$0xff]  ;;  %v8530_v50 = vld [vmem:[#allocation42_spill] sm:$0xff] }
  0xe7   : > { %5430 = vmatpush3.msk.msra.mxu0 %vm476_vm0, %v6871_v0  ;;  %v8520_v0 = vld [vmem:[#allocation30_spill] sm:$0xff] }
  0xe9   : > { %5206 = vmatmul.mubr.msk.f32.gmra.mrb[16].mxu1 %vm411_vm1, %v8492_v16  ;;  %5385 = vmatmul.mubr.msk.f32.gmra.mrb[2].mxu0 %vm411_vm1, %v8504_v59  ;;  %v8522_v16 = vld [vmem:[#allocation33_spill] sm:$0xff] }
  0xea   : > { %5208 = vmatprep.mubr.msk.f32.mxu1 %vm411_vm1, %v6343_v36  ;;  %5387 = vmatprep.mubr.msk.f32.mxu0 %vm411_vm1, %v8505_v60  ;;  %v8509_v36 = vld [vmem:[#allocation11_spill] sm:$0xff] }
  0xeb   : > { %v3142_v60 = vld [vmem:[%s8384_s3 + $0x68] sm:$0xff] }
  0xed   : > { %5209 = vmatmul.mubr.msk.f32.gmra.mrb[18].mxu1 %vm411_vm1, %v8493_v21  ;;  %5388 = vmatmul.mubr.msk.f32.gmra.mrb[4].mxu0 %vm411_vm1, %v8506_v7  ;;  %v8524_v21 = vld [vmem:[#allocation36_spill] sm:$0xff] }
  0xee   : > { %5211 = vmatprep.mubr.msk.f32.mxu1 %vm411_vm1, %v6369_v56  ;;  %5390 = vmatprep.mubr.msk.f32.mxu0 %vm411_vm1, %v8507_v20  ;;  %v8511_v56 = vld [vmem:[#allocation14_spill] sm:$0xff]  ;;  %v3143_v20 = vld [vmem:[%s8384_s3 + $0x70] sm:$0xff] }
  0xf1   : > { %5212 = vmatmul.mubr.msk.f32.gmra.mrb[20].mxu1 %vm411_vm1, %v8494_v27  ;;  %5391 = vmatmul.mubr.msk.f32.gmra.mrb[6].mxu0 %vm411_vm1, %v8508_v25  ;;  %v8526_v27 = vld [vmem:[#allocation38_spill] sm:$0xff]  ;;  %v3144_v25 = vld [vmem:[%s8384_s3 + $0x78] sm:$0xff] }
  0xf2   : > { %5214 = vmatprep.mubr.msk.f32.mxu1 %vm411_vm1, %v8495_v29  ;;  %5393 = vmatprep.mubr.msk.f32.mxu0 %vm411_vm1, %v8509_v36  ;;  %v8527_v29 = vld [vmem:[#allocation39_spill] sm:$0xff]  ;;  %v5587_v36 = vpack.c.bf16 %v3144_v25, %v3143_v20 }
  0xf5   : > { %5215 = vmatmul.mubr.msk.f32.gmra.mrb[22].mxu1 %vm411_vm1, %v8496_v30  ;;  %5394 = vmatmul.mubr.msk.f32.gmra.mrb[8].mxu0 %vm411_vm1, %v8510_v9  ;;  %v2484_v30 = vrot.slane %v6986_v46, 1 }
  0xf6   : > { %5217 = vmatprep.mubr.msk.f32.mxu1 %vm411_vm1, %v8497_v35  ;;  %5396 = vmatprep.mubr.msk.f32.mxu0 %vm411_vm1, %v8511_v56  ;;  %v2485_v35 = vrot.slane %v6997_v41, 1 }
  0xf8   : > { %v2486_v49 = vsel %vm328_vm2, %v2484_v30, %v2485_v35 }
  0xf9   : > { %5218 = vmatmul.mubr.msk.f32.gmra.mrb[24].mxu1 %vm411_vm1, %v8498_v39  ;;  %5397 = vmatmul.mubr.msk.f32.gmra.mrb[10].mxu0 %vm411_vm1, %v8512_v52  ;;  %v278_v39 = vld [vmem:[%s6095_s6 + $0x1a8] sm:$0x3] }
  0xfa   : > { %5220 = vmatprep.mubr.msk.f32.mxu1 %vm411_vm1, %v6447_v45  ;;  %5399 = vmatprep.mubr.msk.f32.mxu0 %vm411_vm1, %v8513_v62  ;;  %v8517_v45 = vld [vmem:[#allocation23_spill] sm:$0xff]  ;;  %v2487_v42 = vrot.slane %v278_v39, 1 }
  0xfc   : > { %v2488_v59 = vsel %vm328_vm2, %v2485_v35, %v2487_v42 }
  0xfd   : > { %5221 = vmatmul.mubr.msk.f32.gmra.mrb[26].mxu1 %vm411_vm1, %v8499_v12  ;;  %5400 = vmatmul.mubr.msk.f32.gmra.mrb[12].mxu0 %vm411_vm1, %v8514_v31  ;;  %v8528_v12 = vld [vmem:[#allocation40_spill] sm:$0xff] }
  0xfe   : > { %5223 = vmatprep.mubr.msk.f32.mxu1 %vm411_vm1, %v6473_v34  ;;  %5402 = vmatprep.mubr.msk.f32.mxu0 %vm411_vm1, %v8515_v1  ;;  %v8518_v34 = vld [vmem:[#allocation26_spill] sm:$0xff] }
 0x101   : > { %5224 = vmatmul.mubr.msk.f32.gmra.mrb[28].mxu1 %vm411_vm1, %v8500_v18  ;;  %5403 = vmatmul.mubr.msk.f32.gmra.mrb[14].mxu0 %vm411_vm1, %v8516_v55  ;;  %v8529_v18 = vld [vmem:[#allocation41_spill] sm:$0xff] }
 0x102   : > { %5226 = vmatprep.mubr.msk.f32.mxu1 %vm411_vm1, %v6525_v23  ;;  %5405 = vmatprep.mubr.msk.f32.mxu0 %vm411_vm1, %v8517_v45  ;;  %v8523_v23 = vld [vmem:[#allocation34_spill] sm:$0xff] }
 0x105   : > { %5227 = vmatmul.mubr.msk.f32.gmra.mrb[30].mxu1 %vm411_vm1, %v6528_v26  ;;  %5406 = vmatmul.mubr.msk.f32.gmra.mrb[16].mxu0 %vm411_vm1, %v8518_v34  ;;  %v8525_v26 = vld [vmem:[#allocation37_spill] sm:$0xff] }
 0x106   : > { %5408 = vmatprep.mubr.msk.f32.mxu0 %vm411_vm1, %v8519_v28 }
 0x109   : > { %5409 = vmatmul.mubr.msk.f32.gmra.mrb[18].mxu0 %vm411_vm1, %v8520_v0 }
 0x10a   : > { %5411 = vmatprep.mubr.msk.f32.mxu0 %vm411_vm1, %v8521_v10 }
 0x10d   : > { %5412 = vmatmul.mubr.msk.f32.gmra.mrb[20].mxu0 %vm411_vm1, %v8522_v16 }
 0x10e   : > { %5414 = vmatprep.mubr.msk.f32.mxu0 %vm411_vm1, %v8523_v23 }
 0x111   : > { %5415 = vmatmul.mubr.msk.f32.gmra.mrb[22].mxu0 %vm411_vm1, %v8524_v21 }
 0x112   : > { %5417 = vmatprep.mubr.msk.f32.mxu0 %vm411_vm1, %v8525_v26 }
 0x115   : > { %5418 = vmatmul.mubr.msk.f32.gmra.mrb[24].mxu0 %vm411_vm1, %v8526_v27 }
 0x116   : > { %5420 = vmatprep.mubr.msk.f32.mxu0 %vm411_vm1, %v8527_v29 }
 0x119   : > { %5421 = vmatmul.mubr.msk.f32.gmra.mrb[26].mxu0 %vm411_vm1, %v8528_v12 }
 0x11a   : > { %5423 = vmatprep.mubr.msk.f32.mxu0 %vm411_vm1, %v8529_v18 }
 0x11d   : > { %5424 = vmatmul.mubr.msk.f32.gmra.mrb[28].mxu0 %vm411_vm1, %v8530_v50  ;;  %v7277_v50 = vld [vmem:[%s8383_s2] ss:$0 sm:$0xff] }
 0x11e   : > { %5426 = vmatprep.mubr.msk.f32.mxu0 %vm411_vm1, %v2486_v49 }
 0x121   : > { %5427 = vmatmul.mubr.msk.f32.gmra.mrb[30].mxu0 %vm411_vm1, %v2488_v59 }
 0x122   : > { %5431 = vmatprep.mubr.msk.f32.mxu0 %vm411_vm1, %v6591_v15  ;;  %v2755_v15 = vrot.slane %v6986_v46, 2 }
 0x125   : > { %5432 = vmatmul.mubr.msk.f32.vlgmr.msra.gmra.mrb[0].mxu0 %vm411_vm1, %v6609_v24  ;;  %v2756_v24 = vrot.slane %v6997_v41, 2  ;;  %v3141_v41 = vld [vmem:[%s8384_s3 + $0x60] sm:$0xff] }
 0x126   : > { %5434 = vmatprep.mubr.msk.f32.mxu0 %vm411_vm1, %v6613_v4  ;;  %v3129_v4 = vld [vmem:[%s8384_s3] sm:$0xff]  ;;  %v5583_v7 = vpack.c.bf16 %v3142_v60, %v3141_v41 }
 0x129   : > { %5435 = vmatmul.mubr.msk.f32.gmra.mrb[2].mxu0 %vm411_vm1, %v6630_v33  ;;  %v3130_v33 = vld [vmem:[%s8384_s3 + $0x8] sm:$0xff] }
 0x12a   : > { %5437 = vmatprep.mubr.msk.f32.mxu0 %vm411_vm1, %v6634_v5  ;;  %v3131_v5 = vld [vmem:[%s8384_s3 + $0x10] sm:$0xff] }
 0x12d   : > { %5438 = vmatmul.mubr.msk.f32.gmra.mrb[4].mxu0 %vm411_vm1, %v6647_v40  ;;  %v2758_v40 = vrot.slane %v278_v39, 2 }
 0x12e   : > { %5440 = vmatprep.mubr.msk.f32.mxu0 %vm411_vm1, %v6651_v58  ;;  %v5559_v58 = vpack.c.bf16 %v3130_v33, %v3129_v4 }
 0x130   : > { %5560 = vmatprep.subr.bf16.mxu1 %v5559_v58 }
 0x131   : > { %5441 = vmatmul.mubr.msk.f32.gmra.mrb[6].mxu0 %vm411_vm1, %v6664_v48  ;;  %v3132_v48 = vld [vmem:[%s8384_s3 + $0x18] sm:$0xff]  ;;  %5562 = vmatpush3.bf16.msra.mxu1 %v5559_v58 }
 0x132   : > { %5443 = vmatprep.mubr.msk.f32.mxu0 %vm411_vm1, %v6668_v51  ;;  %v2757_v51 = vsel %vm997_vm3, %v2755_v15, %v2756_v24 }
 0x135   : > { %5444 = vmatmul.mubr.msk.f32.gmra.mrb[8].mxu0 %vm411_vm1, %v6681_v57  ;;  %v5563_v57 = vpack.c.bf16 %v3132_v48, %v3131_v5 }
 0x136   : > { %5446 = vmatprep.mubr.msk.f32.mxu0 %vm411_vm1, %v6685_v11  ;;  %v3133_v11 = vld [vmem:[%s8384_s3 + $0x20] sm:$0xff] }
 0x137   : > { %5564 = vmatprep.subr.bf16.mxu1 %v5563_v57 }
 0x138   : > { %5566 = vmatpush3.bf16.msra.mxu1 %v5563_v57 }
 0x139   : > { %5447 = vmatmul.mubr.msk.f32.gmra.mrb[10].mxu0 %vm411_vm1, %v6698_v3  ;;  %v3134_v3 = vld [vmem:[%s8384_s3 + $0x28] sm:$0xff] }
 0x13a   : > { %5449 = vmatprep.mubr.msk.f32.mxu0 %vm411_vm1, %v6702_v37  ;;  %v2759_v37 = vsel %vm997_vm3, %v2756_v24, %v2758_v40 }
 0x13d   : > { %5450 = vmatmul.mubr.msk.f32.gmra.mrb[12].mxu0 %vm411_vm1, %v6715_v19  ;;  %v5567_v19 = vpack.c.bf16 %v3134_v3, %v3133_v11 }
 0x13e   : > { %5452 = vmatprep.mubr.msk.f32.mxu0 %vm411_vm1, %v6719_v44  ;;  %v3135_v44 = vld [vmem:[%s8384_s3 + $0x30] sm:$0xff] }
 0x13f   : > { %5568 = vmatprep.subr.bf16.mxu1 %v5567_v19 }
 0x140   : > { %5570 = vmatpush3.bf16.msra.mxu1 %v5567_v19 }
 0x141   : > { %5453 = vmatmul.mubr.msk.f32.gmra.mrb[14].mxu0 %vm411_vm1, %v6732_v13  ;;  %v3136_v13 = vld [vmem:[%s8384_s3 + $0x38] sm:$0xff] }
 0x142   : > { %5455 = vmatprep.mubr.msk.f32.mxu0 %vm411_vm1, %v6736_v43  ;;  %v5571_v43 = vpack.c.bf16 %v3136_v13, %v3135_v44 }
 0x144   : > { %5572 = vmatprep.subr.bf16.mxu1 %v5571_v43 }
 0x145   : > { %5456 = vmatmul.mubr.msk.f32.gmra.mrb[16].mxu0 %vm411_vm1, %v6749_v8  ;;  %v3137_v8 = vld [vmem:[%s8384_s3 + $0x40] sm:$0xff]  ;;  %5574 = vmatpush3.bf16.msra.mxu1 %v5571_v43 }
 0x146   : > { %5458 = vmatprep.mubr.msk.f32.mxu0 %vm411_vm1, %v6753_v2  ;;  %v3138_v2 = vld [vmem:[%s8384_s3 + $0x48] sm:$0xff] }
 0x149   : > { %5459 = vmatmul.mubr.msk.f32.gmra.mrb[18].mxu0 %vm411_vm1, %v6766_v22  ;;  %v5575_v22 = vpack.c.bf16 %v3138_v2, %v3137_v8 }
 0x14a   : > { %5461 = vmatprep.mubr.msk.f32.mxu0 %vm411_vm1, %v6770_v32  ;;  %v3139_v32 = vld [vmem:[%s8384_s3 + $0x50] sm:$0xff] }
 0x14b   : > { %5576 = vmatprep.subr.bf16.mxu1 %v5575_v22 }
 0x14c   : > { %5578 = vmatpush3.bf16.msra.mxu1 %v5575_v22 }
 0x14d   : > { %5462 = vmatmul.mubr.msk.f32.gmra.mrb[20].mxu0 %vm411_vm1, %v6783_v63  ;;  %v3140_v63 = vld [vmem:[%s8384_s3 + $0x58] sm:$0xff] }
 0x14e   : > { %5464 = vmatprep.mubr.msk.f32.mxu0 %vm411_vm1, %v6788_v47  ;;  %v5579_v47 = vpack.c.bf16 %v3140_v63, %v3139_v32 }
 0x150   : > { %5580 = vmatprep.subr.bf16.mxu1 %v5579_v47 }
 0x151   : > { %5465 = vmatmul.mubr.msk.f32.gmra.mrb[22].mxu0 %vm411_vm1, %v6803_v6  ;;  %5582 = vmatpush3.bf16.msra.mxu1 %v5579_v47 }
 0x152   : > { %5467 = vmatprep.mubr.msk.f32.mxu0 %vm411_vm1, %v6808_v54  ;;  %5584 = vmatprep.subr.bf16.mxu1 %v5583_v7 }
 0x155   : > { %5468 = vmatmul.mubr.msk.f32.gmra.mrb[24].mxu0 %vm411_vm1, %v6821_v61  ;;  %5586 = vmatpush3.bf16.msra.mxu1 %v5583_v7 }
 0x156   : > { %5470 = vmatprep.mubr.msk.f32.mxu0 %vm411_vm1, %v6825_v38  ;;  %5588 = vmatprep.subr.bf16.mxu1 %v5587_v36 }
 0x159   : > { %5471 = vmatmul.mubr.msk.f32.gmra.mrb[26].mxu0 %vm411_vm1, %v6837_v14  ;;  %5590 = vmatpush3.bf16.msra.mxu1 %v5587_v36 }
 0x15a   : > { %5473 = vmatprep.mubr.msk.f32.mxu0 %vm411_vm1, %v6841_v53 }
 0x15d   : > { %5474 = vmatmul.mubr.msk.f32.gmra.mrb[28].mxu0 %vm411_vm1, %v6854_v17 }
 0x15e   : > { %5476 = vmatprep.mubr.msk.f32.mxu0 %vm411_vm1, %v2757_v51 }
 0x161   : > { %5477 = vmatmul.mubr.msk.f32.gmra.mrb[30].mxu0 %vm411_vm1, %v2759_v37 }
 0x16c   : > { %v5133_v6 = vpop.f32.mrb[0].mxu1 }
 0x16d   : > { %v1213_v54 = vpop.f32.mrb[1].mxu1 }
 0x170   : > { %v5136_v61 = vpop.f32.mrb[2].mxu1 }
 0x171   : > { %v1223_v38 = vpop.f32.mrb[3].mxu1 }
 0x174   : > { %v5139_v14 = vpop.f32.mrb[4].mxu1 }
 0x175   : > { %v1233_v53 = vpop.f32.mrb[5].mxu1 }
 0x178   : > { %v7210_v17 = vpop.f32.mrb[6].mxu1 }
 0x179   : > { %v7212_v46 = vpop.f32.mrb[7].mxu1 }
 0x1ac   : > { %v7226_v9 = vpop.f32.mrb[8].mxu1 }
 0x1ad   : > { %v7228_v56 = vpop.f32.mrb[9].mxu1 }
 0x1b0   : > { %v7230_v52 = vpop.f32.mrb[10].mxu1 }
 0x1b1   : > { %v7232_v62 = vpop.f32.mrb[11].mxu1 }
 0x1b4   : > { %v7234_v31 = vpop.f32.mrb[12].mxu1 }
 0x1b5   : > { %v7236_v1 = vpop.f32.mrb[13].mxu1 }
 0x1b8   : > { %v7238_v55 = vpop.f32.mrb[14].mxu1 }
 0x1b9   : > { %v7240_v45 = vpop.f32.mrb[15].mxu1 }
 0x1bc   : > { %v7242_v34 = vpop.f32.mrb[16].mxu1 }
 0x1bd   : > { %v7244_v28 = vpop.f32.mrb[17].mxu1 }
 0x1c0   : > { %v7246_v0 = vpop.f32.mrb[18].mxu1 }
 0x1c1   : > { %v7248_v10 = vpop.f32.mrb[19].mxu1 }
 0x1c4   : > { %v7250_v16 = vpop.f32.mrb[20].mxu1 }
 0x1c5   : > { %v7252_v23 = vpop.f32.mrb[21].mxu1 }
 0x1c8   : > { %v7254_v21 = vpop.f32.mrb[22].mxu1 }
 0x1c9   : > { %v7256_v26 = vpop.f32.mrb[23].mxu1 }
 0x1cc   : > { %v7258_v27 = vpop.f32.mrb[24].mxu1 }
 0x1cd   : > { %v7260_v29 = vpop.f32.mrb[25].mxu1 }
 0x1d0   : > { %v7262_v30 = vpop.f32.mrb[26].mxu1 }
 0x1d1   : > { %v7264_v35 = vpop.f32.mrb[27].mxu1 }
 0x1d4   : > { %v7266_v39 = vpop.f32.mrb[28].mxu1 }
 0x1d5   : > { %v7268_v12 = vpop.f32.mrb[29].mxu1 }
 0x1d8   : > { %v7270_v18 = vpop.f32.mrb[30].mxu1 }
 0x1d9   : > { %v7272_v42 = vpop.f32.mrb[31].mxu1 }
 0x1f8   : > { %v5433_v49 = vpop.f32.mrb[0].mxu0 }
 0x1f9   : > { %v5625_v59 = vadd.f32 %v5433_v49, %v5133_v6  ;;  %v2835_v15 = vpop.f32.mrb[1].mxu0 }
 0x1fa   : > { %v5626_v24 = vadd.f32 %v2835_v15, %v1213_v54 }
 0x1fb   : > { %v3034_v4 = vadd.f32 %v5625_v59, %v7277_v50 }
 0x1fc   : > { %v3033_v33 = vadd.f32 %v5626_v24, %v7277_v50  ;;  %v5436_v5 = vpop.f32.mrb[2].mxu0 }
 0x1fd   : > { %v7281_v40 = vmax.f32 %v3034_v4, 0.0  ;;  %v5627_v58 = vadd.f32 %v5436_v5, %v5136_v61  ;;  %v2845_v48 = vpop.f32.mrb[3].mxu0 }
 0x1fe   : > { %v7283_v51 = vmax.f32 %v3033_v33, 0.0  ;;  %v5628_v57 = vadd.f32 %v2845_v48, %v1223_v38 }
 0x1ff   : > { %v3036_v11 = vadd.f32 %v5627_v58, %v7277_v50  ;;  %v3098_v44 = vmul.f32 %v7281_v40, %v7281_v40 }
 0x200   : > { %v3035_v3 = vadd.f32 %v5628_v57, %v7277_v50  ;;  %v5439_v37 = vpop.f32.mrb[4].mxu0  ;;  %v3097_v19 = vmul.f32 %v7283_v51, %v7283_v51 }
 0x201   : > { %v7291_v13 = vmax.f32 %v3036_v11, 0.0  ;;  %v5629_v43 = vadd.f32 %v5439_v37, %v5139_v14  ;;  %v2855_v8 = vpop.f32.mrb[5].mxu0 }
 0x202   : > { %v7293_v2 = vmax.f32 %v3035_v3, 0.0  ;;  %v5630_v22 = vadd.f32 %v2855_v8, %v1233_v53  ;;  %5511 = vmatprep.mubr.f32.mxu1 %v3097_v19 }
 0x203   : > { %v3038_v32 = vadd.f32 %v5629_v43, %v7277_v50  ;;  %5512 = vmatmul.mubr.f32.vlgmr.msra.gmra.mrb[32].mxu1 %v3098_v44  ;;  %v3100_v14 = vmul.f32 %v7291_v13, %v7291_v13 }
 0x204   : > { %v3037_v63 = vadd.f32 %v5630_v22, %v7277_v50  ;;  %v5442_v47 = vpop.f32.mrb[6].mxu0  ;;  %v3099_v6 = vmul.f32 %v7293_v2, %v7293_v2 }
 0x205   : > { %v7299_v54 = vmax.f32 %v3038_v32, 0.0  ;;  %v5631_v61 = vadd.f32 %v5442_v47, %v7210_v17  ;;  %v2865_v38 = vpop.f32.mrb[7].mxu0 }
 0x206   : > { %v7304_v41 = vmax.f32 %v3037_v63, 0.0  ;;  %v5632_v53 = vadd.f32 %v2865_v38, %v7212_v46  ;;  %5514 = vmatprep.mubr.f32.mxu1 %v3099_v6 }
 0x207   : > { %v3040_v60 = vadd.f32 %v5631_v61, %v7277_v50  ;;  %5515 = vmatmul.mubr.f32.gmra.mrb[34].mxu1 %v3100_v14  ;;  %v3102_v59 = vmul.f32 %v7299_v54, %v7299_v54 }
 0x208   : > { %v3039_v7 = vadd.f32 %v5632_v53, %v7277_v50  ;;  %v5445_v20 = vpop.f32.mrb[8].mxu0  ;;  %v3101_v25 = vmul.f32 %v7304_v41, %v7304_v41 }
 0x209   : > { %v7311_v36 = vmax.f32 %v3040_v60, 0.0  ;;  %v5633_v17 = vadd.f32 %v5445_v20, %v7226_v9  ;;  %v2875_v49 = vpop.f32.mrb[9].mxu0 }
 0x20a   : > { %v7316_v15 = vmax.f32 %v3039_v7, 0.0  ;;  %v5634_v46 = vadd.f32 %v2875_v49, %v7228_v56  ;;  %5517 = vmatprep.mubr.f32.mxu1 %v3101_v25 }
 0x20b   : > { %v3042_v24 = vadd.f32 %v5633_v17, %v7277_v50  ;;  %5518 = vmatmul.mubr.f32.gmra.mrb[36].mxu1 %v3102_v59  ;;  %v3104_v57 = vmul.f32 %v7311_v36, %v7311_v36 }
 0x20c   : > { %v3041_v4 = vadd.f32 %v5634_v46, %v7277_v50  ;;  %v5448_v33 = vpop.f32.mrb[10].mxu0  ;;  %v3103_v5 = vmul.f32 %v7316_v15, %v7316_v15 }
 0x20d   : > { %v7323_v58 = vmax.f32 %v3042_v24, 0.0  ;;  %v5635_v9 = vadd.f32 %v5448_v33, %v7230_v52  ;;  %v2885_v48 = vpop.f32.mrb[11].mxu0 }
 0x20e   : > { %v7328_v11 = vmax.f32 %v3041_v4, 0.0  ;;  %v5636_v56 = vadd.f32 %v2885_v48, %v7232_v62  ;;  %5520 = vmatprep.mubr.f32.mxu1 %v3103_v5 }
 0x20f   : > { %v3044_v3 = vadd.f32 %v5635_v9, %v7277_v50  ;;  %5521 = vmatmul.mubr.f32.gmra.mrb[38].mxu1 %v3104_v57  ;;  %v3106_v22 = vmul.f32 %v7323_v58, %v7323_v58 }
 0x210   : > { %8531 = vst [vmem:[#allocation2_spill] sm:$0xff] %v7328_v11  ;;  %v3043_v37 = vadd.f32 %v5636_v56, %v7277_v50  ;;  %v5451_v19 = vpop.f32.mrb[12].mxu0  ;;  %v3105_v44 = vmul.f32 %v7328_v11, %v7328_v11 }
 0x211   : > { %v7335_v43 = vmax.f32 %v3044_v3, 0.0  ;;  %v5637_v52 = vadd.f32 %v5451_v19, %v7234_v31  ;;  %v2895_v8 = vpop.f32.mrb[13].mxu0 }
 0x212   : > { %v7340_v32 = vmax.f32 %v3043_v37, 0.0  ;;  %v5638_v62 = vadd.f32 %v2895_v8, %v7236_v1  ;;  %5523 = vmatprep.mubr.f32.mxu1 %v3105_v44 }
 0x213   : > { %8532 = vst [vmem:[#allocation12_spill] sm:$0xff] %v7335_v43  ;;  %v3046_v63 = vadd.f32 %v5637_v52, %v7277_v50  ;;  %5524 = vmatmul.mubr.f32.gmra.mrb[40].mxu1 %v3106_v22  ;;  %v3108_v53 = vmul.f32 %v7335_v43, %v7335_v43 }
 0x214   : > { %8533 = vst [vmem:[#allocation15_spill] sm:$0xff] %v7340_v32  ;;  %v3045_v47 = vadd.f32 %v5638_v62, %v7277_v50  ;;  %v5454_v6 = vpop.f32.mrb[14].mxu0  ;;  %v3107_v61 = vmul.f32 %v7340_v32, %v7340_v32 }
 0x215   : > { %v7347_v38 = vmax.f32 %v3046_v63, 0.0  ;;  %v5639_v31 = vadd.f32 %v5454_v6, %v7238_v55  ;;  %v2905_v14 = vpop.f32.mrb[15].mxu0 }
 0x216   : > { %v7352_v60 = vmax.f32 %v3045_v47, 0.0  ;;  %v5640_v1 = vadd.f32 %v2905_v14, %v7240_v45  ;;  %5526 = vmatprep.mubr.f32.mxu1 %v3107_v61 }
 0x217   : > { %v3048_v7 = vadd.f32 %v5639_v31, %v7277_v50  ;;  %5527 = vmatmul.mubr.f32.gmra.mrb[42].mxu1 %v3108_v53  ;;  %v3110_v46 = vmul.f32 %v7347_v38, %v7347_v38 }
 0x218   : > { %8534 = vst [vmem:[#allocation18_spill] sm:$0xff] %v7352_v60  ;;  %v3047_v20 = vadd.f32 %v5640_v1, %v7277_v50  ;;  %v5457_v25 = vpop.f32.mrb[16].mxu0  ;;  %v3109_v17 = vmul.f32 %v7352_v60, %v7352_v60 }
 0x219   : > { %v7359_v49 = vmax.f32 %v3048_v7, 0.0  ;;  %v5641_v55 = vadd.f32 %v5457_v25, %v7242_v34  ;;  %v2915_v59 = vpop.f32.mrb[17].mxu0 }
 0x21a   : > { %v7364_v24 = vmax.f32 %v3047_v20, 0.0  ;;  %v5642_v45 = vadd.f32 %v2915_v59, %v7244_v28  ;;  %5529 = vmatprep.mubr.f32.mxu1 %v3109_v17 }
 0x21b   : > { %v3050_v4 = vadd.f32 %v5641_v55, %v7277_v50  ;;  %5530 = vmatmul.mubr.f32.gmra.mrb[44].mxu1 %v3110_v46  ;;  %v3112_v56 = vmul.f32 %v7359_v49, %v7359_v49 }
 0x21c   : > { %v3049_v33 = vadd.f32 %v5642_v45, %v7277_v50  ;;  %v5460_v5 = vpop.f32.mrb[18].mxu0  ;;  %v3111_v9 = vmul.f32 %v7364_v24, %v7364_v24 }
 0x21d   : > { %v7371_v48 = vmax.f32 %v3050_v4, 0.0  ;;  %v5643_v34 = vadd.f32 %v5460_v5, %v7246_v0  ;;  %v2925_v57 = vpop.f32.mrb[19].mxu0 }
 0x21e   : > { %v7376_v3 = vmax.f32 %v3049_v33, 0.0  ;;  %v5644_v28 = vadd.f32 %v2925_v57, %v7248_v10  ;;  %5532 = vmatprep.mubr.f32.mxu1 %v3111_v9 }
 0x21f   : > { %v3052_v37 = vadd.f32 %v5643_v34, %v7277_v50  ;;  %5533 = vmatmul.mubr.f32.gmra.mrb[46].mxu1 %v3112_v56  ;;  %v3114_v62 = vmul.f32 %v7371_v48, %v7371_v48 }
 0x220   : > { %v3051_v19 = vadd.f32 %v5644_v28, %v7277_v50  ;;  %v5463_v44 = vpop.f32.mrb[20].mxu0  ;;  %v3113_v52 = vmul.f32 %v7376_v3, %v7376_v3 }
 0x221   : > { %v7383_v8 = vmax.f32 %v3052_v37, 0.0  ;;  %v5645_v0 = vadd.f32 %v5463_v44, %v7250_v16  ;;  %v2935_v22 = vpop.f32.mrb[21].mxu0 }
 0x222   : > { %v7388_v63 = vmax.f32 %v3051_v19, 0.0  ;;  %v5646_v10 = vadd.f32 %v2935_v22, %v7252_v23  ;;  %5535 = vmatprep.mubr.f32.mxu1 %v3113_v52 }
 0x223   : > { %v3054_v47 = vadd.f32 %v5645_v0, %v7277_v50  ;;  %5536 = vmatmul.mubr.f32.gmra.mrb[48].mxu1 %v3114_v62  ;;  %v3116_v1 = vmul.f32 %v7383_v8, %v7383_v8 }
 0x224   : > { %v3053_v6 = vadd.f32 %v5646_v10, %v7277_v50  ;;  %v5466_v61 = vpop.f32.mrb[22].mxu0  ;;  %v3115_v31 = vmul.f32 %v7388_v63, %v7388_v63 }
 0x225   : > { %v7395_v14 = vmax.f32 %v3054_v47, 0.0  ;;  %v5647_v16 = vadd.f32 %v5466_v61, %v7254_v21  ;;  %v2945_v53 = vpop.f32.mrb[23].mxu0 }
 0x226   : > { %v7400_v7 = vmax.f32 %v3053_v6, 0.0  ;;  %v5648_v23 = vadd.f32 %v2945_v53, %v7256_v26  ;;  %5538 = vmatprep.mubr.f32.mxu1 %v3115_v31 }
 0x227   : > { %v3056_v20 = vadd.f32 %v5647_v16, %v7277_v50  ;;  %5539 = vmatmul.mubr.f32.gmra.mrb[50].mxu1 %v3116_v1  ;;  %v3118_v45 = vmul.f32 %v7395_v14, %v7395_v14 }
 0x228   : > { %v3055_v25 = vadd.f32 %v5648_v23, %v7277_v50  ;;  %v5469_v17 = vpop.f32.mrb[24].mxu0  ;;  %v3117_v55 = vmul.f32 %v7400_v7, %v7400_v7 }
 0x229   : > { %v7407_v59 = vmax.f32 %v3056_v20, 0.0  ;;  %v5649_v21 = vadd.f32 %v5469_v17, %v7258_v27  ;;  %v2955_v46 = vpop.f32.mrb[25].mxu0 }
 0x22a   : > { %v7412_v4 = vmax.f32 %v3055_v25, 0.0  ;;  %v5650_v26 = vadd.f32 %v2955_v46, %v7260_v29  ;;  %5541 = vmatprep.mubr.f32.mxu1 %v3117_v55 }
 0x22b   : > { %v3058_v33 = vadd.f32 %v5649_v21, %v7277_v50  ;;  %5542 = vmatmul.mubr.f32.gmra.mrb[52].mxu1 %v3118_v45  ;;  %v3120_v28 = vmul.f32 %v7407_v59, %v7407_v59 }
 0x22c   : > { %v3057_v5 = vadd.f32 %v5650_v26, %v7277_v50  ;;  %v5472_v9 = vpop.f32.mrb[26].mxu0  ;;  %v3119_v34 = vmul.f32 %v7412_v4, %v7412_v4 }
 0x22d   : > { %v7419_v57 = vmax.f32 %v3058_v33, 0.0  ;;  %v5651_v27 = vadd.f32 %v5472_v9, %v7262_v30  ;;  %v2965_v56 = vpop.f32.mrb[27].mxu0 }
 0x22e   : > { %v7424_v37 = vmax.f32 %v3057_v5, 0.0  ;;  %v5652_v29 = vadd.f32 %v2965_v56, %v7264_v35  ;;  %5544 = vmatprep.mubr.f32.mxu1 %v3119_v34 }
 0x22f   : > { %v3060_v19 = vadd.f32 %v5651_v27, %v7277_v50  ;;  %5545 = vmatmul.mubr.f32.gmra.mrb[54].mxu1 %v3120_v28  ;;  %v3122_v10 = vmul.f32 %v7419_v57, %v7419_v57 }
 0x230   : > { %8535 = vst [vmem:[#allocation21_spill] sm:$0xff] %v7424_v37  ;;  %v3059_v44 = vadd.f32 %v5652_v29, %v7277_v50  ;;  %v5475_v52 = vpop.f32.mrb[28].mxu0  ;;  %v3121_v0 = vmul.f32 %v7424_v37, %v7424_v37 }
 0x231   : > { %v7431_v22 = vmax.f32 %v3060_v19, 0.0  ;;  %v5653_v30 = vadd.f32 %v5475_v52, %v7266_v39  ;;  %v2975_v62 = vpop.f32.mrb[29].mxu0 }
 0x232   : > { %v7436_v47 = vmax.f32 %v3059_v44, 0.0  ;;  %v5654_v35 = vadd.f32 %v2975_v62, %v7268_v12  ;;  %5547 = vmatprep.mubr.f32.mxu1 %v3121_v0 }
 0x233   : > { %8536 = vst [vmem:[#allocation24_spill] sm:$0xff] %v7431_v22  ;;  %v3062_v6 = vadd.f32 %v5653_v30, %v7277_v50  ;;  %5548 = vmatmul.mubr.f32.gmra.mrb[56].mxu1 %v3122_v10  ;;  %v3124_v23 = vmul.f32 %v7431_v22, %v7431_v22 }
 0x234   : > { %8537 = vst [vmem:[#allocation25_spill] sm:$0xff] %v7436_v47  ;;  %v3061_v61 = vadd.f32 %v5654_v35, %v7277_v50  ;;  %v5478_v31 = vpop.f32.mrb[30].mxu0  ;;  %v3123_v16 = vmul.f32 %v7436_v47, %v7436_v47 }
 0x235   : > { %v7443_v53 = vmax.f32 %v3062_v6, 0.0  ;;  %v5655_v39 = vadd.f32 %v5478_v31, %v7270_v18  ;;  %v2985_v1 = vpop.f32.mrb[31].mxu0 }
 0x236   : > { %v7448_v20 = vmax.f32 %v3061_v61, 0.0  ;;  %v5656_v12 = vadd.f32 %v2985_v1, %v7272_v42  ;;  %5550 = vmatprep.mubr.f32.mxu1 %v3123_v16 }
 0x237   : > { %8538 = vst [vmem:[#allocation28_spill] sm:$0xff] %v7443_v53  ;;  %v3064_v25 = vadd.f32 %v5655_v39, %v7277_v50  ;;  %5551 = vmatmul.mubr.f32.gmra.mrb[58].mxu1 %v3124_v23  ;;  %v3126_v18 = vmul.f32 %v7443_v53, %v7443_v53 }
 0x238   : > { %8539 = vst [vmem:[#allocation29_spill] sm:$0xff] %v7448_v20  ;;  %v3063_v17 = vadd.f32 %v5656_v12, %v7277_v50  ;;  %v3125_v55 = vmul.f32 %v7448_v20, %v7448_v20 }
 0x239   : > { %v7455_v21 = vmax.f32 %v3064_v25, 0.0 }
 0x23a   : > { %v7459_v46 = vmax.f32 %v3063_v17, 0.0  ;;  %5553 = vmatprep.mubr.f32.mxu1 %v3125_v55 }
 0x23b   : > { %8540 = vst [vmem:[#allocation32_spill] sm:$0xff] %v7455_v21  ;;  %5554 = vmatmul.mubr.f32.gmra.mrb[60].mxu1 %v3126_v18  ;;  %v3128_v45 = vmul.f32 %v7455_v21, %v7455_v21 }
 0x23c   : > { %8541 = vst [vmem:[#allocation35_spill] sm:$0xff] %v7459_v46  ;;  %v3127_v42 = vmul.f32 %v7459_v46, %v7459_v46 }
 0x23e   : > { %5556 = vmatprep.mubr.f32.mxu1 %v3127_v42 }
 0x23f   : > { %5557 = vmatmul.mubr.f32.gmra.mrb[62].mxu1 %v3128_v45 }
 0x2d6   : > { %v5513_v50 = vpop.f32.mrb[32].mxu1 }
 0x2d7   : > { %v3371_v26 = vmul.f32 2e-05, %v5513_v50  ;;  %v3211_v33 = vpop.f32.mrb[33].mxu1 }
 0x2d8   : > { %v3370_v5 = vmul.f32 2e-05, %v3211_v33 }
 0x2d9   : > { %v3403_v9 = vadd.f32 2.0, %v3371_v26 }
 0x2da   : > { %v7465_v34 = vadd.f32 2.0, %v3370_v5  ;;  %v5516_v27 = vpop.f32.mrb[34].mxu1 }
 0x2db   : > { %5892 = vrsqrt.f32 %v3403_v9  ;;  %v3221_v56 = vpop.f32.mrb[35].mxu1  ;;  %v3373_v28 = vmul.f32 2e-05, %v5516_v27  ;;  %vm3443_vm4 = vcmp.eq.f32.partialorder %v3403_v9, inf  ;;  %vm3445_vm5 = vcmp.eq.f32.partialorder %v3403_v9, 0.0 }
 0x2dc   : > { %5894 = vrsqrt.f32 %v7465_v34  ;;  %v3372_v29 = vmul.f32 2e-05, %v3221_v56  ;;  %v3446_v12 = vand.u32 2147483648, %v3403_v9  ;;  %vm3436_vm6 = vcmp.eq.f32.partialorder %v7465_v34, inf }
 0x2dd   : > { %v7468_v44 = vadd.f32 2.0, %v3373_v28  ;;  %vm3438_vm7 = vcmp.eq.f32.partialorder %v7465_v34, 0.0  ;;  %v3439_v50 = vand.u32 2147483648, %v7465_v34 }
 0x2de   : > { %v5519_v19 = vpop.f32.mrb[36].mxu1  ;;  %v7470_v52 = vadd.f32 2.0, %v3372_v29 }
 0x2df   : > { %v3375_v0 = vmul.f32 2e-05, %v5519_v19  ;;  %v3231_v30 = vpop.f32.mrb[37].mxu1  ;;  %5896 = vrsqrt.f32 %v7468_v44  ;;  %vm3457_vm8 = vcmp.eq.f32.partialorder %v7468_v44, inf  ;;  %vm3459_vm9 = vcmp.eq.f32.partialorder %v7468_v44, 0.0 }
 0x2e0   : > { %v3374_v62 = vmul.f32 2e-05, %v3231_v30  ;;  %5898 = vrsqrt.f32 %v7470_v52  ;;  %v3460_v56 = vand.u32 2147483648, %v7468_v44  ;;  %vm3450_vm10 = vcmp.eq.f32.partialorder %v7470_v52, inf }
 0x2e1   : > { %v7474_v35 = vadd.f32 2.0, %v3375_v0  ;;  %vm3452_vm11 = vcmp.eq.f32.partialorder %v7470_v52, 0.0  ;;  %v3453_v19 = vand.u32 2147483648, %v7470_v52 }
 0x2e2   : > { %v5522_v10 = vpop.f32.mrb[38].mxu1  ;;  %v7476_v6 = vadd.f32 2.0, %v3374_v62 }
 0x2e3   : > { %v3377_v61 = vmul.f32 2e-05, %v5522_v10  ;;  %v3241_v31 = vpop.f32.mrb[39].mxu1  ;;  %5900 = vrsqrt.f32 %v7474_v35  ;;  %vm3471_vm12 = vcmp.eq.f32.partialorder %v7474_v35, inf  ;;  %vm3473_vm13 = vcmp.eq.f32.partialorder %v7474_v35, 0.0 }
 0x2e4   : > { %v3376_v16 = vmul.f32 2e-05, %v3241_v31  ;;  %5902 = vrsqrt.f32 %v7476_v6  ;;  %vm3464_vm14 = vcmp.eq.f32.partialorder %v7476_v6, inf  ;;  %vm3466_vm15 = vcmp.eq.f32.partialorder %v7476_v6, 0.0 }
 0x2e5   : > { %v5893_v39 = vpop.eup %5892  ;;  %v7482_v55 = vadd.f32 2.0, %v3377_v61  ;;  %v3474_v61 = vand.u32 2147483648, %v7474_v35 }
 0x2e6   : > { %v5895_v1 = vpop.eup %5894  ;;  %v3442_v23 = vmul.f32 %v5893_v39, %v3403_v9  ;;  %v5525_v25 = vpop.f32.mrb[40].mxu1  ;;  %v7484_v18 = vadd.f32 2.0, %v3376_v16 }
 0x2e7   : > { %v3435_v17 = vmul.f32 %v5895_v1, %v7465_v34  ;;  %v3251_v42 = vpop.f32.mrb[41].mxu1  ;;  %v3379_v26 = vmul.f32 2e-05, %v5525_v25  ;;  %5904 = vrsqrt.f32 %v7482_v55  ;;  %vm3485_vm0 = vcmp.eq.f32.partialorder %v7482_v55, inf }
 0x2e8   : > { %v3444_v45 = vsel %vm3443_vm4, %v3403_v9, %v3442_v23  ;;  %v3378_v5 = vmul.f32 2e-05, %v3251_v42  ;;  %5906 = vrsqrt.f32 %v7484_v18  ;;  %vm3487_vm1 = vcmp.eq.f32.partialorder %v7482_v55, 0.0 }
 0x2e9   : > { %v3437_v33 = vsel %vm3436_vm6, %v7465_v34, %v3435_v17  ;;  %v3447_v27 = vsel %vm3445_vm5, %v3446_v12, %v3444_v45  ;;  %v5897_v29 = vpop.eup %5896  ;;  %v7504_v31 = vadd.f32 2.0, %v3379_v26  ;;  %v3467_v45 = vand.u32 2147483648, %v7476_v6 }
 0x2ea   : > { %v5528_v28 = vpop.f32.mrb[42].mxu1  ;;  %v5899_v30 = vpop.eup %5898  ;;  %v3440_v62 = vsel %vm3438_vm7, %v3439_v50, %v3437_v33  ;;  %v3456_v10 = vmul.f32 %v5897_v29, %v7468_v44  ;;  %v3659_v16 = vmul.f32 %v3447_v27, %v3403_v9  ;;  %v7508_v1 = vadd.f32 2.0, %v3378_v5 }
 0x2eb   : > { %v3261_v0 = vpop.f32.mrb[43].mxu1  ;;  %v3449_v39 = vmul.f32 %v5899_v30, %v7470_v52  ;;  %5908 = vrsqrt.f32 %v7504_v31  ;;  %v3381_v12 = vmul.f32 2e-05, %v5528_v28  ;;  %v3658_v42 = vmul.f32 %v3440_v62, %v7465_v34 }
 0x2ec   : > { %v3458_v23 = vsel %vm3457_vm8, %v7468_v44, %v3456_v10  ;;  %5910 = vrsqrt.f32 %v7508_v1  ;;  %v3488_v5 = vand.u32 2147483648, %v7482_v55  ;;  %vm3478_vm3 = vcmp.eq.f32.partialorder %v7484_v18, inf }
 0x2ed   : > { %v5901_v17 = vpop.eup %5900  ;;  %v3451_v9 = vsel %vm3450_vm10, %v7470_v52, %v3449_v39  ;;  %5912 = vrsqrt.f32 %v3659_v16  ;;  %v3461_v34 = vsel %vm3459_vm9, %v3460_v56, %v3458_v23  ;;  %v7534_v30 = vadd.f32 2.0, %v3381_v12 }
 0x2ee   : > { %v5531_v25 = vpop.f32.mrb[44].mxu1  ;;  %v5903_v26 = vpop.eup %5902  ;;  %v3470_v33 = vmul.f32 %v5901_v17, %v7474_v35  ;;  %v3454_v28 = vsel %vm3452_vm11, %v3453_v19, %v3451_v9  ;;  %v3380_v62 = vmul.f32 2e-05, %v3261_v0  ;;  %5914 = vrsqrt.f32 %v3658_v42 }
 0x2ef   : > { %v3271_v50 = vpop.f32.mrb[45].mxu1  ;;  %v3463_v27 = vmul.f32 %v5903_v26, %v7476_v6  ;;  %vm3480_vm4 = vcmp.eq.f32.partialorder %v7484_v18, 0.0  ;;  %v3383_v16 = vmul.f32 2e-05, %v5531_v25  ;;  %v3481_v17 = vand.u32 2147483648, %v7484_v18 }
 0x2f0   : > { %v3472_v29 = vsel %vm3471_vm12, %v7474_v35, %v3470_v33  ;;  %vm3499_vm5 = vcmp.eq.f32.partialorder %v7504_v31, inf  ;;  %5916 = vrsqrt.f32 %v7534_v30  ;;  %v3661_v12 = vmul.f32 %v3461_v34, %v7468_v44 }
 0x2f1   : > { %v5905_v39 = vpop.eup %5904  ;;  %v3465_v56 = vsel %vm3464_vm14, %v7476_v6, %v3463_v27  ;;  %v3660_v42 = vmul.f32 %v3454_v28, %v7470_v52  ;;  %v3475_v9 = vsel %vm3473_vm13, %v3474_v61, %v3472_v29  ;;  %vm3501_vm6 = vcmp.eq.f32.partialorder %v7504_v31, 0.0 }
 0x2f2   : > { %v5534_v10 = vpop.f32.mrb[46].mxu1  ;;  %v3484_v19 = vmul.f32 %v5905_v39, %v7482_v55  ;;  %v5907_v0 = vpop.eup %5906  ;;  %v3468_v25 = vsel %vm3466_vm15, %v3467_v45, %v3465_v56  ;;  %v7555_v27 = vadd.f32 2.0, %v3380_v62  ;;  %v3502_v44 = vand.u32 2147483648, %v7504_v31 }
 0x2f3   : > { %v3281_v23 = vpop.f32.mrb[47].mxu1  ;;  %v3477_v33 = vmul.f32 %v5907_v0, %v7484_v18  ;;  %vm3492_vm7 = vcmp.eq.f32.partialorder %v7508_v1, inf  ;;  %vm3494_vm8 = vcmp.eq.f32.partialorder %v7508_v1, 0.0  ;;  %v7560_v52 = vadd.f32 2.0, %v3383_v16 }
 0x2f4   : > { %v3486_v26 = vsel %vm3485_vm0, %v7482_v55, %v3484_v19  ;;  %v3663_v45 = vmul.f32 %v3475_v9, %v7474_v35  ;;  %5918 = vrsqrt.f32 %v7555_v27  ;;  %v3382_v29 = vmul.f32 2e-05, %v3271_v50 }
 0x2f5   : > { %v5909_v34 = vpop.eup %5908  ;;  %v3489_v28 = vsel %vm3487_vm1, %v3488_v5, %v3486_v26  ;;  %5920 = vrsqrt.f32 %v3661_v12  ;;  %v3662_v56 = vmul.f32 %v3468_v25, %v7476_v6  ;;  %v3479_v19 = vsel %vm3478_vm3, %v7484_v18, %v3477_v33 }
 0x2f6   : > { %v5537_v39 = vpop.f32.mrb[48].mxu1  ;;  %v5911_v62 = vpop.eup %5910  ;;  %v3498_v16 = vmul.f32 %v5909_v34, %v7504_v31  ;;  %5922 = vrsqrt.f32 %v3660_v42  ;;  %v3495_v35 = vand.u32 2147483648, %v7508_v1  ;;  %vm3513_vm9 = vcmp.eq.f32.partialorder %v7534_v30, inf }
 0x2f7   : > { %v3291_v61 = vpop.f32.mrb[49].mxu1  ;;  %v3491_v0 = vmul.f32 %v5911_v62, %v7508_v1  ;;  %v7574_v9 = vpop.eup %5912  ;;  %v3665_v50 = vmul.f32 %v3489_v28, %v7482_v55  ;;  %vm3515_vm10 = vcmp.eq.f32.partialorder %v7534_v30, 0.0  ;;  %5924 = vrsqrt.f32 %v7560_v52 }
 0x2f8   : > { %v3500_v6 = vsel %vm3499_vm5, %v7504_v31, %v3498_v16  ;;  %5926 = vrsqrt.f32 %v3663_v45  ;;  %v3482_v42 = vsel %vm3480_vm4, %v3481_v17, %v3479_v19  ;;  %v7587_v26 = vadd.f32 2.0, %v3382_v29  ;;  %v7589_v55 = vpop.eup %5914 }
 0x2f9   : > { %v3493_v25 = vsel %vm3492_vm7, %v7508_v1, %v3491_v0  ;;  %5928 = vrsqrt.f32 %v3662_v56  ;;  %v3503_v33 = vsel %vm3501_vm6, %v3502_v44, %v3500_v6  ;;  %v3385_v34 = vmul.f32 2e-05, %v5534_v10 }
 0x2fa   : > { %v5540_v5 = vpop.f32.mrb[50].mxu1  ;;  %v3384_v28 = vmul.f32 2e-05, %v3281_v23  ;;  %v5917_v62 = vpop.eup %5916  ;;  %v3496_v45 = vsel %vm3494_vm8, %v3495_v35, %v3493_v25  ;;  %v3516_v17 = vand.u32 2147483648, %v7534_v30  ;;  %vm3506_vm11 = vcmp.eq.f32.partialorder %v7555_v27, inf }
 0x2fb   : > { %v3301_v12 = vpop.f32.mrb[51].mxu1  ;;  %5930 = vrsqrt.f32 %v7587_v26  ;;  %v3664_v19 = vmul.f32 %v3482_v42, %v7484_v18  ;;  %v3512_v56 = vmul.f32 %v5917_v62, %v7534_v30  ;;  %vm3508_vm12 = vcmp.eq.f32.partialorder %v7555_v27, 0.0 }
 0x2fc   : > { %5932 = vrsqrt.f32 %v3665_v50  ;;  %v7601_v10 = vadd.f32 2.0, %v3385_v34  ;;  %v3667_v44 = vmul.f32 %v3503_v33, %v7504_v31  ;;  %v7604_v16 = vadd.f32 2.0, %v3384_v28 }
 0x2fd   : > { %v3387_v0 = vmul.f32 2e-05, %v5537_v39  ;;  %v3386_v35 = vmul.f32 2e-05, %v3291_v61  ;;  %v3666_v6 = vmul.f32 %v3496_v45, %v7508_v1  ;;  %v3514_v50 = vsel %vm3513_vm9, %v7534_v30, %v3512_v56 }
 0x2fe   : > { %v5543_v29 = vpop.f32.mrb[52].mxu1  ;;  %v3509_v18 = vand.u32 2147483648, %v7555_v27  ;;  %5934 = vrsqrt.f32 %v7601_v10  ;;  %v5919_v42 = vpop.eup %5918  ;;  %v3517_v25 = vsel %vm3515_vm10, %v3516_v17, %v3514_v50  ;;  %vm3527_vm13 = vcmp.eq.f32.partialorder %v7560_v52, inf }
 0x2ff   : > { %v3311_v23 = vpop.f32.mrb[53].mxu1  ;;  %vm3529_vm14 = vcmp.eq.f32.partialorder %v7560_v52, 0.0  ;;  %5936 = vrsqrt.f32 %v7604_v16  ;;  %v7619_v1 = vpop.eup %5920  ;;  %v3505_v39 = vmul.f32 %v5919_v42, %v7555_v27  ;;  %v3530_v61 = vand.u32 2147483648, %v7560_v52 }
 0x300   : > { %5938 = vrsqrt.f32 %v3664_v19  ;;  %vm3520_vm15 = vcmp.eq.f32.partialorder %v7587_v26, inf  ;;  %v7626_v34 = vpop.eup %5922  ;;  %vm3522_vm0 = vcmp.eq.f32.partialorder %v7587_v26, 0.0  ;;  %v7629_v28 = vadd.f32 2.0, %v3387_v0 }
 0x301   : > { %5940 = vrsqrt.f32 %v3667_v44  ;;  %v7631_v62 = vadd.f32 2.0, %v3386_v35  ;;  %v5925_v45 = vpop.eup %5924  ;;  %v3669_v17 = vmul.f32 %v3517_v25, %v7534_v30  ;;  %v3507_v19 = vsel %vm3506_vm11, %v7555_v27, %v3505_v39  ;;  %v4141_v35 = vld [vmem:[%s8385_s4 + $0x8] sm:$0xff] }
 0x302   : > { %v7617_v31 = vpop.f32.mrb[54].mxu1  ;;  %5942 = vrsqrt.f32 %v3666_v6  ;;  %v3389_v56 = vmul.f32 2e-05, %v5540_v5  ;;  %v7637_v50 = vpop.eup %5926  ;;  %v3526_v42 = vmul.f32 %v5925_v45, %v7560_v52  ;;  %v3388_v44 = vmul.f32 2e-05, %v3301_v12  ;;  %4218 = vmatprep.mubr.f32.mxu1 %v4141_v35 }
 0x303   : > { %v7624_v33 = vpop.f32.mrb[55].mxu1  ;;  %5944 = vrsqrt.f32 %v7629_v28  ;;  %v3391_v0 = vmul.f32 2e-05, %v5543_v29  ;;  %v7646_v30 = vpop.eup %5928  ;;  %v3523_v6 = vand.u32 2147483648, %v7587_v26  ;;  %vm3541_vm1 = vcmp.eq.f32.partialorder %v7601_v10, inf }
 0x304   : > { %vm3543_vm3 = vcmp.eq.f32.partialorder %v7601_v10, 0.0  ;;  %5946 = vrsqrt.f32 %v7631_v62  ;;  %v3510_v29 = vsel %vm3508_vm12, %v3509_v18, %v3507_v19  ;;  %v3528_v25 = vsel %vm3527_vm13, %v7560_v52, %v3526_v42 }
 0x305   : > { %v5931_v12 = vpop.eup %5930  ;;  %v3544_v39 = vand.u32 2147483648, %v7601_v10  ;;  %vm3534_vm4 = vcmp.eq.f32.partialorder %v7604_v16, inf  ;;  %v3531_v46 = vsel %vm3529_vm14, %v3530_v61, %v3528_v25  ;;  %v7666_v35 = vadd.f32 2.0, %v3389_v56 }
 0x306   : > { %v7641_v21 = vpop.f32.mrb[56].mxu1  ;;  %v7661_v45 = vpop.eup %5932  ;;  %v3519_v60 = vmul.f32 %v5931_v12, %v7587_v26  ;;  %v3390_v53 = vmul.f32 2e-05, %v3311_v23  ;;  %5948 = vrsqrt.f32 %v3669_v17  ;;  %vm3536_vm5 = vcmp.eq.f32.partialorder %v7604_v16, 0.0 }
 0x307   : > { %v7652_v5 = vpop.f32.mrb[57].mxu1  ;;  %v7669_v18 = vadd.f32 2.0, %v3388_v44  ;;  %v7671_v19 = vadd.f32 2.0, %v3391_v0  ;;  %v3668_v43 = vmul.f32 %v3510_v29, %v7555_v27  ;;  %v3537_v56 = vand.u32 2147483648, %v7604_v16 }
 0x308   : > { %v5935_v20 = vpop.eup %5934  ;;  %v3521_v61 = vsel %vm3520_vm15, %v7587_v26, %v3519_v60  ;;  %5950 = vrsqrt.f32 %v7666_v35  ;;  %v3671_v44 = vmul.f32 %v3531_v46, %v7560_v52  ;;  %vm3555_vm6 = vcmp.eq.f32.partialorder %v7629_v28, inf }
 0x309   : > { %v5937_v17 = vpop.eup %5936  ;;  %v3524_v0 = vsel %vm3522_vm0, %v3523_v6, %v3521_v61  ;;  %v3540_v12 = vmul.f32 %v5935_v20, %v7601_v10  ;;  %v3558_v29 = vand.u32 2147483648, %v7629_v28  ;;  %5952 = vrsqrt.f32 %v7669_v18 }
 0x30a   : > { %v7673_v42 = vpop.f32.mrb[58].mxu1  ;;  %v7688_v27 = vpop.eup %5938  ;;  %v3533_v60 = vmul.f32 %v5937_v17, %v7604_v16  ;;  %v7693_v25 = vadd.f32 2.0, %v3390_v53  ;;  %vm3557_vm7 = vcmp.eq.f32.partialorder %v7629_v28, 0.0  ;;  %vm3548_vm8 = vcmp.eq.f32.partialorder %v7631_v62, inf }
 0x30b   : > { %v7681_v23 = vpop.f32.mrb[59].mxu1  ;;  %v7695_v32 = vpop.eup %5940  ;;  %v3542_v46 = vsel %vm3541_vm1, %v7601_v10, %v3540_v12  ;;  %v3551_v20 = vand.u32 2147483648, %v7631_v62  ;;  %5954 = vrsqrt.f32 %v7671_v19  ;;  %v3670_v53 = vmul.f32 %v3524_v0, %v7587_v26 }
 0x30c   : > { %8542 = vst [vmem:[#allocation3_spill] sm:$0xff] %v7695_v32  ;;  %v7706_v6 = vpop.eup %5942  ;;  %5956 = vrsqrt.f32 %v3668_v43  ;;  %v3545_v61 = vsel %vm3543_vm3, %v3544_v39, %v3542_v46  ;;  %v3535_v17 = vsel %vm3534_vm4, %v7604_v16, %v3533_v60  ;;  %vm3550_vm9 = vcmp.eq.f32.partialorder %v7631_v62, 0.0 }
 0x30d   : > { %8543 = vst [vmem:[#allocation4_spill] sm:$0xff] %v7706_v6  ;;  %v5945_v22 = vpop.eup %5944  ;;  %5958 = vrsqrt.f32 %v3671_v44  ;;  %vm3569_vm10 = vcmp.eq.f32.partialorder %v7666_v35, inf  ;;  %vm3571_vm11 = vcmp.eq.f32.partialorder %v7666_v35, 0.0  ;;  %v3572_v43 = vand.u32 2147483648, %v7666_v35 }
 0x30e   : > { %v7704_v52 = vpop.f32.mrb[60].mxu1  ;;  %v5947_v26 = vpop.eup %5946  ;;  %v3538_v39 = vsel %vm3536_vm5, %v3537_v56, %v3535_v17  ;;  %v3554_v0 = vmul.f32 %v5945_v22, %v7629_v28  ;;  %vm3562_vm12 = vcmp.eq.f32.partialorder %v7669_v18, inf  ;;  %5960 = vrsqrt.f32 %v7693_v25 }
 0x30f   : > { %v7715_v12 = vpop.f32.mrb[61].mxu1  ;;  %v3673_v60 = vmul.f32 %v3545_v61, %v7601_v10  ;;  %v3547_v44 = vmul.f32 %v5947_v26, %v7631_v62  ;;  %vm3564_vm13 = vcmp.eq.f32.partialorder %v7669_v18, 0.0  ;;  %v3565_v46 = vand.u32 2147483648, %v7669_v18 }
 0x310   : > { %vm3583_vm14 = vcmp.eq.f32.partialorder %v7671_v19, inf  ;;  %5962 = vrsqrt.f32 %v3670_v53  ;;  %vm3585_vm15 = vcmp.eq.f32.partialorder %v7671_v19, 0.0  ;;  %v3393_v22 = vmul.f32 2e-05, %v7617_v31  ;;  %v7737_v10 = vpop.eup %5948 }
 0x311   : > { %v3392_v56 = vmul.f32 2e-05, %v7624_v33  ;;  %8544 = vst [vmem:[#allocation5_spill] sm:$0xff] %v7737_v10  ;;  %v3672_v61 = vmul.f32 %v3538_v39, %v7604_v16  ;;  %v3556_v26 = vsel %vm3555_vm6, %v7629_v28, %v3554_v0  ;;  %v3586_v6 = vand.u32 2147483648, %v7671_v19 }
 0x312   : > { %v7730_v47 = vpop.f32.mrb[62].mxu1  ;;  %v3395_v53 = vmul.f32 2e-05, %v7641_v21  ;;  %v5951_v11 = vpop.eup %5950  ;;  %v3549_v31 = vsel %vm3548_vm8, %v7631_v62, %v3547_v44  ;;  %v7748_v33 = vadd.f32 2.0, %v3393_v22  ;;  %v3394_v10 = vmul.f32 2e-05, %v7652_v5 }
 0x313   : > { %v7735_v17 = vpop.f32.mrb[63].mxu1  ;;  %v7750_v37 = vadd.f32 2.0, %v3392_v56  ;;  %5964 = vrsqrt.f32 %v3673_v60  ;;  %v3568_v16 = vmul.f32 %v5951_v11, %v7666_v35  ;;  %vm3576_vm0 = vcmp.eq.f32.partialorder %v7693_v25, inf  ;;  %v5953_v0 = vpop.eup %5952 }
 0x314   : > { %v7755_v39 = vadd.f32 2.0, %v3395_v53  ;;  %v3559_v21 = vsel %vm3557_vm7, %v3558_v29, %v3556_v26  ;;  %vm3578_vm1 = vcmp.eq.f32.partialorder %v7693_v25, 0.0  ;;  %v3579_v44 = vand.u32 2147483648, %v7693_v25 }
 0x315   : > { %5966 = vrsqrt.f32 %v7748_v33  ;;  %v5955_v22 = vpop.eup %5954  ;;  %v3552_v5 = vsel %vm3550_vm9, %v3551_v20, %v3549_v31  ;;  %v3570_v11 = vsel %vm3569_vm10, %v7666_v35, %v3568_v16  ;;  %v3561_v60 = vmul.f32 %v5953_v0, %v7669_v18 }
 0x316   : > { %5968 = vrsqrt.f32 %v7750_v37  ;;  %v7769_v56 = vpop.eup %5956  ;;  %v3573_v29 = vsel %vm3571_vm11, %v3572_v43, %v3570_v11  ;;  %v3582_v26 = vmul.f32 %v5955_v22, %v7671_v19  ;;  %v7774_v53 = vadd.f32 2.0, %v3394_v10 }
 0x317   : > { %5970 = vrsqrt.f32 %v3672_v61  ;;  %v7776_v32 = vpop.eup %5958  ;;  %v7779_v20 = vmul.f32 %v3559_v21, %v7629_v28  ;;  %v3677_v31 = vmul.f32 %v3573_v29, %v7666_v35  ;;  %v3563_v16 = vsel %vm3562_vm12, %v7669_v18, %v3561_v60 }
 0x318   : > { %5972 = vrsqrt.f32 %v7755_v39  ;;  %v5961_v61 = vpop.eup %5960  ;;  %v3674_v43 = vmul.f32 %v3552_v5, %v7631_v62  ;;  %v3566_v10 = vsel %vm3564_vm13, %v3565_v46, %v3563_v16  ;;  %v3584_v0 = vsel %vm3583_vm14, %v7671_v19, %v3582_v26 }
 0x319   : > { %vm3597_vm3 = vcmp.eq.f32.partialorder %v7748_v33, inf  ;;  %v3676_v28 = vmul.f32 %v3566_v10, %v7669_v18  ;;  %v3587_v35 = vsel %vm3585_vm15, %v3586_v6, %v3584_v0  ;;  %v3575_v21 = vmul.f32 %v5961_v61, %v7693_v25 }
 0x31a   : > { %vm3599_vm4 = vcmp.eq.f32.partialorder %v7748_v33, 0.0  ;;  %v7798_v22 = vpop.eup %5962  ;;  %v3679_v62 = vmul.f32 %v3587_v35, %v7671_v19  ;;  %v3600_v46 = vand.u32 2147483648, %v7748_v33  ;;  %vm3590_vm5 = vcmp.eq.f32.partialorder %v7750_v37, inf }
 0x31b   : > { %5974 = vrsqrt.f32 %v7774_v53  ;;  %v3577_v18 = vsel %vm3576_vm0, %v7693_v25, %v3575_v21  ;;  %vm3592_vm6 = vcmp.eq.f32.partialorder %v7750_v37, 0.0  ;;  %v3397_v6 = vmul.f32 2e-05, %v7673_v42 }
 0x31c   : > { %5976 = vrsqrt.f32 %v3677_v31  ;;  %v3580_v5 = vsel %vm3578_vm1, %v3579_v44, %v3577_v18  ;;  %v3396_v19 = vmul.f32 2e-05, %v7681_v23  ;;  %v3399_v11 = vmul.f32 2e-05, %v7704_v52 }
 0x31d   : > { %5978 = vrsqrt.f32 %v3676_v28  ;;  %v7813_v60 = vpop.eup %5964  ;;  %v3678_v29 = vmul.f32 %v3580_v5, %v7693_v25  ;;  %v3593_v26 = vand.u32 2147483648, %v7750_v37  ;;  %v7817_v31 = vadd.f32 2.0, %v3397_v6 }
 0x31e   : > { %5980 = vrsqrt.f32 %v3679_v62  ;;  %vm3611_vm7 = vcmp.eq.f32.partialorder %v7755_v39, inf  ;;  %v7820_v42 = vadd.f32 2.0, %v3396_v19  ;;  %v7822_v61 = vadd.f32 2.0, %v3399_v11 }
 0x31f   : > { %v5967_v16 = vpop.eup %5966  ;;  %5982 = vrsqrt.f32 %v3674_v43  ;;  %vm3613_vm8 = vcmp.eq.f32.partialorder %v7755_v39, 0.0  ;;  %v3614_v25 = vand.u32 2147483648, %v7755_v39  ;;  %vm3604_vm9 = vcmp.eq.f32.partialorder %v7774_v53, inf }
 0x320   : > { %v5969_v23 = vpop.eup %5968  ;;  %5984 = vrsqrt.f32 %v3678_v29  ;;  %v3596_v52 = vmul.f32 %v5967_v16, %v7748_v33  ;;  %v3398_v0 = vmul.f32 2e-05, %v7715_v12  ;;  %vm3606_vm10 = vcmp.eq.f32.partialorder %v7774_v53, 0.0 }
 0x321   : > { %v5971_v44 = vpop.eup %5970  ;;  %v3589_v10 = vmul.f32 %v5969_v23, %v7750_v37  ;;  %5986 = vrsqrt.f32 %v7817_v31  ;;  %v3401_v35 = vmul.f32 2e-05, %v7730_v47  ;;  %v3607_v5 = vand.u32 2147483648, %v7774_v53 }
 0x322   : > { %v5973_v28 = vpop.eup %5972  ;;  %v3598_v43 = vsel %vm3597_vm3, %v7748_v33, %v3596_v52  ;;  %5988 = vrsqrt.f32 %v7820_v42  ;;  %v3400_v47 = vmul.f32 2e-05, %v7735_v17  ;;  %vm3625_vm11 = vcmp.eq.f32.partialorder %v7817_v31, inf }
 0x323   : > { %v3601_v21 = vsel %vm3599_vm4, %v3600_v46, %v3598_v43  ;;  %v3591_v62 = vsel %vm3590_vm5, %v7750_v37, %v3589_v10  ;;  %v3610_v12 = vmul.f32 %v5973_v28, %v7755_v39  ;;  %5990 = vrsqrt.f32 %v7822_v61 }
 0x324   : > { %v3681_v18 = vmul.f32 %v3601_v21, %v7748_v33  ;;  %v3594_v6 = vsel %vm3592_vm6, %v3593_v26, %v3591_v62  ;;  %v3628_v29 = vand.u32 2147483648, %v7817_v31  ;;  %v7855_v16 = vadd.f32 2.0, %v3398_v0 }
 0x325   : > { %v5975_v19 = vpop.eup %5974  ;;  %v3680_v46 = vmul.f32 %v3594_v6, %v7750_v37  ;;  %v3612_v11 = vsel %vm3611_vm7, %v7755_v39, %v3610_v12  ;;  %vm3627_vm12 = vcmp.eq.f32.partialorder %v7817_v31, 0.0  ;;  %v7861_v37 = vadd.f32 2.0, %v3401_v35 }
 0x326   : > { %v5977_v33 = vpop.eup %5976  ;;  %5992 = vrsqrt.f32 %v3681_v18  ;;  %v3615_v26 = vsel %vm3613_vm8, %v3614_v25, %v3612_v11  ;;  %v3603_v17 = vmul.f32 %v5975_v19, %v7774_v53  ;;  %vm3618_vm13 = vcmp.eq.f32.partialorder %v7820_v42, inf }
 0x327   : > { %v5979_v23 = vpop.eup %5978  ;;  %5994 = vrsqrt.f32 %v3680_v46  ;;  %v3683_v52 = vmul.f32 %v3615_v26, %v7755_v39  ;;  %vm3620_vm14 = vcmp.eq.f32.partialorder %v7820_v42, 0.0  ;;  %v3621_v25 = vand.u32 2147483648, %v7820_v42 }
 0x328   : > { %v5981_v10 = vpop.eup %5980  ;;  %v3605_v0 = vsel %vm3604_vm9, %v7774_v53, %v3603_v17  ;;  %vm3639_vm15 = vcmp.eq.f32.partialorder %v7822_v61, inf  ;;  %5996 = vrsqrt.f32 %v7855_v16  ;;  %vm3641_vm0 = vcmp.eq.f32.partialorder %v7822_v61, 0.0 }
 0x329   : > { %v5983_v28 = vpop.eup %5982  ;;  %5998 = vrsqrt.f32 %v3683_v52  ;;  %v3608_v39 = vsel %vm3606_vm10, %v3607_v5, %v3605_v0  ;;  %v3642_v43 = vand.u32 2147483648, %v7822_v61  ;;  %v3635_v62 = vand.u32 2147483648, %v7855_v16 }
 0x32a   : > { %v5985_v35 = vpop.eup %5984  ;;  %v3682_v21 = vmul.f32 %v3608_v39, %v7774_v53  ;;  %6000 = vrsqrt.f32 %v7861_v37  ;;  %v7879_v12 = vadd.f32 2.0, %v3400_v47  ;;  %v3656_v6 = vand.u32 2147483648, %v7861_v37 }
 0x32b   : > { %v5987_v18 = vpop.eup %5986  ;;  %6002 = vrsqrt.f32 %v7779_v20  ;;  %v7885_v5 = vmul.f32 %v7776_v32, %v7347_v38  ;;  %v7888_v19 = vmul.f32 %v5983_v28, %v7376_v3  ;;  %vm3632_vm1 = vcmp.eq.f32.partialorder %v7855_v16, inf }
 0x32c   : > { %v5989_v46 = vpop.eup %5988  ;;  %6004 = vrsqrt.f32 %v3682_v21  ;;  %v3624_v53 = vmul.f32 %v5987_v18, %v7817_v31  ;;  %v7893_v47 = vmul.f32 %v5971_v44, %v7364_v24  ;;  %v7897_v11 = vmul.f32 %v7813_v60, %v7359_v49 }
 0x32d   : > { %v5991_v20 = vpop.eup %5990  ;;  %v3617_v32 = vmul.f32 %v5989_v46, %v7820_v42  ;;  %vm3634_vm3 = vcmp.eq.f32.partialorder %v7855_v16, 0.0  ;;  %6006 = vrsqrt.f32 %v7879_v12  ;;  %v3649_v38 = vand.u32 2147483648, %v7879_v12 }
 0x32e   : > { %v7904_v3 = vmul.f32 %v5979_v23, %v7388_v63  ;;  %v3626_v24 = vsel %vm3625_vm11, %v7817_v31, %v3624_v53  ;;  %v3638_v44 = vmul.f32 %v5991_v20, %v7822_v61  ;;  %vm3653_vm4 = vcmp.eq.f32.partialorder %v7861_v37, inf }
 0x32f   : > { %v3741_v49 = vmul.f32 %v5977_v33, %v7383_v8  ;;  %v7913_v60 = vmul.f32 %v5985_v35, %v7400_v7  ;;  %v3629_v26 = vsel %vm3627_vm12, %v3628_v29, %v3626_v24  ;;  %v3619_v63 = vsel %vm3618_vm13, %v7820_v42, %v3617_v32 }
 0x330   : > { %vm3655_vm5 = vcmp.eq.f32.partialorder %v7861_v37, 0.0  ;;  %v3743_v17 = vmul.f32 %v5981_v10, %v7395_v14  ;;  %v3766_v23 = vmax.f32 %v7893_v47, %v7888_v19  ;;  %v5993_v52 = vpop.eup %5992  ;;  %v3685_v8 = vmul.f32 %v3629_v26, %v7817_v31 }
 0x331   : > { %v3622_v7 = vsel %vm3620_vm14, %v3621_v25, %v3619_v63  ;;  %v3640_v29 = vsel %vm3639_vm15, %v7822_v61, %v3638_v44  ;;  %v3768_v33 = vmax.f32 %v7888_v19, %v7904_v3  ;;  %v5995_v0 = vpop.eup %5994  ;;  %vm3646_vm6 = vcmp.eq.f32.partialorder %v7879_v12, inf }
 0x332   : > { %v3684_v28 = vmul.f32 %v3622_v7, %v7820_v42  ;;  %v3643_v14 = vsel %vm3641_vm0, %v3642_v43, %v3640_v29  ;;  %v7937_v31 = vmul.f32 %v5993_v52, %v7407_v59  ;;  %v3770_v10 = vmax.f32 %v7904_v3, %v7913_v60  ;;  %v5997_v25 = vpop.eup %5996 }
 0x333   : > { %6008 = vrsqrt.f32 %v3685_v8  ;;  %v3687_v39 = vmul.f32 %v3643_v14, %v7822_v61  ;;  %vm3648_vm7 = vcmp.eq.f32.partialorder %v7879_v12, 0.0  ;;  %v7944_v35 = vmul.f32 %v5995_v0, %v7412_v4  ;;  %v5999_v21 = vpop.eup %5998 }
 0x334   : > { %v3771_v42 = vmax.f32 %v3741_v49, %v3743_v17  ;;  %6010 = vrsqrt.f32 %v3684_v28  ;;  %v3631_v43 = vmul.f32 %v5997_v25, %v7855_v16  ;;  %v3773_v59 = vmax.f32 %v3743_v17, %v7937_v31  ;;  %v6001_v46 = vpop.eup %6000 }
 0x335   : > { %v7949_v18 = vmax.f32 %v7888_v19, %v3770_v10  ;;  %6012 = vrsqrt.f32 %v3687_v39  ;;  %v7952_v53 = vmul.f32 %v5999_v21, %v7419_v57  ;;  %v3772_v61 = vmax.f32 %v7913_v60, %v7944_v35  ;;  %v6003_v20 = vpop.eup %6002 }
 0x336   : > { %v3722_v4 = vmul.f32 %v7589_v55, %v7283_v51  ;;  %v3633_v32 = vsel %vm3632_vm1, %v7855_v16, %v3631_v43  ;;  %v3652_v24 = vmul.f32 %v6001_v46, %v7861_v37  ;;  %v7962_v44 = vmax.f32 %v3741_v49, %v3773_v59  ;;  %v6005_v63 = vpop.eup %6004 }
 0x337   : > { %v3878_v26 = vrot.slane %v7949_v18, 1  ;;  %v3636_v57 = vsel %vm3634_vm3, %v3635_v62, %v3633_v32  ;;  %v3739_v52 = vmul.f32 %v6003_v20, %v7371_v48  ;;  %v3775_v51 = vmax.f32 %v7937_v31, %v7952_v53  ;;  %v6007_v8 = vpop.eup %6006 }
 0x338   : > { %v7973_v55 = vmax.f32 %v7904_v3, %v3772_v61  ;;  %v3686_v7 = vmul.f32 %v3636_v57, %v7855_v16  ;;  %v3654_v29 = vsel %vm3653_vm4, %v7861_v37, %v3652_v24  ;;  %v3884_v0 = vrot.slane %v7962_v44, 1  ;;  %v8545_v57 = vld [vmem:[#allocation3_spill] sm:$0xff] }
 0x339   : > { %v3723_v62 = vmul.f32 %v7574_v9, %v7281_v40  ;;  %v3657_v48 = vsel %vm3655_vm5, %v3656_v6, %v3654_v29  ;;  %v3645_v28 = vmul.f32 %v6007_v8, %v7879_v12  ;;  %v3767_v14 = vmax.f32 %v7897_v11, %v3739_v52 }
 0x33a   : > { %v3769_v10 = vmax.f32 %v3739_v52, %v3741_v49  ;;  %6014 = vrsqrt.f32 %v3686_v7  ;;  %v3689_v16 = vmul.f32 %v3657_v48, %v7861_v37  ;;  %v3801_v25 = vmax.f32 %v3739_v52, %v3771_v42  ;;  %v8546_v48 = vld [vmem:[#allocation21_spill] sm:$0xff] }
 0x33b   : > { %v7989_v39 = vmax.f32 %v3743_v17, %v3775_v51  ;;  %v3647_v40 = vsel %vm3646_vm6, %v7879_v12, %v3645_v28  ;;  %v7995_v9 = vmax.f32 %v7885_v5, %v3767_v14  ;;  %v3882_v21 = vrot.slane %v7973_v55, 1 }
 0x33c   : > { %v7998_v6 = vmax.f32 %v7897_v11, %v3769_v10  ;;  %6016 = vrsqrt.f32 %v3689_v16  ;;  %v3650_v37 = vsel %vm3648_vm7, %v3649_v38, %v3647_v40  ;;  %v3880_v49 = vrot.slane %v3801_v25, 1 }
 0x33d   : > { %v3724_v17 = vmul.f32 %v7626_v34, %v7293_v2  ;;  %v6009_v42 = vpop.eup %6008  ;;  %v3688_v43 = vmul.f32 %v3650_v37, %v7879_v12  ;;  %v3885_v59 = vsel %vm328_vm2, %v3882_v21, %v3884_v0  ;;  %v3725_v46 = vmul.f32 %v7619_v1, %v7291_v13 }
 0x33e   : > { %v3726_v61 = vmul.f32 %v7646_v30, %v7304_v41  ;;  %v6011_v20 = vpop.eup %6010  ;;  %v3881_v38 = vsel %vm328_vm2, %v3878_v26, %v3880_v49  ;;  %v3883_v2 = vsel %vm328_vm2, %v3880_v49, %v3882_v21  ;;  %v3963_v34 = vmax.f32 %v7973_v55, %v3885_v59 }
 0x33f   : > { %v3727_v12 = vmul.f32 %v7637_v50, %v7299_v54  ;;  %v8022_v32 = vpop.eup %6012  ;;  %6018 = vrsqrt.f32 %v3688_v43  ;;  %v3961_v13 = vmax.f32 %v7949_v18, %v3881_v38  ;;  %v3962_v1 = vmax.f32 %v3801_v25, %v3883_v2  ;;  %v8547_v2 = vld [vmem:[#allocation2_spill] sm:$0xff] }
 0x340   : > { %v8027_v41 = vmul.f32 %v7688_v27, %v7316_v15  ;;  %v8029_v30 = vrot.slane %v3963_v34, 1  ;;  %v8033_v24 = vmul.f32 %v7661_v45, %v7311_v36  ;;  %v8037_v52 = vmul.f32 %v8545_v57, %v7323_v58 }
 0x341   : > { %v3754_v54 = vmax.f32 %v3724_v17, %v3726_v61  ;;  %v8039_v50 = vrot.slane %v3961_v13, 1  ;;  %v4044_v51 = vrot.slane %v3962_v1, 1  ;;  %v3755_v8 = vmax.f32 %v3725_v46, %v3727_v12 }
 0x342   : > { %v3756_v7 = vmax.f32 %v3726_v61, %v8027_v41  ;;  %v3757_v15 = vmax.f32 %v3727_v12, %v8033_v24  ;;  %v3759_v27 = vmax.f32 %v8033_v24, %v8037_v52  ;;  %v8046_v36 = vmul.f32 %v6005_v63, %v8546_v48  ;;  %v8549_v48 = vld [vmem:[#allocation25_spill] sm:$0xff] }
 0x343   : > { %v3784_v29 = vmax.f32 %v3722_v4, %v3754_v54  ;;  %v4045_v58 = vsel %vm328_vm2, %v8039_v50, %v4044_v51  ;;  %v4047_v45 = vsel %vm328_vm2, %v4044_v51, %v8029_v30  ;;  %v3785_v28 = vmax.f32 %v3723_v62, %v3755_v8 }
 0x344   : > { %v8052_v14 = vmax.f32 %v3724_v17, %v3756_v7  ;;  %v8054_v10 = vpop.eup %6014  ;;  %v4124_v16 = vmax.f32 %v7949_v18, %v4045_v58  ;;  %v4125_v40 = vmax.f32 %v3801_v25, %v4047_v45  ;;  %v8057_v21 = vmax.f32 %v3725_v46, %v3757_v15  ;;  %v8548_v25 = vld [vmem:[#allocation4_spill] sm:$0xff] }
 0x345   : > { %v8059_v4 = vmax.f32 %v3727_v12, %v3759_v27  ;;  %v3847_v63 = vrot.slane %v3784_v29, 1  ;;  %v3848_v37 = vrot.slane %v3785_v28, 1  ;;  %v3774_v43 = vmax.f32 %v7944_v35, %v8046_v36 }
 0x346   : > { %v3850_v49 = vrot.slane %v8052_v14, 1  ;;  %v8064_v59 = vpop.eup %6016  ;;  %v5591_v62 = vpack.c.bf16 %v4125_v40, %v4124_v16  ;;  %v3852_v17 = vrot.slane %v8057_v21, 1  ;;  %v3888_v38 = vrot.slane %v7989_v39, 1 }
 0x347   : > { %v8070_v46 = vmul.f32 %v8548_v25, %v8547_v2  ;;  %v3849_v34 = vsel %vm328_vm2, %v3847_v63, %v3848_v37  ;;  %v8075_v13 = vmax.f32 %v7913_v60, %v3774_v43  ;;  %v3856_v1 = vrot.slane %v8059_v4, 1  ;;  %v8550_v60 = vld [vmem:[#allocation24_spill] sm:$0xff] }
 0x348   : > { %v3851_v12 = vsel %vm328_vm2, %v3848_v37, %v3850_v49  ;;  %5592 = vmatprep.subr.bf16.mxu1 %v5591_v62  ;;  %v3853_v57 = vsel %vm328_vm2, %v3850_v49, %v3852_v17  ;;  %v3945_v54 = vmax.f32 %v3784_v29, %v3849_v34  ;;  %v8086_v58 = vmul.f32 %v6011_v20, %v8549_v48  ;;  %v8551_v37 = vld [vmem:[#allocation15_spill] sm:$0xff] }
 0x349   : > { %v3946_v51 = vmax.f32 %v3785_v28, %v3851_v12  ;;  %v3758_v8 = vmax.f32 %v8027_v41, %v8070_v46  ;;  %v8081_v7 = vpop.eup %6018  ;;  %v3947_v15 = vmax.f32 %v8052_v14, %v3853_v57  ;;  %v3886_v27 = vrot.slane %v8075_v13, 1 }
 0x34a   : > { %v8089_v45 = vmul.f32 %v6009_v42, %v8550_v60  ;;  %v4011_v16 = vrot.slane %v3945_v54, 1  ;;  %v8095_v49 = vmul.f32 %v7769_v56, %v8551_v37  ;;  %v3776_v20 = vmax.f32 %v8046_v36, %v8086_v58 }
 0x34b   : > { %v4012_v40 = vrot.slane %v3946_v51, 1  ;;  %v8091_v63 = vmax.f32 %v3726_v61, %v3758_v8  ;;  %v4014_v43 = vrot.slane %v3947_v15, 1  ;;  %v3887_v62 = vsel %vm328_vm2, %v3884_v0, %v3886_v27 }
 0x34c   : > { %v3889_v2 = vsel %vm328_vm2, %v3886_v27, %v3888_v38  ;;  %v3964_v25 = vmax.f32 %v7962_v44, %v3887_v62  ;;  %v3777_v57 = vmax.f32 %v7952_v53, %v8089_v45  ;;  %v8111_v0 = vmax.f32 %v7944_v35, %v3776_v20 }
 0x34d   : > { %v4013_v42 = vsel %vm328_vm2, %v4011_v16, %v4012_v40  ;;  %v3965_v61 = vmax.f32 %v8075_v13, %v3889_v2  ;;  %v3854_v34 = vrot.slane %v8091_v63, 1  ;;  %v4015_v56 = vsel %vm328_vm2, %v4012_v40, %v4014_v43 }
 0x34e   : > { %v4108_v12 = vmax.f32 %v3784_v29, %v4013_v42  ;;  %v4109_v54 = vmax.f32 %v3785_v28, %v4015_v56  ;;  %v4048_v51 = vrot.slane %v3964_v25, 1  ;;  %v8119_v60 = vmax.f32 %v7937_v31, %v3777_v57  ;;  %v8552_v25 = vld [vmem:[#allocation12_spill] sm:$0xff] }
 0x34f   : > { %v4050_v8 = vrot.slane %v3965_v61, 1  ;;  %v3855_v15 = vsel %vm328_vm2, %v3852_v17, %v3854_v34  ;;  %v3857_v27 = vsel %vm328_vm2, %v3854_v34, %v3856_v1  ;;  %v3890_v29 = vrot.slane %v8111_v0, 1  ;;  %v8553_v61 = vld [vmem:[#allocation5_spill] sm:$0xff] }
 0x350   : > { %v3948_v48 = vmax.f32 %v8057_v21, %v3855_v15  ;;  %v5593_v16 = vpack.c.bf16 %v4109_v54, %v4108_v12  ;;  %v4049_v35 = vsel %vm328_vm2, %v8029_v30, %v4048_v51  ;;  %v3949_v40 = vmax.f32 %v8091_v63, %v3857_v27 }
 0x351   : > { %v4051_v28 = vsel %vm328_vm2, %v4048_v51, %v4050_v8  ;;  %v4126_v17 = vmax.f32 %v7973_v55, %v4049_v35  ;;  %v3891_v2 = vsel %vm328_vm2, %v3888_v38, %v3890_v29  ;;  %v3892_v20 = vrot.slane %v8119_v60, 1 }
 0x352   : > { %v4127_v37 = vmax.f32 %v7962_v44, %v4051_v28  ;;  %v4016_v62 = vrot.slane %v3948_v48, 1  ;;  %5594 = vmatpush3.bf16.msra.mxu1 %v5593_v16  ;;  %v4018_v31 = vrot.slane %v3949_v40, 1  ;;  %v3966_v42 = vmax.f32 %v7989_v39, %v3891_v2  ;;  %v8554_v44 = vld [vmem:[#allocation29_spill] sm:$0xff]  ;;  %v8555_v16 = vld [vmem:[#allocation28_spill] sm:$0xff] }
 0x353   : > { %v8133_v30 = vmul.f32 %v8553_v61, %v8552_v25  ;;  %v3760_v55 = vmax.f32 %v8070_v46, %v8095_v49  ;;  %v8140_v12 = vmul.f32 %v8054_v10, %v8554_v44  ;;  %v3893_v54 = vsel %vm328_vm2, %v3890_v29, %v3892_v20  ;;  %v8556_v29 = vld [vmem:[#allocation18_spill] sm:$0xff] }
 0x354   : > { %v5595_v34 = vpack.c.bf16 %v4127_v37, %v4126_v17  ;;  %v4017_v56 = vsel %vm328_vm2, %v4014_v43, %v4016_v62  ;;  %v4019_v38 = vsel %vm328_vm2, %v4016_v62, %v4018_v31  ;;  %v4052_v51 = vrot.slane %v3966_v42, 1 }
 0x355   : > { %v4110_v57 = vmax.f32 %v8052_v14, %v4017_v56  ;;  %v4111_v15 = vmax.f32 %v8057_v21, %v4019_v38  ;;  %v3967_v27 = vmax.f32 %v8111_v0, %v3893_v54  ;;  %v3761_v43 = vmax.f32 %v8037_v52, %v8133_v30 }
 0x356   : > { %5596 = vmatprep.subr.bf16.mxu1 %v5595_v34  ;;  %v8150_v48 = vmax.f32 %v8027_v41, %v3760_v55  ;;  %v4053_v10 = vsel %vm328_vm2, %v4050_v8, %v4052_v51  ;;  %v8155_v35 = vmul.f32 %v8022_v32, %v8555_v16  ;;  %v3778_v14 = vmax.f32 %v8086_v58, %v8140_v12 }
 0x357   : > { %v8161_v21 = vmul.f32 %v7798_v22, %v8556_v29  ;;  %v5597_v28 = vpack.c.bf16 %v4111_v15, %v4110_v57  ;;  %v4054_v40 = vrot.slane %v3967_v27, 1  ;;  %v4128_v17 = vmax.f32 %v8075_v13, %v4053_v10  ;;  %v8557_v13 = vld [vmem:[#allocation35_spill] sm:$0xff] }
 0x358   : > { %v8165_v41 = vmax.f32 %v8033_v24, %v3761_v43  ;;  %v3858_v8 = vrot.slane %v8150_v48, 1  ;;  %v3779_v32 = vmax.f32 %v8089_v45, %v8155_v35  ;;  %v8171_v37 = vmax.f32 %v8046_v36, %v3778_v14 }
 0x359   : > { %v3762_v62 = vmax.f32 %v8095_v49, %v8161_v21  ;;  %5598 = vmatpush3.bf16.msra.mxu1 %v5597_v28  ;;  %v4055_v22 = vsel %vm328_vm2, %v4052_v51, %v4054_v40  ;;  %v3763_v24 = vmax.f32 %v8133_v30, %v7885_v5  ;;  %v3752_v42 = vmul.f32 %v8081_v7, %v8557_v13 }
 0x35a   : > { %v3860_v2 = vrot.slane %v8165_v41, 1  ;;  %v4129_v25 = vmax.f32 %v7989_v39, %v4055_v22  ;;  %v3859_v36 = vsel %vm328_vm2, %v3856_v1, %v3858_v8  ;;  %v8186_v61 = vmax.f32 %v7952_v53, %v3779_v32 }
 0x35b   : > { %v3894_v34 = vrot.slane %v8171_v37, 1  ;;  %v3950_v55 = vmax.f32 %v8059_v4, %v3859_v36  ;;  %v8192_v44 = vmax.f32 %v8070_v46, %v3762_v62  ;;  %v8195_v7 = vmax.f32 %v8037_v52, %v3763_v24  ;;  %v8558_v52 = vld [vmem:[#allocation32_spill] sm:$0xff] }
 0x35c   : > { %v3861_v56 = vsel %vm328_vm2, %v3858_v8, %v3860_v2  ;;  %v5599_v39 = vpack.c.bf16 %v4129_v25, %v4128_v17  ;;  %v3896_v53 = vrot.slane %v8186_v61, 1  ;;  %v3753_v43 = vmul.f32 %v8064_v59, %v8558_v52 }
 0x35d   : > { %v3951_v38 = vmax.f32 %v8150_v48, %v3861_v56  ;;  %v3895_v1 = vsel %vm328_vm2, %v3892_v20, %v3894_v34  ;;  %v4020_v57 = vrot.slane %v3950_v55, 1  ;;  %v3862_v51 = vrot.slane %v8192_v44, 1 }
 0x35e   : > { %v3968_v54 = vmax.f32 %v8119_v60, %v3895_v1  ;;  %v3864_v15 = vrot.slane %v8195_v7, 1  ;;  %5600 = vmatprep.subr.bf16.mxu1 %v5599_v39  ;;  %v3897_v27 = vsel %vm328_vm2, %v3894_v34, %v3896_v53  ;;  %v3780_v10 = vmax.f32 %v8140_v12, %v3752_v42 }
 0x35f   : > { %v4022_v46 = vrot.slane %v3951_v38, 1  ;;  %v4021_v20 = vsel %vm328_vm2, %v4018_v31, %v4020_v57  ;;  %v3969_v16 = vmax.f32 %v8171_v37, %v3897_v27  ;;  %v3863_v29 = vsel %vm328_vm2, %v3860_v2, %v3862_v51 }
 0x360   : > { %v4056_v14 = vrot.slane %v3968_v54, 1  ;;  %v4112_v17 = vmax.f32 %v8091_v63, %v4021_v20  ;;  %v3865_v8 = vsel %vm328_vm2, %v3862_v51, %v3864_v15  ;;  %v3952_v32 = vmax.f32 %v8165_v41, %v3863_v29 }
 0x361   : > { %v4023_v28 = vsel %vm328_vm2, %v4020_v57, %v4022_v46  ;;  %v4058_v22 = vrot.slane %v3969_v16, 1  ;;  %v3953_v31 = vmax.f32 %v8192_v44, %v3865_v8  ;;  %v3781_v2 = vmax.f32 %v8155_v35, %v3753_v43 }
 0x362   : > { %v4113_v62 = vmax.f32 %v8059_v4, %v4023_v28  ;;  %v4057_v59 = vsel %vm328_vm2, %v4054_v40, %v4056_v14  ;;  %v4024_v13 = vrot.slane %v3952_v32, 1  ;;  %v8219_v25 = vmax.f32 %v3752_v42, 0.0 }
 0x363   : > { %v4130_v24 = vmax.f32 %v8111_v0, %v4057_v59  ;;  %v4059_v63 = vsel %vm328_vm2, %v4056_v14, %v4058_v22  ;;  %v4026_v34 = vrot.slane %v3953_v31, 1  ;;  %v8222_v56 = vmax.f32 %v3753_v43, 0.0 }
 0x364   : > { %v5601_v36 = vpack.c.bf16 %v4113_v62, %v4112_v17  ;;  %v4131_v4 = vmax.f32 %v8119_v60, %v4059_v63  ;;  %v4025_v40 = vsel %vm328_vm2, %v4022_v46, %v4024_v13  ;;  %v8227_v55 = vmax.f32 %v8086_v58, %v3780_v10 }
 0x365   : > { %v8230_v0 = vmax.f32 %v8089_v45, %v3781_v2  ;;  %v4027_v42 = vsel %vm328_vm2, %v4024_v13, %v4026_v34  ;;  %v4114_v39 = vmax.f32 %v8150_v48, %v4025_v40  ;;  %v3764_v38 = vmax.f32 %v8161_v21, %v7893_v47 }
 0x366   : > { %5602 = vmatpush3.bf16.msra.mxu1 %v5601_v36  ;;  %v3765_v1 = vmax.f32 %v7885_v5, %v7897_v11  ;;  %v5603_v60 = vpack.c.bf16 %v4131_v4, %v4130_v24  ;;  %v4115_v57 = vmax.f32 %v8165_v41, %v4027_v42  ;;  %v3898_v58 = vrot.slane %v8227_v55, 1 }
 0x367   : > { %v3900_v54 = vrot.slane %v8230_v0, 1  ;;  %v8242_v45 = vmax.f32 %v8095_v49, %v3764_v38  ;;  %v8249_v48 = vmax.f32 %v8140_v12, %v8219_v25  ;;  %v8253_v5 = vmax.f32 %v8155_v35, %v8222_v56 }
 0x368   : > { %v8245_v51 = vmax.f32 %v8133_v30, %v3765_v1  ;;  %5604 = vmatprep.subr.bf16.mxu1 %v5603_v60  ;;  %v5605_v11 = vpack.c.bf16 %v4115_v57, %v4114_v39  ;;  %v3899_v41 = vsel %vm328_vm2, %v3896_v53, %v3898_v58  ;;  %v8261_v49 = vmax.f32 %v8161_v21, %v3766_v23 }
 0x369   : > { %v3901_v46 = vsel %vm328_vm2, %v3898_v58, %v3900_v54  ;;  %v3970_v30 = vmax.f32 %v8186_v61, %v3899_v41  ;;  %v3866_v27 = vrot.slane %v8242_v45, 1  ;;  %v3902_v52 = vrot.slane %v8249_v48, 1 }
 0x36a   : > { %v3971_v12 = vmax.f32 %v8227_v55, %v3901_v46  ;;  %v3868_v35 = vrot.slane %v8245_v51, 1  ;;  %5606 = vmatpush3.bf16.msra.mxu1 %v5605_v11  ;;  %v3904_v53 = vrot.slane %v8253_v5, 1  ;;  %v3870_v43 = vrot.slane %v8261_v49, 1 }
 0x36b   : > { %v3872_v10 = vrot.slane %v7995_v9, 1  ;;  %v4060_v20 = vrot.slane %v3970_v30, 1  ;;  %v3867_v21 = vsel %vm328_vm2, %v3864_v15, %v3866_v27  ;;  %v3903_v28 = vsel %vm328_vm2, %v3900_v54, %v3902_v52 }
 0x36c   : > { %v4062_v23 = vrot.slane %v3971_v12, 1  ;;  %v3869_v16 = vsel %vm328_vm2, %v3866_v27, %v3868_v35  ;;  %v3954_v14 = vmax.f32 %v8195_v7, %v3867_v21  ;;  %v3905_v17 = vsel %vm328_vm2, %v3902_v52, %v3904_v53 }
 0x36d   : > { %v3955_v29 = vmax.f32 %v8242_v45, %v3869_v16  ;;  %v4061_v8 = vsel %vm328_vm2, %v4058_v22, %v4060_v20  ;;  %v3972_v62 = vmax.f32 %v8230_v0, %v3903_v28  ;;  %v3973_v59 = vmax.f32 %v8249_v48, %v3905_v17 }
 0x36e   : > { %v4063_v32 = vsel %vm328_vm2, %v4060_v20, %v4062_v23  ;;  %v4132_v15 = vmax.f32 %v8171_v37, %v4061_v8  ;;  %v4028_v24 = vrot.slane %v3954_v14, 1  ;;  %v3871_v63 = vsel %vm328_vm2, %v3868_v35, %v3870_v43 }
 0x36f   : > { %v4133_v31 = vmax.f32 %v8186_v61, %v4063_v32  ;;  %v4030_v13 = vrot.slane %v3955_v29, 1  ;;  %v4064_v2 = vrot.slane %v3972_v62, 1  ;;  %v4066_v36 = vrot.slane %v3973_v59, 1 }
 0x370   : > { %v3873_v4 = vsel %vm328_vm2, %v3870_v43, %v3872_v10  ;;  %v4029_v22 = vsel %vm328_vm2, %v4026_v34, %v4028_v24  ;;  %v3956_v39 = vmax.f32 %v8245_v51, %v3871_v63  ;;  %v3906_v11 = vrot.slane %v8219_v25, 1 }
 0x371   : > { %v5607_v40 = vpack.c.bf16 %v4133_v31, %v4132_v15  ;;  %v4031_v42 = vsel %vm328_vm2, %v4028_v24, %v4030_v13  ;;  %v4116_v38 = vmax.f32 %v8192_v44, %v4029_v22  ;;  %v4065_v61 = vsel %vm328_vm2, %v4062_v23, %v4064_v2 }
 0x372   : > { %v4117_v37 = vmax.f32 %v8195_v7, %v4031_v42  ;;  %v4067_v1 = vsel %vm328_vm2, %v4064_v2, %v4066_v36  ;;  %v4134_v60 = vmax.f32 %v8227_v55, %v4065_v61  ;;  %v3957_v58 = vmax.f32 %v8261_v49, %v3873_v4 }
 0x373   : > { %5608 = vmatprep.subr.bf16.mxu1 %v5607_v40  ;;  %v4135_v57 = vmax.f32 %v8230_v0, %v4067_v1  ;;  %v4032_v34 = vrot.slane %v3956_v39, 1  ;;  %v3908_v41 = vrot.slane %v8222_v56, 1  ;;  %v3798_v44 = vmax.f32 %v7893_v47, %v3768_v33  ;;  %v4140_v1 = vld [vmem:[%s8385_s4] sm:$0xff] }
 0x374   : > { %v5609_v54 = vpack.c.bf16 %v4117_v37, %v4116_v38  ;;  %v4034_v30 = vrot.slane %v3957_v58, 1  ;;  %v3876_v55 = vrot.slane %v7998_v6, 1  ;;  %v3907_v12 = vsel %vm328_vm2, %v3904_v53, %v3906_v11  ;;  %v4149_v58 = vld [vmem:[%s8385_s4 + $0x48] sm:$0xff] }
 0x375   : > { %v5611_v7 = vpack.c.bf16 %v4135_v57, %v4134_v60  ;;  %v4033_v46 = vsel %vm328_vm2, %v4030_v13, %v4032_v34  ;;  %v3909_v27 = vsel %vm328_vm2, %v3906_v11, %v3908_v41  ;;  %v3874_v35 = vrot.slane %v3798_v44, 1  ;;  %v4147_v60 = vld [vmem:[%s8385_s4 + $0x38] sm:$0xff]  ;;  %v4146_v57 = vld [vmem:[%s8385_s4 + $0x30] sm:$0xff] }
 0x376   : > { %5610 = vmatpush3.bf16.msra.mxu1 %v5609_v54  ;;  %v4118_v0 = vmax.f32 %v8242_v45, %v4033_v46  ;;  %v4035_v52 = vsel %vm328_vm2, %v4032_v34, %v4034_v30  ;;  %v3974_v19 = vmax.f32 %v8253_v5, %v3907_v12  ;;  %v3975_v47 = vmax.f32 %v8219_v25, %v3909_v27  ;;  %v4148_v34 = vld [vmem:[%s8385_s4 + $0x40] sm:$0xff]  ;;  %v4151_v54 = vld [vmem:[%s8385_s4 + $0x58] sm:$0xff]  ;;  %v4150_v11 = vld [vmem:[%s8385_s4 + $0x50] sm:$0xff] }
 0x377   : > { %5612 = vmatprep.subr.bf16.mxu1 %v5611_v7  ;;  %v4119_v3 = vmax.f32 %v8245_v51, %v4035_v52  ;;  %v3875_v33 = vsel %vm328_vm2, %v3872_v10, %v3874_v35  ;;  %v3877_v43 = vsel %vm328_vm2, %v3874_v35, %v3876_v55  ;;  %v6028_v20 = vmov 0.0  }
 0x378   : > { %v3910_v45 = vrot.slane %v6028_v20, 1  ;;  %v4068_v23 = vrot.slane %v3974_v19, 1  ;;  %v4070_v53 = vrot.slane %v3975_v47, 1  ;;  %v3958_v21 = vmax.f32 %v7995_v9, %v3875_v33 }
 0x379   : > { %v3959_v16 = vmax.f32 %v3798_v44, %v3877_v43  ;;  %v5613_v14 = vpack.c.bf16 %v4119_v3, %v4118_v0  ;;  %v3879_v17 = vsel %vm328_vm2, %v3876_v55, %v3878_v26 }
 0x37a   : > { %v3911_v29 = vsel %vm328_vm2, %v3908_v41, %v3910_v45  ;;  %v3977_v28 = vmax.f32 %v3910_v45, 0.0  ;;  %v4069_v51 = vsel %vm328_vm2, %v4066_v36, %v4068_v23  ;;  %v4071_v10 = vsel %vm328_vm2, %v4068_v23, %v4070_v53  ;;  %v4153_v41 = vld [vmem:[%s8385_s4 + $0x68] sm:$0x1] }
 0x37b   : > { %v4036_v8 = vrot.slane %v3958_v21, 1  ;;  %v4038_v32 = vrot.slane %v3959_v16, 1  ;;  %5614 = vmatpush3.bf16.msra.mxu1 %v5613_v14  ;;  %v4136_v62 = vmax.f32 %v8249_v48, %v4069_v51  ;;  %v4137_v59 = vmax.f32 %v8253_v5, %v4071_v10 }
 0x37c   : > { %v3976_v15 = vmax.f32 %v8222_v56, %v3911_v29  ;;  %v4074_v31 = vrot.slane %v3977_v28, 1  ;;  %v3960_v26 = vmax.f32 %v7998_v6, %v3879_v17 }
 0x37d   : > { %v4037_v24 = vsel %vm328_vm2, %v4034_v30, %v4036_v8  ;;  %v4039_v18 = vsel %vm328_vm2, %v4036_v8, %v4038_v32  ;;  %v5615_v13 = vpack.c.bf16 %v4137_v59, %v4136_v62 }
 0x37e   : > { %v4120_v2 = vmax.f32 %v8261_v49, %v4037_v24  ;;  %v4121_v36 = vmax.f32 %v7995_v9, %v4039_v18  ;;  %v4072_v63 = vrot.slane %v3976_v15, 1  ;;  %v4040_v4 = vrot.slane %v3960_v26, 1 }
 0x37f   : > { %5616 = vmatprep.subr.bf16.mxu1 %v5615_v13 }
 0x380   : > { %v5617_v48 = vpack.c.bf16 %v4121_v36, %v4120_v2  ;;  %v4073_v5 = vsel %vm328_vm2, %v4070_v53, %v4072_v63  ;;  %v4075_v40 = vsel %vm328_vm2, %v4072_v63, %v4074_v31  ;;  %v4041_v39 = vsel %vm328_vm2, %v4038_v32, %v4040_v4 }
 0x381   : > { %v4138_v22 = vmax.f32 %v8219_v25, %v4073_v5  ;;  %v4139_v42 = vmax.f32 %v8222_v56, %v4075_v40  ;;  %v4043_v38 = vsel %vm328_vm2, %v4040_v4, %v8039_v50  ;;  %v4122_v49 = vmax.f32 %v3798_v44, %v4041_v39  ;;  %v4143_v25 = vld [vmem:[%s8385_s4 + $0x18] sm:$0xff]  ;;  %v4142_v50 = vld [vmem:[%s8385_s4 + $0x10] sm:$0xff]  ;;  %v4144_v56 = vld [vmem:[%s8385_s4 + $0x20] sm:$0xff] }
 0x382   : > { %5618 = vmatpush3.bf16.msra.mxu1 %v5617_v48  ;;  %v4123_v9 = vmax.f32 %v7998_v6, %v4043_v38  ;;  %v4145_v6 = vld [vmem:[%s8385_s4 + $0x28] sm:$0xff]  ;;  %v4152_v44 = vld [vmem:[%s8385_s4 + $0x60] sm:$0x1] }
 0x383   : > { %v5619_v37 = vpack.c.bf16 %v4139_v42, %v4138_v22 }
 0x384   : > { %v5621_v61 = vpack.c.bf16 %v4123_v9, %v4122_v49 }
 0x385   : > { %5620 = vmatprep.subr.bf16.mxu1 %v5619_v37 }
 0x386   : > { %5622 = vmatpush3.bf16.msra.mxu1 %v5621_v61 }
 0x389   : > { %4219 = vmatmul.mubr.f32.vlgmr.msra.gmra.mrb[64].mxu1 %v4140_v1 }
 0x38a   : > { %4223 = vmatprep.mubr.f32.mxu1 %v4143_v25 }
 0x38d   : > { %4224 = vmatmul.mubr.f32.gmra.mrb[66].mxu1 %v4142_v50 }
 0x38e   : > { %4228 = vmatprep.mubr.f32.mxu1 %v4145_v6 }
 0x391   : > { %4229 = vmatmul.mubr.f32.gmra.mrb[68].mxu1 %v4144_v56 }
 0x392   : > { %4233 = vmatprep.mubr.f32.mxu1 %v4147_v60 }
 0x395   : > { %4234 = vmatmul.mubr.f32.gmra.mrb[70].mxu1 %v4146_v57 }
 0x396   : > { %4238 = vmatprep.mubr.f32.mxu1 %v4149_v58 }
 0x399   : > { %4239 = vmatmul.mubr.f32.gmra.mrb[72].mxu1 %v4148_v34 }
 0x39a   : > { %4243 = vmatprep.mubr.f32.mxu1 %v4151_v54 }
 0x39d   : > { %4244 = vmatmul.mubr.f32.gmra.mrb[74].mxu1 %v4150_v11 }
 0x39e   : > { %4248 = vmatprep.mubr.f32.mxu1 %v4153_v41 }
 0x3a1   : > { %4249 = vmatmul.mubr.f32.gmra.mrb[76].mxu1 %v4152_v44 }
 0x45c   : > { %v5008_v7 = vpop.f32.mrb[64].mxu1 }
 0x45d   : > { %v5009_v46 = vpop.f32.mrb[65].mxu1 }
 0x45e   : > { %v5010_v30 = vadd.f32 %v5009_v46, %v5008_v7 }
 0x460   : > { %4254 = vst [vmem:[%s224_s13] sm:$0xff] %v5010_v30  ;;  %v5011_v55 = vpop.f32.mrb[66].mxu1 }
 0x461   : > { %v5012_v0 = vpop.f32.mrb[67].mxu1 }
 0x462   : > { %v5013_v12 = vadd.f32 %v5012_v0, %v5011_v55 }
 0x464   : > { %4255 = vst [vmem:[%s224_s13 + $0x8] sm:$0xff] %v5013_v12  ;;  %v5014_v27 = vpop.f32.mrb[68].mxu1 }
 0x465   : > { %v5015_v35 = vpop.f32.mrb[69].mxu1 }
 0x466   : > { %v5016_v52 = vadd.f32 %v5015_v35, %v5014_v27 }
 0x468   : > { %4256 = vst [vmem:[%s224_s13 + $0x10] sm:$0xff] %v5016_v52  ;;  %v5017_v19 = vpop.f32.mrb[70].mxu1 }
 0x469   : > { %v5018_v47 = vpop.f32.mrb[71].mxu1 }
 0x46a   : > { %v5019_v3 = vadd.f32 %v5018_v47, %v5017_v19 }
 0x46c   : > { %4257 = vst [vmem:[%s224_s13 + $0x18] sm:$0xff] %v5019_v3  ;;  %v5020_v33 = vpop.f32.mrb[72].mxu1 }
 0x46d   : > { %v5021_v43 = vpop.f32.mrb[73].mxu1 }
 0x46e   : > { %v5022_v20 = vadd.f32 %v5021_v43, %v5020_v33 }
 0x470   : > { %4258 = vst [vmem:[%s224_s13 + $0x20] sm:$0xff] %v5022_v20  ;;  %v5023_v45 = vpop.f32.mrb[74].mxu1 }
 0x471   : > { %v5024_v23 = vpop.f32.mrb[75].mxu1 }
 0x472   : > { %v5025_v53 = vadd.f32 %v5024_v23, %v5023_v45 }
 0x474   : > { %4259 = vst [vmem:[%s224_s13 + $0x28] sm:$0xff] %v5025_v53  ;;  %v5026_v21 = vpop.f32.mrb[76].mxu1 }
 0x475   : > { %v5027_v16 = vpop.f32.mrb[77].mxu1 }
 0x476   : > { %v5028_v14 = vadd.f32 %v5027_v16, %v5026_v21 }
 0x478   : > { %4260 = vst [vmem:[%s224_s13 + $0x30] sm:$0x1] %v5028_v14 }
 0x479 PF: > { %s15_s18 = sadd.s32 1, %s6026_s18  }
 0x47a   : > { %p12_p4 = scmp.ge.s32.totalorder %s15_s18, 4  }
 0x47c   :  { %14 = sbr.rel (!%p12_p4) target bundleno = 1 (0x1), region = 78 }

</bundles_post_ra>
